<compile_context>
chip_gen: v5e
topology: v5e:2x2
jax: 0.10.0
libtpu: 0.0.40
codegen_flags: <defaults>
</compile_context>

<pallas_src>
import jax
import jax.numpy as jnp
from jax.experimental import pallas as pl
from jax.experimental.pallas import tpu as pltpu


# ---------------------------------------------------------------------------
# Kernel 1: conv1 -> conv2 -> conv3 (folded BN + ReLU) -> running max over N.
# Grid: (B, N // tN).  Output block (1, 1024, 1) is resident across the N axis
# and used directly as the running-max accumulator.
# ---------------------------------------------------------------------------
def _conv_pool_kernel(x_ref, w1_ref, b1_ref, w2_ref, b2_ref, w3_ref, b3_ref,
                      out_ref):
    kn = pl.program_id(1)

    x = x_ref[0]                                                 # (ch, tN) f32

    # conv1 (f32, K=ch is tiny) + folded-BN shift + ReLU         -> (64, tN)
    h = jnp.dot(w1_ref[...], x, preferred_element_type=jnp.float32)
    h = jnp.maximum(h + b1_ref[...], 0.0).astype(jnp.bfloat16)

    # conv2 (bf16 operands, f32 accum)                           -> (128, tN)
    h = jnp.dot(w2_ref[...], h, preferred_element_type=jnp.float32)
    h = jnp.maximum(h + b2_ref[...], 0.0).astype(jnp.bfloat16)

    # conv3                                                      -> (1024, tN)
    h = jnp.dot(w3_ref[...], h, preferred_element_type=jnp.float32)
    h = jnp.maximum(h + b3_ref[...], 0.0)                        # keep f32

    # per-tile max over the point (lane) axis                    -> (1024, 1)
    tile_max = jnp.max(h, axis=1, keepdims=True)

    @pl.when(kn == 0)
    def _():
        out_ref[0] = tile_max

    @pl.when(kn > 0)
    def _():
        out_ref[0] = jnp.maximum(out_ref[0], tile_max)


# ---------------------------------------------------------------------------
# Kernel 2: batched FC tail  (B, 1024) -> fc1 -> fc2 -> fc3 (+bias+eye).
# ---------------------------------------------------------------------------
def _fc_kernel(g_ref, w4_ref, w5_ref, w6_ref, b6e_ref, out_ref):
    g = g_ref[...]                                               # (B, 1024) bf16
    h = jnp.dot(g, w4_ref[...], preferred_element_type=jnp.float32)
    h = jnp.maximum(h, 0.0).astype(jnp.bfloat16)                 # (B, 512)
    h = jnp.dot(h, w5_ref[...], preferred_element_type=jnp.float32)
    h = jnp.maximum(h, 0.0).astype(jnp.bfloat16)                 # (B, 256)
    o = jnp.dot(h, w6_ref[...], preferred_element_type=jnp.float32)
    out_ref[...] = o + b6e_ref[...]                              # (B, ch*ch)


def _auto_tile(n):
    for t in (1024, 512, 256, 128):
        if n % t == 0:
            return t
    return n  # TODO(synk): masked partial N tiles for N not divisible by 128


def tnet_forward(x_ncw, params, n_tile=None):
    """x_ncw: (B, ch, N) float32, PyTorch NCW layout.  Returns (B, ch, ch)."""
    B, ch, N = x_ncw.shape
    (w1f, b1, w2f, b2, w3f, b3, w4t, w5t, w6t, b6e) = params

    tN = n_tile if n_tile is not None else _auto_tile(N)
    if N % tN != 0:
        tN = N
    nN = N // tN

    bf = jnp.bfloat16

    flops = 2 * B * N * (ch * 64 + 64 * 128 + 128 * 1024)
    bytes_accessed = (B * ch * N * 4
                      + 64 * ch * 4 + (128 * 64 + 1024 * 128) * 2
                      + (64 + 128 + 1024) * 4
                      + B * 1024 * 4)

    pooled = pl.pallas_call(
        _conv_pool_kernel,
        out_shape=jax.ShapeDtypeStruct((B, 1024, 1), jnp.float32),
        grid_spec=pltpu.PrefetchScalarGridSpec(
            num_scalar_prefetch=0,
            grid=(B, nN),
            in_specs=[
                pl.BlockSpec((1, ch, tN), lambda b, kn: (b, 0, kn)),
                pl.BlockSpec((64, ch), lambda b, kn: (0, 0)),
                pl.BlockSpec((64, 1), lambda b, kn: (0, 0)),
                pl.BlockSpec((128, 64), lambda b, kn: (0, 0)),
                pl.BlockSpec((128, 1), lambda b, kn: (0, 0)),
                pl.BlockSpec((1024, 128), lambda b, kn: (0, 0)),
                pl.BlockSpec((1024, 1), lambda b, kn: (0, 0)),
            ],
            out_specs=pl.BlockSpec((1, 1024, 1), lambda b, kn: (b, 0, 0)),
        ),
        compiler_params=pltpu.CompilerParams(
            dimension_semantics=("parallel", "arbitrary"),
            vmem_limit_bytes=32 * 1024 * 1024),
        cost_estimate=pl.CostEstimate(
            flops=flops, transcendentals=0, bytes_accessed=bytes_accessed),
    )(x_ncw, w1f, b1, w2f.astype(bf), b2, w3f.astype(bf), b3)

    g = pooled.reshape(B, 1024).astype(bf)

    out = pl.pallas_call(
        _fc_kernel,
        out_shape=jax.ShapeDtypeStruct((B, ch * ch), jnp.float32),
        grid_spec=pltpu.PrefetchScalarGridSpec(
            num_scalar_prefetch=0,
            grid=(1,),
            in_specs=[
                pl.BlockSpec((B, 1024), lambda i: (0, 0)),
                pl.BlockSpec((1024, 512), lambda i: (0, 0)),
                pl.BlockSpec((512, 256), lambda i: (0, 0)),
                pl.BlockSpec((256, ch * ch), lambda i: (0, 0)),
                pl.BlockSpec((1, ch * ch), lambda i: (0, 0)),
            ],
            out_specs=pl.BlockSpec((B, ch * ch), lambda i: (0, 0)),
        ),
        compiler_params=pltpu.CompilerParams(
            dimension_semantics=("arbitrary",)),
    )(g, w4t.astype(bf), w5t.astype(bf), w6t.astype(bf), b6e)

    return out.reshape(B, ch, ch)


def make_params(key, ch):
    """Deterministic synthetic parameters (BN scale pre-folded into weights)."""
    ks = jax.random.split(key, 10)

    def w(k, cout, cin, scale=0.05):
        return jax.random.normal(k, (cout, cin), jnp.float32) * scale

    def bn(k, c):
        kg, kb, km, kv = jax.random.split(k, 4)
        gamma = 1.0 + 0.1 * jax.random.normal(kg, (c,), jnp.float32)
        beta = 0.1 * jax.random.normal(kb, (c,), jnp.float32)
        mean = 0.1 * jax.random.normal(km, (c,), jnp.float32)
        var = jnp.abs(jax.random.normal(kv, (c,), jnp.float32)) + 0.5
        scale = gamma / jnp.sqrt(var + 1e-5)     # eval BN: y = x*scale + shift
        shift = beta - mean * scale
        return scale, shift

    w1 = w(ks[0], 64, ch);    s1, t1 = bn(ks[1], 64)
    w2 = w(ks[2], 128, 64);   s2, t2 = bn(ks[3], 128)
    w3 = w(ks[4], 1024, 128); s3, t3 = bn(ks[5], 1024)

    # conv has no bias -> fold BN scale into weights:  y = (diag(s) W) x + t
    w1f = w1 * s1[:, None]; b1 = t1[:, None]
    w2f = w2 * s2[:, None]; b2 = t2[:, None]
    w3f = w3 * s3[:, None]; b3 = t3[:, None]

    # FC weights stored as (in, out) for right-multiplication by (B, in)
    w4t = jax.random.normal(ks[6], (1024, 512), jnp.float32) * 0.05
    w5t = jax.random.normal(ks[7], (512, 256), jnp.float32) * 0.05
    w6t = jax.random.normal(ks[8], (256, ch * ch), jnp.float32) * 0.05
    b6 = 0.05 * jax.random.normal(ks[9], (1, ch * ch), jnp.float32)
    b6e = b6 + jnp.eye(ch, dtype=jnp.float32).reshape(1, ch * ch)

    return (w1f, b1, w2f, b2, w3f, b3, w4t, w5t, w6t, b6e)


def tnet_reference(x_ncw, params):
    """Pure-JAX reference mirroring the kernel's bf16/f32 precision choices."""
    (w1f, b1, w2f, b2, w3f, b3, w4t, w5t, w6t, b6e) = params
    B, ch, N = x_ncw.shape
    bf = jnp.bfloat16

    h = jnp.einsum('oc,bcn->bon', w1f, x_ncw,
                   preferred_element_type=jnp.float32)
    h = jnp.maximum(h + b1[None], 0.0)
    h = jnp.einsum('oc,bcn->bon', w2f.astype(bf), h.astype(bf),
                   preferred_element_type=jnp.float32)
    h = jnp.maximum(h + b2[None], 0.0)
    h = jnp.einsum('oc,bcn->bon', w3f.astype(bf), h.astype(bf),
                   preferred_element_type=jnp.float32)
    h = jnp.maximum(h + b3[None], 0.0)
    g = jnp.max(h, axis=2).astype(bf)                           # (B, 1024)
    g = jnp.maximum(jnp.dot(g, w4t.astype(bf),
                            preferred_element_type=jnp.float32), 0.0)
    g = jnp.maximum(jnp.dot(g.astype(bf), w5t.astype(bf),
                            preferred_element_type=jnp.float32), 0.0)
    o = jnp.dot(g.astype(bf), w6t.astype(bf),
                preferred_element_type=jnp.float32) + b6e
    return o.reshape(B, ch, ch)


if __name__ == "__main__":
    B, CH, N = 2, 4, 256                      # (batch, channels, points)
    key = jax.random.PRNGKey(0)
    kx, kp = jax.random.split(key)
    x = jax.random.normal(kx, (B, CH, N), jnp.float32)   # PyTorch NCW input
    params = make_params(kp, CH)

    # n_tile=128 -> two N tiles, exercising the running-max accumulation path.
    out = tnet_forward(x, params, n_tile=128)
    out = jax.block_until_ready(out)

    ref = tnet_reference(x, params)
    assert out.shape == (B, CH, CH), out.shape
    assert jnp.allclose(out, ref, atol=1e-2, rtol=1e-2), "mismatch vs reference"

    print("KERNEL_OK")
</pallas_src>

<mosaic_0001>
module attributes {stable_mosaic.version = 11 : i64} {
  func.func @_conv_pool_kernel(%arg0: i32, %arg1: i32, %arg2: memref<1x4x128xf32, #tpu.memory_space<vmem>>, %arg3: memref<64x4xf32, #tpu.memory_space<vmem>>, %arg4: memref<64x1xf32, #tpu.memory_space<vmem>>, %arg5: memref<128x64xbf16, #tpu.memory_space<vmem>>, %arg6: memref<128x1xf32, #tpu.memory_space<vmem>>, %arg7: memref<1024x128xbf16, #tpu.memory_space<vmem>>, %arg8: memref<1024x1xf32, #tpu.memory_space<vmem>>, %arg9: memref<1x1024x1xf32, #tpu.memory_space<vmem>>) attributes {dimension_semantics = [#tpu.dimension_semantics<parallel>, #tpu.dimension_semantics<arbitrary>], iteration_bounds = array<i64: 2, 2>, scalar_prefetch = 0 : i64, scratch_operands = 0 : i64, tpu.core_type = #tpu.core_type<tc>, window_params = [{transform_indices = @transform_0, window_bounds = array<i64: 1, 4, 128>}, {pipeline_mode = #tpu.pipeline_mode<synchronous>, transform_indices = @transform_1, window_bounds = array<i64: 64, 4>}, {pipeline_mode = #tpu.pipeline_mode<synchronous>, transform_indices = @transform_2, window_bounds = array<i64: 64, 1>}, {pipeline_mode = #tpu.pipeline_mode<synchronous>, transform_indices = @transform_3, window_bounds = array<i64: 128, 64>}, {pipeline_mode = #tpu.pipeline_mode<synchronous>, transform_indices = @transform_4, window_bounds = array<i64: 128, 1>}, {pipeline_mode = #tpu.pipeline_mode<synchronous>, transform_indices = @transform_5, window_bounds = array<i64: 1024, 128>}, {pipeline_mode = #tpu.pipeline_mode<synchronous>, transform_indices = @transform_6, window_bounds = array<i64: 1024, 1>}, {transform_indices = @transform_7, window_bounds = array<i64: 1, 1024, 1>}]} {
    %c0 = arith.constant 0 : index
    %c0_0 = arith.constant 0 : index
    %c0_1 = arith.constant 0 : index
    %0 = vector.load %arg2[%c0, %c0_0, %c0_1] : memref<1x4x128xf32, #tpu.memory_space<vmem>>, vector<1x4x128xf32>
    %1 = vector.shape_cast %0 : vector<1x4x128xf32> to vector<4x128xf32>
    %c0_2 = arith.constant 0 : index
    %c0_3 = arith.constant 0 : index
    %2 = vector.load %arg3[%c0_2, %c0_3] : memref<64x4xf32, #tpu.memory_space<vmem>>, vector<64x4xf32>
    %cst = arith.constant dense<0.000000e+00> : vector<64x128xf32>
    %3 = tpu.matmul %2, %1, %cst {dimension_numbers = #tpu.dot_dimension_numbers<[1], [0], [0], [1], [0, 0, 1, 1], [], []>} : vector<64x4xf32>, vector<4x128xf32>, vector<64x128xf32> -> vector<64x128xf32>
    %c0_4 = arith.constant 0 : index
    %c0_5 = arith.constant 0 : index
    %4 = vector.load %arg4[%c0_4, %c0_5] : memref<64x1xf32, #tpu.memory_space<vmem>>, vector<64x1xf32>
    %5 = vector.broadcast %4 : vector<64x1xf32> to vector<64x128xf32>
    %6 = arith.addf %3, %5 : vector<64x128xf32>
    %cst_6 = arith.constant 0.000000e+00 : f32
    %7 = vector.broadcast %cst_6 : f32 to vector<64x128xf32>
    %8 = arith.maximumf %6, %7 : vector<64x128xf32>
    %9 = arith.truncf %8 : vector<64x128xf32> to vector<64x128xbf16>
    %c0_7 = arith.constant 0 : index
    %c0_8 = arith.constant 0 : index
    %10 = vector.load %arg5[%c0_7, %c0_8] : memref<128x64xbf16, #tpu.memory_space<vmem>>, vector<128x64xbf16>
    %cst_9 = arith.constant dense<0.000000e+00> : vector<128x128xf32>
    %11 = tpu.matmul %10, %9, %cst_9 {dimension_numbers = #tpu.dot_dimension_numbers<[1], [0], [0], [1], [0, 0, 1, 1], [], []>} : vector<128x64xbf16>, vector<64x128xbf16>, vector<128x128xf32> -> vector<128x128xf32>
    %c0_10 = arith.constant 0 : index
    %c0_11 = arith.constant 0 : index
    %12 = vector.load %arg6[%c0_10, %c0_11] : memref<128x1xf32, #tpu.memory_space<vmem>>, vector<128x1xf32>
    %13 = vector.broadcast %12 : vector<128x1xf32> to vector<128x128xf32>
    %14 = arith.addf %11, %13 : vector<128x128xf32>
    %cst_12 = arith.constant 0.000000e+00 : f32
    %15 = vector.broadcast %cst_12 : f32 to vector<128x128xf32>
    %16 = arith.maximumf %14, %15 : vector<128x128xf32>
    %17 = arith.truncf %16 : vector<128x128xf32> to vector<128x128xbf16>
    %c0_13 = arith.constant 0 : index
    %c0_14 = arith.constant 0 : index
    %18 = vector.load %arg7[%c0_13, %c0_14] : memref<1024x128xbf16, #tpu.memory_space<vmem>>, vector<1024x128xbf16>
    %cst_15 = arith.constant dense<0.000000e+00> : vector<1024x128xf32>
    %19 = tpu.matmul %18, %17, %cst_15 {dimension_numbers = #tpu.dot_dimension_numbers<[1], [0], [0], [1], [0, 0, 1, 1], [], []>} : vector<1024x128xbf16>, vector<128x128xbf16>, vector<1024x128xf32> -> vector<1024x128xf32>
    %c0_16 = arith.constant 0 : index
    %c0_17 = arith.constant 0 : index
    %20 = vector.load %arg8[%c0_16, %c0_17] : memref<1024x1xf32, #tpu.memory_space<vmem>>, vector<1024x1xf32>
    %21 = vector.broadcast %20 : vector<1024x1xf32> to vector<1024x128xf32>
    %22 = arith.addf %19, %21 : vector<1024x128xf32>
    %cst_18 = arith.constant 0.000000e+00 : f32
    %23 = vector.broadcast %cst_18 : f32 to vector<1024x128xf32>
    %24 = arith.maximumf %22, %23 : vector<1024x128xf32>
    %cst_19 = arith.constant dense<0xFF800000> : vector<1024xf32>
    %25 = vector.multi_reduction <maximumf>, %24, %cst_19 [1] : vector<1024x128xf32> to vector<1024xf32>
    %26 = vector.shape_cast %25 : vector<1024xf32> to vector<1024x1xf32>
    %c0_i32 = arith.constant 0 : i32
    %27 = arith.cmpi eq, %arg1, %c0_i32 : i32
    %28 = arith.extui %27 : i1 to i32
    %c0_i32_20 = arith.constant 0 : i32
    %29 = arith.cmpi ne, %28, %c0_i32_20 : i32
    scf.if %29 {
      %c0_23 = arith.constant 0 : index
      %c0_24 = arith.constant 0 : index
      %c0_25 = arith.constant 0 : index
      %33 = vector.load %arg9[%c0_23, %c0_24, %c0_25] : memref<1x1024x1xf32, #tpu.memory_space<vmem>>, vector<1x1024x1xf32>
      %34 = vector.shape_cast %33 : vector<1x1024x1xf32> to vector<1024x1xf32>
      %35 = vector.shape_cast %26 : vector<1024x1xf32> to vector<1x1024x1xf32>
      tpu.vector_store %arg9[%c0_23, %c0_24, %c0_25], %35 {strides = array<i32>} : memref<1x1024x1xf32, #tpu.memory_space<vmem>>, vector<1x1024x1xf32>,
    } else {
    }
    %c0_i32_21 = arith.constant 0 : i32
    %30 = arith.cmpi sgt, %arg1, %c0_i32_21 : i32
    %31 = arith.extui %30 : i1 to i32
    %c0_i32_22 = arith.constant 0 : i32
    %32 = arith.cmpi ne, %31, %c0_i32_22 : i32
    scf.if %32 {
      %c0_23 = arith.constant 0 : index
      %c0_24 = arith.constant 0 : index
      %c0_25 = arith.constant 0 : index
      %33 = vector.load %arg9[%c0_23, %c0_24, %c0_25] : memref<1x1024x1xf32, #tpu.memory_space<vmem>>, vector<1x1024x1xf32>
      %34 = vector.shape_cast %33 : vector<1x1024x1xf32> to vector<1024x1xf32>
      %35 = arith.maximumf %34, %26 : vector<1024x1xf32>
      %c0_26 = arith.constant 0 : index
      %c0_27 = arith.constant 0 : index
      %c0_28 = arith.constant 0 : index
      %36 = vector.load %arg9[%c0_26, %c0_27, %c0_28] : memref<1x1024x1xf32, #tpu.memory_space<vmem>>, vector<1x1024x1xf32>
      %37 = vector.shape_cast %36 : vector<1x1024x1xf32> to vector<1024x1xf32>
      %38 = vector.shape_cast %35 : vector<1024x1xf32> to vector<1x1024x1xf32>
      tpu.vector_store %arg9[%c0_26, %c0_27, %c0_28], %38 {strides = array<i32>} : memref<1x1024x1xf32, #tpu.memory_space<vmem>>, vector<1x1024x1xf32>,
    } else {
    }
    return
  }
  func.func @transform_0(%arg0: i32, %arg1: i32) -> (i32, i32, i32) {
    %c0_i32 = arith.constant 0 : i32
    %c0_i32_0 = arith.constant 0 : i32
    return %arg0, %c0_i32, %arg1 : i32, i32, i32
  }
  func.func @transform_1(%arg0: i32, %arg1: i32) -> (i32, i32) {
    %c0_i32 = arith.constant 0 : i32
    %c0_i32_0 = arith.constant 0 : i32
    %c0_i32_1 = arith.constant 0 : i32
    return %c0_i32, %c0_i32_0 : i32, i32
  }
  func.func @transform_2(%arg0: i32, %arg1: i32) -> (i32, i32) {
    %c0_i32 = arith.constant 0 : i32
    %c0_i32_0 = arith.constant 0 : i32
    %c0_i32_1 = arith.constant 0 : i32
    return %c0_i32, %c0_i32_0 : i32, i32
  }
  func.func @transform_3(%arg0: i32, %arg1: i32) -> (i32, i32) {
    %c0_i32 = arith.constant 0 : i32
    %c0_i32_0 = arith.constant 0 : i32
    %c0_i32_1 = arith.constant 0 : i32
    return %c0_i32, %c0_i32_0 : i32, i32
  }
  func.func @transform_4(%arg0: i32, %arg1: i32) -> (i32, i32) {
    %c0_i32 = arith.constant 0 : i32
    %c0_i32_0 = arith.constant 0 : i32
    %c0_i32_1 = arith.constant 0 : i32
    return %c0_i32, %c0_i32_0 : i32, i32
  }
  func.func @transform_5(%arg0: i32, %arg1: i32) -> (i32, i32) {
    %c0_i32 = arith.constant 0 : i32
    %c0_i32_0 = arith.constant 0 : i32
    %c0_i32_1 = arith.constant 0 : i32
    return %c0_i32, %c0_i32_0 : i32, i32
  }
  func.func @transform_6(%arg0: i32, %arg1: i32) -> (i32, i32) {
    %c0_i32 = arith.constant 0 : i32
    %c0_i32_0 = arith.constant 0 : i32
    %c0_i32_1 = arith.constant 0 : i32
    return %c0_i32, %c0_i32_0 : i32, i32
  }
  func.func @transform_7(%arg0: i32, %arg1: i32) -> (i32, i32, i32) {
    %c0_i32 = arith.constant 0 : i32
    %c0_i32_0 = arith.constant 0 : i32
    %c0_i32_1 = arith.constant 0 : i32
    return %arg0, %c0_i32, %c0_i32_0 : i32, i32, i32
  }
}

</mosaic_0001>

<bundles_post_ra>
// kernel: tpu_custom_call.1
= control target key start
LH: loop header
LB: loop body
LE: loop exit
PB: predicated region body
PF: predicated region fallthrough
CT: control target
= control target key end

     0   :  { %s3820_s24 = smov 0   ;;  %s3822_s25 = smov 0   ;;  %s6346_s0 = inlined_call_operand.vmem [shape: f32[2,4,256], index: 0, kind: input, shape index: {}]   ;;  %s6347_s1 = inlined_call_operand.vmem [shape: f32[64,4], index: 1, kind: input, shape index: {}]   ;;  %s6348_s2 = inlined_call_operand.vmem [shape: f32[64,1], index: 2, kind: input, shape index: {}]   ;;  %s6349_s3 = inlined_call_operand.vmem [shape: bf16[128,64], index: 3, kind: input, shape index: {}]   ;;  %s6350_s4 = inlined_call_operand.vmem [shape: f32[128,1], index: 4, kind: input, shape index: {}]   ;;  %s6351_s5 = inlined_call_operand.vmem [shape: bf16[1024,128], index: 5, kind: input, shape index: {}]   ;;  %s6352_s6 = inlined_call_operand.vmem [shape: f32[1024,1], index: 6, kind: input, shape index: {}]   ;;  %s6353_s7 = inlined_call_operand.vmem [shape: f32[2,1024,1], index: 7, kind: output, shape index: {}]  }
   0x1   :  { %s3824_s26 = smov 0   ;;  %s3826_s27 = smov 0  }
   0x2   :  { %s3828_s28 = smov 0  }
   0x3 LB: > { %s26_s29 = sadd.s32 1, %s3769_s26  ;;  %s29_s30 = sadd.s32 1, %s3773_s27  ;;  %s3777_s28 = sphi %s3828_s28, %s17_s28   ;;  %s3773_s27 = sphi %s3826_s27, %s6676_s27   ;;  %s3769_s26 = sphi %s3824_s26, %s6675_s26   ;;  %s3765_s25 = sphi %s3822_s25, %s6674_s25   ;;  %s3761_s24 = sphi %s3820_s24, %s6673_s24  }
   0x4   : > { %p27_p0 = scmp.ge.s32.totalorder %s26_s29, 2  ;;  %p3283_p1 = scmp.ge.s32.totalorder %s3777_s28, 1 }
   0x5   : > { %p254_p2 = scmp.lt.s32.totalorder %s3777_s28, 5 }
   0x6   : > { %s6678_s29 = smov (%p27_p0, %s26_s29), 0  ;;  %s6680_s30 = smov (!%p27_p0, %s29_s30), %s3773_s27 }
   0x7   : > { %p255_p3 = pnand %p3283_p1, %p254_p2  ;;  %p31_p4 = scmp.ge.s32.totalorder %s6680_s30, 2 }
   0x9   : > { %s6682_s30 = smov (%p31_p4, %s6680_s30), 0  ;;  %258 = sbr.rel (%p255_p3) target bundleno = 1339 (0x53b), region = 48 }
   0xe   : > { %v316_v0 = vld [vmem:[%s6348_s2 + $0x20] sm:$0xff]  ;;  %v314_v1 = vld [vmem:[%s6348_s2 + $0x10] sm:$0xff]  ;;  %p289_p5 = scmp.lt.s32.totalorder %s3765_s25, 1  ;;  %p291_p6 = scmp.lt.s32.totalorder %s3761_s24, 1  ;;  %v3779_v3 = vmov 0   ;;  %vm385_vm0 = vcmask 1043456  }
   0xf   : > { %v312_v2 = vld [vmem:[%s6348_s2] sm:$0xff]  ;;  %3738 = vset.pattern.permute.xlu2 %v3779_v3  ;;  %3737 = vset.pattern.permute.xlu1 %v3779_v3  ;;  %v317_v4 = vld [vmem:[%s6348_s2 + $0x28] sm:$0xff]  ;;  %vm360_vm1 = vcmask 31744   ;;  %v315_v7 = vld [vmem:[%s6348_s2 + $0x18] sm:$0xff]  ;;  %vm594_vm2 = vcmask 523264   ;;  %p3593_p7 = scmp.ne.s32.totalorder %s3761_s24, 0 }
  0x10   : > { %3736 = vset.pattern.permute.xlu0 %v3779_v3  ;;  %342 = vperm.xlu2 %3738, %v316_v0   ;;  %s6684_s25 = smov (!%p289_p5, %s3765_s25), 1  ;;  %v304_v5 = vld [vmem:[%s6347_s1] sm:$0xff]  ;;  %v313_v8 = vld [vmem:[%s6348_s2 + $0x8] sm:$0xff]  ;;  %v319_v12 = vld [vmem:[%s6348_s2 + $0x38] sm:$0xff] }
  0x11   : > { %332 = vperm.xlu1 %3737, %v314_v1   ;;  %322 = vperm.xlu0 %3736, %v312_v2   ;;  %s292_s14 = scalar_select %p291_p6, %s3761_s24, 1  ;;  %v308_v9 = vld [vmem:[%s6347_s1 + $0x20] sm:$0xff]  ;;  %v305_v11 = vld [vmem:[%s6347_s1 + $0x8] sm:$0xff]  ;;  %v318_v13 = vld [vmem:[%s6348_s2 + $0x30] sm:$0xff] }
  0x12   : > { %s3284_s15 = sshll.u32 %s6684_s25, 1  ;;  %s3597_s16 = sshll.u32 %s6684_s25, 10  ;;  %v458_v10 = vld [vmem:[%s6350_s4] sm:$0xff]  ;;  %v309_v14 = vld [vmem:[%s6347_s1 + $0x28] sm:$0xff]  ;;  %v461_v15 = vld [vmem:[%s6350_s4 + $0x18] sm:$0xff] }
  0x13   : > { %s294_s17 = sadd.s32 %s3284_s15, %s292_s14  ;;  %s3866_s20 = scalar_lea.vmem %s6353_s7, %s3597_s16  ;;  %v306_v16 = vld [vmem:[%s6347_s1 + $0x10] sm:$0xff]  ;;  %v459_v18 = vld [vmem:[%s6350_s4 + $0x8] sm:$0xff]  ;;  %v307_v21 = vld [vmem:[%s6347_s1 + $0x18] sm:$0xff] }
  0x14   : > { %s3285_s21 = sshll.u32 %s294_s17, 2  ;;  %v460_v17 = vld [vmem:[%s6350_s4 + $0x10] sm:$0xff]  ;;  %v463_v22 = vld [vmem:[%s6350_s4 + $0x28] sm:$0xff]  ;;  %v462_v23 = vld [vmem:[%s6350_s4 + $0x20] sm:$0xff] }
  0x15   : > { %s296_s8 = scalar_lea.vmem %s6346_s0, %s3285_s21  ;;  %v310_v19 = vld [vmem:[%s6347_s1 + $0x30] sm:$0xff]  ;;  %v311_v24 = vld [vmem:[%s6347_s1 + $0x38] sm:$0xff]  ;;  %v467_v25 = vld [vmem:[%s6350_s4 + $0x48] sm:$0xff] }
  0x16   : > { %v303_v6 = vld [vmem:[%s296_s8] sm:$0xf]  ;;  %v464_v20 = vld [vmem:[%s6350_s4 + $0x30] sm:$0xff]  ;;  %v465_v27 = vld [vmem:[%s6350_s4 + $0x38] sm:$0xff] }
  0x17   : > { %3288 = vmatpush.msk.msra.mxu0 %vm385_vm0, %v303_v6  ;;  %3670 = vmatpush.msk.msra.mxu1 %vm385_vm0, %v303_v6  ;;  %v466_v26 = vld [vmem:[%s6350_s4 + $0x40] sm:$0xff]  ;;  %v469_v29 = vld [vmem:[%s6350_s4 + $0x58] sm:$0xff]  ;;  %v468_v30 = vld [vmem:[%s6350_s4 + $0x50] sm:$0xff] }
  0x18   : > { %347 = vperm.xlu2 %3738, %v317_v4   ;;  %3289 = vmatmul.msk.f32.vlgmr.msra.gmra.mxu0 %vm360_vm1, %v304_v5  ;;  %v470_v28 = vld [vmem:[%s6350_s4 + $0x60] sm:$0xff]  ;;  %v473_v31 = vld [vmem:[%s6350_s4 + $0x78] sm:$0xff]  ;;  %v472_v32 = vld [vmem:[%s6350_s4 + $0x70] sm:$0xff] }
  0x19   : > { %337 = vperm.xlu1 %3737, %v315_v7   ;;  %327 = vperm.xlu0 %3736, %v313_v8   ;;  %v471_v33 = vld [vmem:[%s6350_s4 + $0x68] sm:$0xff]  ;;  %v822_v34 = vld [vmem:[%s6352_s6 + $0x10] sm:$0xff]  ;;  %v820_v36 = vld [vmem:[%s6352_s6] sm:$0xff] }
  0x1a   : > { %3293 = vmatmul.msk.f32.vlgmr.msra.gmra.mxu1 %vm360_vm1, %v308_v9  ;;  %v821_v35 = vld [vmem:[%s6352_s6 + $0x8] sm:$0xff]  ;;  %v824_v38 = vld [vmem:[%s6352_s6 + $0x20] sm:$0xff]  ;;  %v823_v39 = vld [vmem:[%s6352_s6 + $0x18] sm:$0xff] }
  0x1b   : > { %v825_v37 = vld [vmem:[%s6352_s6 + $0x28] sm:$0xff]  ;;  %v828_v40 = vld [vmem:[%s6352_s6 + $0x40] sm:$0xff]  ;;  %v827_v41 = vld [vmem:[%s6352_s6 + $0x38] sm:$0xff] }
  0x1c   : > { %v826_v42 = vld [vmem:[%s6352_s6 + $0x30] sm:$0xff]  ;;  %v831_v43 = vld [vmem:[%s6352_s6 + $0x58] sm:$0xff]  ;;  %v829_v45 = vld [vmem:[%s6352_s6 + $0x48] sm:$0xff] }
  0x1d   : > { %v830_v44 = vld [vmem:[%s6352_s6 + $0x50] sm:$0xff]  ;;  %v833_v47 = vld [vmem:[%s6352_s6 + $0x68] sm:$0xff]  ;;  %v832_v48 = vld [vmem:[%s6352_s6 + $0x60] sm:$0xff] }
  0x1e   : > { %v834_v46 = vld [vmem:[%s6352_s6 + $0x70] sm:$0xff]  ;;  %v837_v49 = vld [vmem:[%s6352_s6 + $0x88] sm:$0xff]  ;;  %v836_v50 = vld [vmem:[%s6352_s6 + $0x80] sm:$0xff] }
  0x1f   : > { %v835_v51 = vld [vmem:[%s6352_s6 + $0x78] sm:$0xff]  ;;  %v840_v52 = vld [vmem:[%s6352_s6 + $0xa0] sm:$0xff]  ;;  %v838_v54 = vld [vmem:[%s6352_s6 + $0x90] sm:$0xff] }
  0x20   : > { %476 = vperm.xlu2 %3738, %v458_v10   ;;  %3290 = vmatmul.msk.f32.gmra.mxu0 %vm360_vm1, %v305_v11  ;;  %v839_v53 = vld [vmem:[%s6352_s6 + $0x98] sm:$0xff]  ;;  %v842_v56 = vld [vmem:[%s6352_s6 + $0xb0] sm:$0xff]  ;;  %v841_v57 = vld [vmem:[%s6352_s6 + $0xa8] sm:$0xff] }
  0x21   : > { %357 = vperm.xlu1 %3737, %v319_v12   ;;  %352 = vperm.xlu0 %3736, %v318_v13   ;;  %v843_v55 = vld [vmem:[%s6352_s6 + $0xb8] sm:$0xff]  ;;  %v846_v58 = vld [vmem:[%s6352_s6 + $0xd0] sm:$0xff]  ;;  %v845_v59 = vld [vmem:[%s6352_s6 + $0xc8] sm:$0xff] }
  0x22   : > { %3294 = vmatmul.msk.f32.gmra.mxu1 %vm360_vm1, %v309_v14  ;;  %v844_v60 = vld [vmem:[%s6352_s6 + $0xc0] sm:$0xff]  ;;  %v849_v62 = vld [vmem:[%s6352_s6 + $0xe8] sm:$0xff]  ;;  %v847_v0 = vld [vmem:[%s6352_s6 + $0xd8] sm:$0xff] }
  0x23   : > { %v848_v63 = vld [vmem:[%s6352_s6 + $0xe0] sm:$0xff]  ;;  %v851_v6 = vld [vmem:[%s6352_s6 + $0xf8] sm:$0xff]  ;;  %v850_v7 = vld [vmem:[%s6352_s6 + $0xf0] sm:$0xff] }
  0x24   : > { %v852_v5 = vld [vmem:[%s6352_s6 + $0x100] sm:$0xff]  ;;  %v855_v12 = vld [vmem:[%s6352_s6 + $0x118] sm:$0xff]  ;;  %v854_v13 = vld [vmem:[%s6352_s6 + $0x110] sm:$0xff] }
  0x25   : > { %v853_v14 = vld [vmem:[%s6352_s6 + $0x108] sm:$0xff] }
  0x28   : > { %491 = vperm.xlu2 %3738, %v461_v15   ;;  %3291 = vmatmul.msk.f32.gmra.mxu0 %vm360_vm1, %v306_v16 }
  0x29   : > { %486 = vperm.xlu1 %3737, %v460_v17   ;;  %481 = vperm.xlu0 %3736, %v459_v18   ;;  %v858_v18 = vld [vmem:[%s6352_s6 + $0x130] sm:$0xff] }
  0x2a   : > { %3295 = vmatmul.msk.f32.gmra.mxu1 %vm360_vm1, %v310_v19 }
  0x30   : > { %506 = vperm.xlu2 %3738, %v464_v20   ;;  %3292 = vmatmul.msk.f32.gmra.mxu0 %vm360_vm1, %v307_v21  ;;  %v857_v21 = vld [vmem:[%s6352_s6 + $0x128] sm:$0xff] }
  0x31   : > { %501 = vperm.xlu1 %3737, %v463_v22   ;;  %496 = vperm.xlu0 %3736, %v462_v23   ;;  %v856_v22 = vld [vmem:[%s6352_s6 + $0x120] sm:$0xff] }
  0x32   : > { %3296 = vmatmul.msk.f32.gmra.mxu1 %vm360_vm1, %v311_v24 }
  0x38   : > { %521 = vperm.xlu2 %3738, %v467_v25  }
  0x39   : > { %516 = vperm.xlu1 %3737, %v466_v26   ;;  %511 = vperm.xlu0 %3736, %v465_v27  }
  0x40   : > { %536 = vperm.xlu2 %3738, %v470_v28  }
  0x41   : > { %531 = vperm.xlu1 %3737, %v469_v29   ;;  %526 = vperm.xlu0 %3736, %v468_v30  }
  0x48   : > { %551 = vperm.xlu2 %3738, %v473_v31  }
  0x49   : > { %546 = vperm.xlu1 %3737, %v472_v32   ;;  %541 = vperm.xlu0 %3736, %v471_v33  }
  0x50   : > { %960 = vperm.xlu2 %3738, %v822_v34   ;;  %v861_v34 = vld [vmem:[%s6352_s6 + $0x148] sm:$0xff] }
  0x51   : > { %955 = vperm.xlu1 %3737, %v821_v35   ;;  %950 = vperm.xlu0 %3736, %v820_v36  }
  0x58   : > { %975 = vperm.xlu2 %3738, %v825_v37   ;;  %v860_v37 = vld [vmem:[%s6352_s6 + $0x140] sm:$0xff] }
  0x59   : > { %970 = vperm.xlu1 %3737, %v824_v38   ;;  %965 = vperm.xlu0 %3736, %v823_v39   ;;  %v859_v38 = vld [vmem:[%s6352_s6 + $0x138] sm:$0xff] }
  0x60   : > { %990 = vperm.xlu2 %3738, %v828_v40  }
  0x61   : > { %985 = vperm.xlu1 %3737, %v827_v41   ;;  %980 = vperm.xlu0 %3736, %v826_v42  }
  0x68   : > { %1005 = vperm.xlu2 %3738, %v831_v43  }
  0x69   : > { %1000 = vperm.xlu1 %3737, %v830_v44   ;;  %995 = vperm.xlu0 %3736, %v829_v45  }
  0x6a   : > { %v343_v10 = vpop.permute.xlu2 %342 }
  0x70   : > { %1020 = vperm.xlu2 %3738, %v834_v46  }
  0x71   : > { %1015 = vperm.xlu1 %3737, %v833_v47   ;;  %1010 = vperm.xlu0 %3736, %v832_v48   ;;  %v864_v47 = vld [vmem:[%s6352_s6 + $0x160] sm:$0xff]  ;;  %v863_v48 = vld [vmem:[%s6352_s6 + $0x158] sm:$0xff] }
  0x72   : > { %v348_v19 = vpop.permute.xlu2 %347 }
  0x78   : > { %1035 = vperm.xlu2 %3738, %v837_v49   ;;  %v862_v49 = vld [vmem:[%s6352_s6 + $0x150] sm:$0xff] }
  0x79   : > { %1030 = vperm.xlu1 %3737, %v836_v50   ;;  %1025 = vperm.xlu0 %3736, %v835_v51   ;;  %v3598_v51 = vld [vmem:[%s6349_s3] sm:$0xff] }
  0x80   : > { %1050 = vperm.xlu2 %3738, %v840_v52   ;;  %v867_v52 = vld [vmem:[%s6352_s6 + $0x178] sm:$0xff] }
  0x81   : > { %1045 = vperm.xlu1 %3737, %v839_v53   ;;  %1040 = vperm.xlu0 %3736, %v838_v54   ;;  %v866_v53 = vld [vmem:[%s6352_s6 + $0x170] sm:$0xff]  ;;  %v865_v54 = vld [vmem:[%s6352_s6 + $0x168] sm:$0xff] }
  0x83   : > { %v323_v2 = vpop.permute.xlu0 %322  ;;  %v333_v3 = vpop.permute.xlu1 %332 }
  0x88   : > { %1065 = vperm.xlu2 %3738, %v843_v55   ;;  %v870_v55 = vld [vmem:[%s6352_s6 + $0x190] sm:$0xff] }
  0x89   : > { %1060 = vperm.xlu1 %3737, %v842_v56   ;;  %1055 = vperm.xlu0 %3736, %v841_v57   ;;  %v869_v56 = vld [vmem:[%s6352_s6 + $0x188] sm:$0xff]  ;;  %v868_v57 = vld [vmem:[%s6352_s6 + $0x180] sm:$0xff] }
  0x8b   : > { %v328_v9 = vpop.permute.xlu0 %327  ;;  %v338_v11 = vpop.permute.xlu1 %337 }
  0x90   : > { %1080 = vperm.xlu2 %3738, %v846_v58   ;;  %v3599_v58 = vld [vmem:[%s6349_s3 + $0x8] sm:$0xff] }
  0x91   : > { %1075 = vperm.xlu1 %3737, %v845_v59   ;;  %1070 = vperm.xlu0 %3736, %v844_v60   ;;  %v873_v59 = vld [vmem:[%s6352_s6 + $0x1a8] sm:$0xff]  ;;  %v872_v60 = vld [vmem:[%s6352_s6 + $0x1a0] sm:$0xff] }
  0x93   : > { %v353_v17 = vpop.permute.xlu0 %352  ;;  %v358_v23 = vpop.permute.xlu1 %357 }
  0x95   : > { %v406_v61 = vpop.f32.mrf.mxu0 }
  0x96   : > { %v407_v39 = vadd.f32 %v406_v61, %v323_v2  ;;  %v871_v61 = vld [vmem:[%s6352_s6 + $0x198] sm:$0xff] }
  0x97   : > { %v418_v1 = vpop.f32.mrf.mxu1  ;;  %v879_v2 = vld [vmem:[%s6352_s6 + $0x1d8] sm:$0xff] }
  0x98   : > { %1095 = vperm.xlu2 %3738, %v849_v62   ;;  %v419_v28 = vadd.f32 %v418_v1, %v343_v10  ;;  %v430_v44 = vmax.f32 %v407_v39, 0.0  ;;  %v876_v62 = vld [vmem:[%s6352_s6 + $0x1c0] sm:$0xff]  ;;  %v3600_v1 = vld [vmem:[%s6349_s3 + $0x10] sm:$0xff]  ;;  %v899_v39 = vld [vmem:[%s6352_s6 + $0x278] sm:$0xff] }
  0x99   : > { %1090 = vperm.xlu1 %3737, %v848_v63   ;;  %1085 = vperm.xlu0 %3736, %v847_v0   ;;  %v875_v63 = vld [vmem:[%s6352_s6 + $0x1b8] sm:$0xff]  ;;  %v874_v0 = vld [vmem:[%s6352_s6 + $0x1b0] sm:$0xff]  ;;  %v884_v10 = vld [vmem:[%s6352_s6 + $0x200] sm:$0xff] }
  0x9a   : > { %v434_v35 = vmax.f32 %v419_v28, 0.0  ;;  %v893_v28 = vld [vmem:[%s6352_s6 + $0x248] sm:$0xff] }
  0x9d   : > { %v409_v4 = vpop.f32.mrf.mxu0 }
  0x9e   : > { %v410_v40 = vadd.f32 %v409_v4, %v328_v9  ;;  %v877_v4 = vld [vmem:[%s6352_s6 + $0x1c8] sm:$0xff] }
  0x9f   : > { %v421_v8 = vpop.f32.mrf.mxu1  ;;  %v885_v9 = vld [vmem:[%s6352_s6 + $0x208] sm:$0xff] }
  0xa0   : > { %1110 = vperm.xlu2 %3738, %v852_v5   ;;  %v422_v25 = vadd.f32 %v421_v8, %v348_v19  ;;  %v431_v45 = vmax.f32 %v410_v40, 0.0  ;;  %v882_v5 = vld [vmem:[%s6352_s6 + $0x1f0] sm:$0xff]  ;;  %v3601_v8 = vld [vmem:[%s6349_s3 + $0x18] sm:$0xff] }
  0xa1   : > { %1105 = vperm.xlu1 %3737, %v851_v6   ;;  %1100 = vperm.xlu0 %3736, %v850_v7   ;;  %v881_v6 = vld [vmem:[%s6352_s6 + $0x1e8] sm:$0xff]  ;;  %v880_v7 = vld [vmem:[%s6352_s6 + $0x1e0] sm:$0xff]  ;;  %v898_v40 = vld [vmem:[%s6352_s6 + $0x270] sm:$0xff] }
  0xa2   : > { %v435_v31 = vmax.f32 %v422_v25, 0.0  ;;  %v438_v50 = vpack.c.bf16 %v431_v45, %v430_v44  ;;  %v903_v44 = vld [vmem:[%s6352_s6 + $0x298] sm:$0xff] }
  0xa4   : > { %v440_v42 = vpack.c.bf16 %v435_v31, %v434_v35  ;;  %v896_v35 = vld [vmem:[%s6352_s6 + $0x260] sm:$0xff] }
  0xa5   : > { %v412_v15 = vpop.f32.mrf.mxu0 }
  0xa6   : > { %v413_v36 = vadd.f32 %v412_v15, %v333_v3  ;;  %v878_v3 = vld [vmem:[%s6352_s6 + $0x1d0] sm:$0xff]  ;;  %v4187_v15 = vpop.permute.xlu0 %481 }
  0xa7   : > { %v424_v16 = vpop.f32.mrf.mxu1 }
  0xa8   : > { %1125 = vperm.xlu2 %3738, %v855_v12   ;;  %v425_v20 = vadd.f32 %v424_v16, %v353_v17  ;;  %v432_v43 = vmax.f32 %v413_v36, 0.0  ;;  %v4180_v12 = vpop.permute.xlu2 %476  ;;  %v887_v16 = vld [vmem:[%s6352_s6 + $0x218] sm:$0xff]  ;;  %v886_v17 = vld [vmem:[%s6352_s6 + $0x210] sm:$0xff] }
  0xa9   : > { %1120 = vperm.xlu1 %3737, %v854_v13   ;;  %1115 = vperm.xlu0 %3736, %v853_v14   ;;  %v4182_v13 = vpop.permute.xlu1 %486  ;;  %v888_v14 = vld [vmem:[%s6352_s6 + $0x220] sm:$0xff]  ;;  %v895_v36 = vld [vmem:[%s6352_s6 + $0x258] sm:$0xff] }
  0xaa   : > { %v436_v29 = vmax.f32 %v425_v20, 0.0  ;;  %v3602_v20 = vld [vmem:[%s6349_s3 + $0x20] sm:$0xff] }
  0xad   : > { %v415_v27 = vpop.f32.mrf.mxu0 }
  0xae   : > { %v416_v32 = vadd.f32 %v415_v27, %v338_v11  ;;  %v883_v11 = vld [vmem:[%s6352_s6 + $0x1f8] sm:$0xff]  ;;  %v894_v27 = vld [vmem:[%s6352_s6 + $0x250] sm:$0xff] }
  0xaf   : > { %v427_v24 = vpop.f32.mrf.mxu1 }
  0xb0   : > { %v428_v26 = vadd.f32 %v427_v24, %v358_v23  ;;  %1140 = vperm.xlu2 %3738, %v858_v18   ;;  %v433_v41 = vmax.f32 %v416_v32, 0.0  ;;  %v4195_v18 = vpop.permute.xlu2 %491  ;;  %v889_v23 = vld [vmem:[%s6352_s6 + $0x228] sm:$0xff]  ;;  %v4212_v24 = vpop.permute.xlu0 %496 }
  0xb1   : > { %1135 = vperm.xlu1 %3737, %v857_v21   ;;  %1130 = vperm.xlu0 %3736, %v856_v22   ;;  %v4197_v19 = vpop.permute.xlu1 %501  ;;  %v891_v21 = vld [vmem:[%s6352_s6 + $0x238] sm:$0xff]  ;;  %v890_v22 = vld [vmem:[%s6352_s6 + $0x230] sm:$0xff] }
  0xb2   : > { %v437_v30 = vmax.f32 %v428_v26, 0.0  ;;  %v439_v46 = vpack.c.bf16 %v433_v41, %v432_v43  ;;  %v3604_v43 = vld [vmem:[%s6349_s3 + $0x30] sm:$0xff] }
  0xb4   : > { %v441_v33 = vpack.c.bf16 %v437_v30, %v436_v29  ;;  %v892_v29 = vld [vmem:[%s6352_s6 + $0x240] sm:$0xff]  ;;  %v3603_v30 = vld [vmem:[%s6349_s3 + $0x28] sm:$0xff] }
  0xb6   : > { %623 = vmatpush.bf16.msrb.mxu1 %v441_v33 }
  0xb8   : > { %1155 = vperm.xlu2 %3738, %v861_v34   ;;  %v4214_v25 = vpop.permute.xlu2 %506  ;;  %v4230_v31 = vpop.permute.xlu0 %511  ;;  %v897_v34 = vld [vmem:[%s6352_s6 + $0x268] sm:$0xff] }
  0xb9   : > { %1150 = vperm.xlu1 %3737, %v860_v37   ;;  %1145 = vperm.xlu0 %3736, %v859_v38   ;;  %v4216_v26 = vpop.permute.xlu1 %516  ;;  %v900_v38 = vld [vmem:[%s6352_s6 + $0x280] sm:$0xff] }
  0xba   : > { %624 = vmatpush.bf16.msrb.mxu1 %v440_v42 }
  0xbe   : > { %625 = vmatpush.bf16.msrb.mxu1 %v439_v46  ;;  %v902_v46 = vld [vmem:[%s6352_s6 + $0x290] sm:$0xff] }
  0xc0   : > { %1170 = vperm.xlu2 %3738, %v864_v47   ;;  %v4232_v32 = vpop.permute.xlu2 %521  ;;  %v4246_v37 = vpop.permute.xlu0 %526  ;;  %v901_v47 = vld [vmem:[%s6352_s6 + $0x288] sm:$0xff] }
  0xc1   : > { %1165 = vperm.xlu1 %3737, %v863_v48   ;;  %1160 = vperm.xlu0 %3736, %v862_v49   ;;  %v4234_v33 = vpop.permute.xlu1 %531 }
  0xc2   : > { %626 = vmatpush.bf16.msrb.mxu1 %v438_v50  ;;  %v906_v50 = vld [vmem:[%s6352_s6 + $0x2b0] sm:$0xff] }
  0xc5   : > { %3329 = vmatmul.msk.bf16.vlgmr.msrb.gmra.mxu1 %vm594_vm2, %v3598_v51  ;;  %v905_v51 = vld [vmem:[%s6352_s6 + $0x2a8] sm:$0xff] }
  0xc8   : > { %1185 = vperm.xlu2 %3738, %v867_v52   ;;  %v4257_v41 = vpop.permute.xlu2 %536  ;;  %v4268_v45 = vpop.permute.xlu0 %541  ;;  %v904_v52 = vld [vmem:[%s6352_s6 + $0x2a0] sm:$0xff] }
  0xc9   : > { %1180 = vperm.xlu1 %3737, %v866_v53   ;;  %1175 = vperm.xlu0 %3736, %v865_v54   ;;  %v4259_v42 = vpop.permute.xlu1 %546  ;;  %v3605_v54 = vld [vmem:[%s6349_s3 + $0x38] sm:$0xff] }
  0xd0   : > { %1200 = vperm.xlu2 %3738, %v870_v55   ;;  %v4276_v48 = vpop.permute.xlu2 %551  ;;  %v4289_v53 = vpop.permute.xlu0 %950 }
  0xd1   : > { %1195 = vperm.xlu1 %3737, %v869_v56   ;;  %1190 = vperm.xlu0 %3736, %v868_v57   ;;  %v4278_v49 = vpop.permute.xlu1 %955  ;;  %v909_v57 = vld [vmem:[%s6352_s6 + $0x2c8] sm:$0xff] }
  0xd5   : > { %3330 = vmatmul.msk.bf16.gmra.mxu1 %vm594_vm2, %v3599_v58  ;;  %v908_v58 = vld [vmem:[%s6352_s6 + $0x2c0] sm:$0xff] }
  0xd8   : > { %1215 = vperm.xlu2 %3738, %v873_v59   ;;  %v4294_v55 = vpop.permute.xlu2 %960  ;;  %v907_v59 = vld [vmem:[%s6352_s6 + $0x2b8] sm:$0xff] }
  0xd9   : > { %1210 = vperm.xlu1 %3737, %v872_v60   ;;  %1205 = vperm.xlu0 %3736, %v871_v61   ;;  %v4296_v56 = vpop.permute.xlu1 %970  ;;  %v4308_v60 = vpop.permute.xlu0 %965 }
  0xe0   : > { %1230 = vperm.xlu2 %3738, %v876_v62   ;;  %v4310_v61 = vpop.permute.xlu2 %975 }
  0xe1   : > { %1225 = vperm.xlu1 %3737, %v875_v63   ;;  %1220 = vperm.xlu0 %3736, %v874_v0   ;;  %v4312_v62 = vpop.permute.xlu1 %985  ;;  %v912_v63 = vld [vmem:[%s6352_s6 + $0x2e0] sm:$0xff]  ;;  %v911_v0 = vld [vmem:[%s6352_s6 + $0x2d8] sm:$0xff] }
  0xe5   : > { %3331 = vmatmul.msk.bf16.gmra.mxu1 %vm594_vm2, %v3600_v1  ;;  %v910_v1 = vld [vmem:[%s6352_s6 + $0x2d0] sm:$0xff] }
  0xe8   : > { %1245 = vperm.xlu2 %3738, %v879_v2  }
  0xe9   : > { %1240 = vperm.xlu1 %3737, %v878_v3   ;;  %1235 = vperm.xlu0 %3736, %v877_v4   ;;  %v4325_v3 = vpop.permute.xlu0 %980  ;;  %v915_v4 = vld [vmem:[%s6352_s6 + $0x2f8] sm:$0xff] }
  0xf0   : > { %1260 = vperm.xlu2 %3738, %v882_v5   ;;  %v914_v5 = vld [vmem:[%s6352_s6 + $0x2f0] sm:$0xff] }
  0xf1   : > { %1255 = vperm.xlu1 %3737, %v881_v6   ;;  %1250 = vperm.xlu0 %3736, %v880_v7   ;;  %v913_v6 = vld [vmem:[%s6352_s6 + $0x2e8] sm:$0xff]  ;;  %v4336_v7 = vpop.permute.xlu2 %990 }
  0xf5   : > { %3332 = vmatmul.msk.bf16.gmra.mxu1 %vm594_vm2, %v3601_v8  ;;  %v4338_v8 = vpop.permute.xlu1 %1000 }
  0xf6   : > { %6365 = vst [vmem:[#allocation2_spill] sm:$0xff] %v4338_v8 }
  0xf8   : > { %1275 = vperm.xlu2 %3738, %v885_v9  }
  0xf9   : > { %1270 = vperm.xlu1 %3737, %v884_v10   ;;  %1265 = vperm.xlu0 %3736, %v883_v11   ;;  %v918_v10 = vld [vmem:[%s6352_s6 + $0x310] sm:$0xff]  ;;  %v4345_v11 = vpop.permute.xlu0 %995 }
 0x100   : > { %1290 = vperm.xlu2 %3738, %v888_v14   ;;  %v917_v14 = vld [vmem:[%s6352_s6 + $0x308] sm:$0xff] }
 0x101   : > { %1285 = vperm.xlu1 %3737, %v887_v16   ;;  %1280 = vperm.xlu0 %3736, %v886_v17   ;;  %v916_v16 = vld [vmem:[%s6352_s6 + $0x300] sm:$0xff]  ;;  %v4353_v17 = vpop.permute.xlu2 %1005 }
 0x105   : > { %3333 = vmatmul.msk.bf16.gmra.mxu1 %vm594_vm2, %v3602_v20  ;;  %v4355_v20 = vpop.permute.xlu1 %1015 }
 0x106   : > { %6366 = vst [vmem:[#allocation3_spill] sm:$0xff] %v4355_v20 }
 0x108   : > { %1305 = vperm.xlu2 %3738, %v891_v21  }
 0x109   : > { %1300 = vperm.xlu1 %3737, %v890_v22   ;;  %1295 = vperm.xlu0 %3736, %v889_v23   ;;  %v921_v22 = vld [vmem:[%s6352_s6 + $0x328] sm:$0xff]  ;;  %v920_v23 = vld [vmem:[%s6352_s6 + $0x320] sm:$0xff] }
 0x110   : > { %1320 = vperm.xlu2 %3738, %v894_v27   ;;  %v919_v27 = vld [vmem:[%s6352_s6 + $0x318] sm:$0xff] }
 0x111   : > { %1315 = vperm.xlu1 %3737, %v893_v28   ;;  %1310 = vperm.xlu0 %3736, %v892_v29   ;;  %v4368_v28 = vpop.permute.xlu0 %1010 }
 0x112   : > { %6367 = vst [vmem:[#allocation4_spill] sm:$0xff] %v4368_v28 }
 0x115   : > { %3334 = vmatmul.msk.bf16.gmra.mxu1 %vm594_vm2, %v3603_v30  ;;  %v4372_v30 = vpop.permute.xlu2 %1020 }
 0x116   : > { %6368 = vst [vmem:[#allocation5_spill] sm:$0xff] %v4372_v30 }
 0x118   : > { %1335 = vperm.xlu2 %3738, %v897_v34   ;;  %v4374_v34 = vpop.permute.xlu1 %1030 }
 0x119   : > { %1330 = vperm.xlu1 %3737, %v896_v35   ;;  %1325 = vperm.xlu0 %3736, %v895_v36   ;;  %6369 = vst [vmem:[#allocation6_spill] sm:$0xff] %v4374_v34  ;;  %v924_v35 = vld [vmem:[%s6352_s6 + $0x340] sm:$0xff]  ;;  %v923_v36 = vld [vmem:[%s6352_s6 + $0x338] sm:$0xff] }
 0x120   : > { %1350 = vperm.xlu2 %3738, %v900_v38   ;;  %v922_v38 = vld [vmem:[%s6352_s6 + $0x330] sm:$0xff] }
 0x121   : > { %1345 = vperm.xlu1 %3737, %v899_v39   ;;  %1340 = vperm.xlu0 %3736, %v898_v40   ;;  %v4385_v39 = vpop.permute.xlu0 %1025 }
 0x122   : > { %6370 = vst [vmem:[#allocation7_spill] sm:$0xff] %v4385_v39 }
 0x125   : > { %3335 = vmatmul.msk.bf16.gmra.mxu1 %vm594_vm2, %v3604_v43  ;;  %v4389_v43 = vpop.permute.xlu2 %1035 }
 0x126   : > { %6371 = vst [vmem:[#allocation8_spill] sm:$0xff] %v4389_v43 }
 0x128   : > { %1365 = vperm.xlu2 %3738, %v903_v44   ;;  %v4391_v44 = vpop.permute.xlu1 %1045 }
 0x129   : > { %1360 = vperm.xlu1 %3737, %v902_v46   ;;  %1355 = vperm.xlu0 %3736, %v901_v47   ;;  %6372 = vst [vmem:[#allocation9_spill] sm:$0xff] %v4391_v44  ;;  %v927_v46 = vld [vmem:[%s6352_s6 + $0x358] sm:$0xff]  ;;  %v926_v47 = vld [vmem:[%s6352_s6 + $0x350] sm:$0xff] }
 0x130   : > { %1380 = vperm.xlu2 %3738, %v906_v50   ;;  %v925_v50 = vld [vmem:[%s6352_s6 + $0x348] sm:$0xff] }
 0x131   : > { %1375 = vperm.xlu1 %3737, %v905_v51   ;;  %1370 = vperm.xlu0 %3736, %v904_v52   ;;  %v4404_v52 = vpop.permute.xlu0 %1040 }
 0x132   : > { %6373 = vst [vmem:[#allocation10_spill] sm:$0xff] %v4404_v52 }
 0x135   : > { %3336 = vmatmul.msk.bf16.gmra.mxu1 %vm594_vm2, %v3605_v54  ;;  %v930_v54 = vld [vmem:[%s6352_s6 + $0x370] sm:$0xff] }
 0x138   : > { %1395 = vperm.xlu2 %3738, %v909_v57   ;;  %v929_v57 = vld [vmem:[%s6352_s6 + $0x368] sm:$0xff] }
 0x139   : > { %1390 = vperm.xlu1 %3737, %v908_v58   ;;  %1385 = vperm.xlu0 %3736, %v907_v59   ;;  %v928_v58 = vld [vmem:[%s6352_s6 + $0x360] sm:$0xff]  ;;  %v4415_v59 = vpop.permute.xlu2 %1050 }
 0x13a   : > { %6374 = vst [vmem:[#allocation11_spill] sm:$0xff] %v4415_v59 }
 0x140   : > { %1410 = vperm.xlu2 %3738, %v912_v63   ;;  %v4417_v63 = vpop.permute.xlu1 %1060 }
 0x141   : > { %1405 = vperm.xlu1 %3737, %v911_v0   ;;  %1400 = vperm.xlu0 %3736, %v910_v1   ;;  %6375 = vst [vmem:[#allocation12_spill] sm:$0xff] %v4417_v63  ;;  %v933_v1 = vld [vmem:[%s6352_s6 + $0x388] sm:$0xff] }
 0x142   : > { %v4323_v2 = vpop.f32.mrf.mxu1 }
 0x148   : > { %1425 = vperm.xlu2 %3738, %v915_v4   ;;  %v4424_v4 = vpop.permute.xlu0 %1055 }
 0x149   : > { %1420 = vperm.xlu1 %3737, %v914_v5   ;;  %1415 = vperm.xlu0 %3736, %v913_v6   ;;  %6376 = vst [vmem:[#allocation13_spill] sm:$0xff] %v4424_v4  ;;  %v932_v5 = vld [vmem:[%s6352_s6 + $0x380] sm:$0xff]  ;;  %v931_v6 = vld [vmem:[%s6352_s6 + $0x378] sm:$0xff] }
 0x14a   : > { %v4340_v9 = vpop.f32.mrf.mxu1 }
 0x150   : > { %1440 = vperm.xlu2 %3738, %v918_v10   ;;  %v4432_v10 = vpop.permute.xlu2 %1065 }
 0x151   : > { %1435 = vperm.xlu1 %3737, %v917_v14   ;;  %1430 = vperm.xlu0 %3736, %v916_v16   ;;  %6377 = vst [vmem:[#allocation14_spill] sm:$0xff] %v4432_v10  ;;  %v4434_v14 = vpop.permute.xlu1 %1075 }
 0x152   : > { %v4357_v21 = vpop.f32.mrf.mxu1  ;;  %6378 = vst [vmem:[#allocation15_spill] sm:$0xff] %v4434_v14 }
 0x158   : > { %1455 = vperm.xlu2 %3738, %v921_v22   ;;  %v936_v22 = vld [vmem:[%s6352_s6 + $0x3a0] sm:$0xff] }
 0x159   : > { %1450 = vperm.xlu1 %3737, %v920_v23   ;;  %1445 = vperm.xlu0 %3736, %v919_v27   ;;  %v935_v23 = vld [vmem:[%s6352_s6 + $0x398] sm:$0xff]  ;;  %v934_v27 = vld [vmem:[%s6352_s6 + $0x390] sm:$0xff] }
 0x15a   : > { %v4370_v29 = vpop.f32.mrf.mxu1 }
 0x160   : > { %1470 = vperm.xlu2 %3738, %v924_v35   ;;  %v4447_v35 = vpop.permute.xlu0 %1070 }
 0x161   : > { %1465 = vperm.xlu1 %3737, %v923_v36   ;;  %1460 = vperm.xlu0 %3736, %v922_v38   ;;  %6379 = vst [vmem:[#allocation16_spill] sm:$0xff] %v4447_v35  ;;  %v4451_v38 = vpop.permute.xlu2 %1080 }
 0x162   : > { %v4387_v40 = vpop.f32.mrf.mxu1  ;;  %6380 = vst [vmem:[#allocation17_spill] sm:$0xff] %v4451_v38 }
 0x168   : > { %1485 = vperm.xlu2 %3738, %v927_v46   ;;  %v4453_v46 = vpop.permute.xlu1 %1090 }
 0x169   : > { %1480 = vperm.xlu1 %3737, %v926_v47   ;;  %1475 = vperm.xlu0 %3736, %v925_v50   ;;  %6381 = vst [vmem:[#allocation18_spill] sm:$0xff] %v4453_v46  ;;  %v939_v47 = vld [vmem:[%s6352_s6 + $0x3b8] sm:$0xff]  ;;  %v938_v50 = vld [vmem:[%s6352_s6 + $0x3b0] sm:$0xff] }
 0x16a   : > { %v4402_v51 = vpop.f32.mrf.mxu1 }
 0x170   : > { %1500 = vperm.xlu2 %3738, %v930_v54   ;;  %v937_v54 = vld [vmem:[%s6352_s6 + $0x3a8] sm:$0xff] }
 0x171   : > { %1495 = vperm.xlu1 %3737, %v929_v57   ;;  %1490 = vperm.xlu0 %3736, %v928_v58   ;;  %v4464_v57 = vpop.permute.xlu0 %1085 }
 0x172   : > { %v4419_v0 = vpop.f32.mrf.mxu1  ;;  %6382 = vst [vmem:[#allocation19_spill] sm:$0xff] %v4464_v57 }
 0x178   : > { %1515 = vperm.xlu2 %3738, %v933_v1   ;;  %v4466_v1 = vpop.permute.xlu2 %1095 }
 0x179   : > { %1510 = vperm.xlu1 %3737, %v932_v5   ;;  %1505 = vperm.xlu0 %3736, %v931_v6   ;;  %6383 = vst [vmem:[#allocation20_spill] sm:$0xff] %v4466_v1  ;;  %v4468_v5 = vpop.permute.xlu1 %1105  ;;  %v942_v6 = vld [vmem:[%s6352_s6 + $0x3d0] sm:$0xff] }
 0x17a   : > { %v4436_v16 = vpop.f32.mrf.mxu1  ;;  %6384 = vst [vmem:[#allocation21_spill] sm:$0xff] %v4468_v5  ;;  %v943_v5 = vld [vmem:[%s6352_s6 + $0x3d8] sm:$0xff]  ;;  %v946_v1 = vld [vmem:[%s6352_s6 + $0x3f0] sm:$0xff] }
 0x180   : > { %1530 = vperm.xlu2 %3738, %v936_v22   ;;  %v941_v22 = vld [vmem:[%s6352_s6 + $0x3c8] sm:$0xff]  ;;  %v4490_v46 = vpop.permute.xlu2 %1110 }
 0x181   : > { %1525 = vperm.xlu1 %3737, %v935_v23   ;;  %1520 = vperm.xlu0 %3736, %v934_v27   ;;  %v940_v23 = vld [vmem:[%s6352_s6 + $0x3c0] sm:$0xff]  ;;  %6386 = vst [vmem:[#allocation23_spill] sm:$0xff] %v4490_v46 }
 0x182   : > { %v4449_v36 = vpop.f32.mrf.mxu1 }
 0x188   : > { %1545 = vperm.xlu2 %3738, %v939_v47   ;;  %v4479_v47 = vpop.permute.xlu0 %1100  ;;  %v4502_v57 = vpop.permute.xlu2 %1125 }
 0x189   : > { %1540 = vperm.xlu1 %3737, %v938_v50   ;;  %1535 = vperm.xlu0 %3736, %v937_v54   ;;  %6385 = vst [vmem:[#allocation22_spill] sm:$0xff] %v4479_v47  ;;  %v945_v50 = vld [vmem:[%s6352_s6 + $0x3e8] sm:$0xff]  ;;  %v944_v54 = vld [vmem:[%s6352_s6 + $0x3e0] sm:$0xff]  ;;  %v947_v47 = vld [vmem:[%s6352_s6 + $0x3f8] sm:$0xff] }
 0x18a   : > { %v650_v58 = vpop.f32.mrf.mxu1 }
 0x190   : > { %1560 = vperm.xlu2 %3738, %v942_v6   ;;  %v4492_v6 = vpop.permute.xlu1 %1120  ;;  %v4508_v46 = vpop.permute.xlu2 %1140 }
 0x191   : > { %1555 = vperm.xlu1 %3737, %v941_v22   ;;  %1550 = vperm.xlu0 %3736, %v940_v23   ;;  %v4494_v23 = vpop.permute.xlu0 %1115 }
 0x192   : > { %v653_v27 = vpop.f32.mrf.mxu1  ;;  %6387 = vst [vmem:[#allocation24_spill] sm:$0xff] %v4494_v23 }
 0x198   : > { %1575 = vperm.xlu2 %3738, %v945_v50   ;;  %v4504_v14 = vpop.permute.xlu1 %1135  ;;  %v4514_v63 = vpop.permute.xlu2 %1155 }
 0x199   : > { %1570 = vperm.xlu1 %3737, %v944_v54   ;;  %1565 = vperm.xlu0 %3736, %v943_v5   ;;  %v4506_v54 = vpop.permute.xlu0 %1130 }
 0x19a   : > { %v655_v22 = vpop.f32.mrf.mxu1 }
 0x19b   : > { %v656_v30 = vadd.f32 %v655_v22, %v4234_v33 }
 0x1a0   : > { %v4510_v23 = vpop.permute.xlu1 %1150  ;;  %v4524_v39 = vpop.permute.xlu2 %1170 }
 0x1a1   : > { %1585 = vperm.xlu1 %3737, %v947_v47   ;;  %1580 = vperm.xlu0 %3736, %v946_v1   ;;  %v4512_v38 = vpop.permute.xlu0 %1145 }
 0x1a2   : > { %v658_v50 = vpop.f32.mrf.mxu1 }
 0x1a3   : > { %v659_v52 = vadd.f32 %v658_v50, %v4257_v41  ;;  %v679_v41 = vmax.f32 %v656_v30, 0.0  ;;  %v641_v30 = vadd.f32 %v4402_v51, %v4197_v19  ;;  %v634_v19 = vadd.f32 %v4357_v21, %v4182_v13 }
 0x1a4   : > { %v629_v50 = vadd.f32 %v4323_v2, %v4180_v12  ;;  %v3623_v12 = vld [vmem:[%s6351_s5 + $0x88] sm:$0xff] }
 0x1a8   : > { %v4516_v10 = vpop.permute.xlu1 %1165 }
 0x1a9   : > { %v4521_v59 = vpop.permute.xlu0 %1160 }
 0x1aa   : > { %v660_v5 = vpop.f32.mrf.mxu1 }
 0x1ab   : > { %v661_v1 = vadd.f32 %v660_v5, %v4268_v45  ;;  %v651_v45 = vadd.f32 %v650_v58, %v4232_v32  ;;  %v670_v5 = vmax.f32 %v634_v19, 0.0 }
 0x1ad   : > { %v681_v28 = vmax.f32 %v661_v1, 0.0  ;;  %v668_v1 = vmax.f32 %v629_v50, 0.0  ;;  %v3626_v50 = vld [vmem:[%s6351_s5 + $0xa0] sm:$0xff] }
 0x1b0   : > { %v4526_v20 = vpop.permute.xlu1 %1180 }
 0x1b1   : > { %v4533_v33 = vpop.permute.xlu0 %1175 }
 0x1b2   : > { %v663_v35 = vpop.f32.mrf.mxu1 }
 0x1b3   : > { %v664_v4 = vadd.f32 %v663_v35, %v4259_v42  ;;  %v654_v42 = vadd.f32 %v653_v27, %v4246_v37  ;;  %v680_v35 = vmax.f32 %v659_v52, 0.0  ;;  %v646_v37 = vadd.f32 %v4436_v16, %v4230_v31 }
 0x1b4   : > { %v639_v31 = vadd.f32 %v4387_v40, %v4212_v24  ;;  %v631_v40 = vadd.f32 %v4340_v9, %v4187_v15  ;;  %v3606_v9 = vld [vmem:[%s6351_s5] sm:$0xff] }
 0x1b5   : > { %v682_v34 = vmax.f32 %v664_v4, 0.0  ;;  %v678_v4 = vmax.f32 %v654_v42, 0.0  ;;  %v675_v52 = vmax.f32 %v646_v37, 0.0  ;;  %v3624_v37 = vld [vmem:[%s6351_s5 + $0x90] sm:$0xff] }
 0x1b6   : > { %v672_v51 = vmax.f32 %v639_v31, 0.0  ;;  %v669_v13 = vmax.f32 %v631_v40, 0.0 }
 0x1b8   : > { %v4539_v32 = vpop.permute.xlu1 %1195  ;;  %v684_v15 = vpack.c.bf16 %v669_v13, %v668_v1  ;;  %v3654_v13 = vld [vmem:[%s6351_s5 + $0x180] sm:$0xff] }
 0x1b9   : > { %v4549_v27 = vpop.permute.xlu0 %1190 }
 0x1ba   : > { %v665_v44 = vpop.f32.mrf.mxu1 }
 0x1bb   : > { %v666_v47 = vadd.f32 %v665_v44, %v4276_v48  ;;  %v690_v48 = vpack.c.bf16 %v681_v28, %v680_v35  ;;  %v649_v44 = vadd.f32 %v4449_v36, %v4216_v26  ;;  %v644_v28 = vadd.f32 %v4419_v0, %v4214_v25  ;;  %v3632_v35 = vld [vmem:[%s6351_s5 + $0xd0] sm:$0xff] }
 0x1bc   : > { %v636_v25 = vadd.f32 %v4370_v29, %v4195_v18  ;;  %v673_v0 = vmax.f32 %v641_v30, 0.0 }
 0x1bd   : > { %v683_v43 = vmax.f32 %v666_v47, 0.0  ;;  %v676_v26 = vmax.f32 %v649_v44, 0.0  ;;  %v674_v16 = vmax.f32 %v644_v28, 0.0 }
 0x1be   : > { %v671_v18 = vmax.f32 %v636_v25, 0.0  ;;  %v686_v29 = vpack.c.bf16 %v673_v0, %v672_v51  ;;  %v3625_v25 = vld [vmem:[%s6351_s5 + $0x98] sm:$0xff]  ;;  %v3634_v0 = vld [vmem:[%s6351_s5 + $0xe0] sm:$0xff] }
 0x1bf   : > { %v691_v8 = vpack.c.bf16 %v683_v43, %v682_v34  ;;  %v677_v34 = vmax.f32 %v651_v45, 0.0  ;;  %v689_v43 = vpack.c.bf16 %v679_v41, %v678_v4  ;;  %v687_v58 = vpack.c.bf16 %v675_v52, %v674_v16  ;;  %v3651_v45 = vld [vmem:[%s6351_s5 + $0x168] sm:$0xff]  ;;  %v3608_v16 = vld [vmem:[%s6351_s5 + $0x10] sm:$0xff] }
 0x1c0   : > { %v4557_v22 = vpop.permute.xlu1 %1210  ;;  %v685_v21 = vpack.c.bf16 %v671_v18, %v670_v5  ;;  %v3607_v4 = vld [vmem:[%s6351_s5 + $0x8] sm:$0xff] }
 0x1c1   : > { %1972 = vmatpush.bf16.msrb.mxu0 %v691_v8  ;;  %3671 = vmatpush.bf16.msra.mxu1 %v691_v8  ;;  %v688_v36 = vpack.c.bf16 %v677_v34, %v676_v26  ;;  %v4561_v47 = vpop.permute.xlu0 %1205  ;;  %v3633_v34 = vld [vmem:[%s6351_s5 + $0xd8] sm:$0xff]  ;;  %v3635_v5 = vld [vmem:[%s6351_s5 + $0xe8] sm:$0xff] }
 0x1c2   : > { %3672 = vmatpush.bf16.msra.mxu2 %v691_v8  ;;  %3673 = vmatpush.bf16.msra.mxu3 %v691_v8  ;;  %v4537_v8 = vpop.permute.xlu2 %1185  ;;  %6388 = vst [vmem:[#allocation25_spill] sm:$0xff] %v4561_v47 }
 0x1c5   : > { %1973 = vmatpush.bf16.msrb.mxu0 %v690_v48  ;;  %3674 = vmatpush.bf16.msra.mxu1 %v690_v48 }
 0x1c6   : > { %3675 = vmatpush.bf16.msra.mxu2 %v690_v48  ;;  %3676 = vmatpush.bf16.msra.mxu3 %v690_v48 }
 0x1c8   : > { %v4571_v42 = vpop.permute.xlu1 %1225 }
 0x1c9   : > { %1974 = vmatpush.bf16.msrb.mxu0 %v689_v43  ;;  %3677 = vmatpush.bf16.msra.mxu1 %v689_v43  ;;  %v4579_v41 = vpop.permute.xlu0 %1220 }
 0x1ca   : > { %3678 = vmatpush.bf16.msra.mxu2 %v689_v43  ;;  %3679 = vmatpush.bf16.msra.mxu3 %v689_v43  ;;  %v4553_v24 = vpop.permute.xlu2 %1200  ;;  %v3652_v43 = vld [vmem:[%s6351_s5 + $0x170] sm:$0xff] }
 0x1cd   : > { %1975 = vmatpush.bf16.msrb.mxu0 %v688_v36  ;;  %3680 = vmatpush.bf16.msra.mxu1 %v688_v36 }
 0x1ce   : > { %3681 = vmatpush.bf16.msra.mxu2 %v688_v36  ;;  %3682 = vmatpush.bf16.msra.mxu3 %v688_v36 }
 0x1d0   : > { %v4583_v44 = vpop.permute.xlu1 %1240 }
 0x1d1   : > { %1976 = vmatpush.bf16.msrb.mxu0 %v687_v58  ;;  %3683 = vmatpush.bf16.msra.mxu1 %v687_v58  ;;  %v4597_v28 = vpop.permute.xlu0 %1235 }
 0x1d2   : > { %3684 = vmatpush.bf16.msra.mxu2 %v687_v58  ;;  %3685 = vmatpush.bf16.msra.mxu3 %v687_v58  ;;  %v4569_v2 = vpop.permute.xlu2 %1215  ;;  %v3653_v58 = vld [vmem:[%s6351_s5 + $0x178] sm:$0xff] }
 0x1d5   : > { %1977 = vmatpush.bf16.msrb.mxu0 %v686_v29  ;;  %3686 = vmatpush.bf16.msra.mxu1 %v686_v29 }
 0x1d6   : > { %3687 = vmatpush.bf16.msra.mxu2 %v686_v29  ;;  %3688 = vmatpush.bf16.msra.mxu3 %v686_v29  ;;  %v3609_v29 = vld [vmem:[%s6351_s5 + $0x18] sm:$0xff] }
 0x1d8   : > { %v4601_v30 = vpop.permute.xlu1 %1255 }
 0x1d9   : > { %1978 = vmatpush.bf16.msrb.mxu0 %v685_v21  ;;  %3689 = vmatpush.bf16.msra.mxu1 %v685_v21  ;;  %v4603_v52 = vpop.permute.xlu0 %1250 }
 0x1da   : > { %3690 = vmatpush.bf16.msra.mxu2 %v685_v21  ;;  %3691 = vmatpush.bf16.msra.mxu3 %v685_v21  ;;  %v4581_v48 = vpop.permute.xlu2 %1230 }
 0x1dd   : > { %1979 = vmatpush.bf16.msrb.mxu0 %v684_v15  ;;  %3692 = vmatpush.bf16.msra.mxu1 %v684_v15 }
 0x1de   : > { %3693 = vmatpush.bf16.msra.mxu2 %v684_v15  ;;  %3694 = vmatpush.bf16.msra.mxu3 %v684_v15 }
 0x1e0   : > { %1980 = vmatmul.bf16.vlgmr.msrb.gmra.mxu0 %v3606_v9  ;;  %2065 = vmatmul.bf16.vlgmr.msra.gmra.mxu1 %v3623_v12  ;;  %v4607_v31 = vpop.permute.xlu1 %1270 }
 0x1e1   : > { %2110 = vmatmul.bf16.vlgmr.msra.gmra.mxu2 %v3632_v35  ;;  %2205 = vmatmul.bf16.vlgmr.msra.gmra.mxu3 %v3651_v45  ;;  %v4621_v19 = vpop.permute.xlu0 %1265  ;;  %v3610_v35 = vld [vmem:[%s6351_s5 + $0x20] sm:$0xff]  ;;  %v3627_v45 = vld [vmem:[%s6351_s5 + $0xa8] sm:$0xff] }
 0x1e2   : > { %v4599_v26 = vpop.permute.xlu2 %1245 }
 0x1e8   : > { %v4625_v40 = vpop.permute.xlu1 %1285 }
 0x1e9   : > { %6389 = vst [vmem:[#allocation26_spill] sm:$0xff] %v4625_v40  ;;  %v4627_v18 = vpop.permute.xlu0 %1280 }
 0x1ea   : > { %v4605_v36 = vpop.permute.xlu2 %1260 }
 0x1f0   : > { %1985 = vmatmul.bf16.gmra.mxu0 %v3607_v4  ;;  %2070 = vmatmul.bf16.gmra.mxu1 %v3624_v37  ;;  %v4643_v1 = vpop.permute.xlu1 %1300  ;;  %v3636_v4 = vld [vmem:[%s6351_s5 + $0xf0] sm:$0xff]  ;;  %v3655_v37 = vld [vmem:[%s6351_s5 + $0x188] sm:$0xff] }
 0x1f1   : > { %2115 = vmatmul.bf16.gmra.mxu2 %v3633_v34  ;;  %2210 = vmatmul.bf16.gmra.mxu3 %v3652_v43  ;;  %6391 = vst [vmem:[#allocation28_spill] sm:$0xff] %v4643_v1  ;;  %v4645_v15 = vpop.permute.xlu0 %1295 }
 0x1f2   : > { %v4623_v51 = vpop.permute.xlu2 %1275  ;;  %6392 = vst [vmem:[#allocation29_spill] sm:$0xff] %v4645_v15 }
 0x1f8   : > { %v4649_v12 = vpop.permute.xlu1 %1315 }
 0x1f9   : > { %6394 = vst [vmem:[#allocation31_spill] sm:$0xff] %v4649_v12  ;;  %v4663_v34 = vpop.permute.xlu0 %1310 }
 0x1fa   : > { %v4641_v21 = vpop.permute.xlu2 %1290  ;;  %6395 = vst [vmem:[#allocation32_spill] sm:$0xff] %v4663_v34 }
 0x1fb   : > { %6390 = vst [vmem:[#allocation27_spill] sm:$0xff] %v4641_v21 }
 0x200   : > { %1990 = vmatmul.bf16.gmra.mxu0 %v3608_v16  ;;  %2075 = vmatmul.bf16.gmra.mxu1 %v3625_v25  ;;  %v4667_v16 = vpop.permute.xlu1 %1330 }
 0x201   : > { %2120 = vmatmul.bf16.gmra.mxu2 %v3634_v0  ;;  %2215 = vmatmul.bf16.gmra.mxu3 %v3653_v58  ;;  %6397 = vst [vmem:[#allocation34_spill] sm:$0xff] %v4667_v16  ;;  %v4669_v25 = vpop.permute.xlu0 %1325  ;;  %v3611_v0 = vld [vmem:[%s6351_s5 + $0x28] sm:$0xff]  ;;  %v3628_v58 = vld [vmem:[%s6351_s5 + $0xb0] sm:$0xff] }
 0x202   : > { %v4647_v9 = vpop.permute.xlu2 %1305  ;;  %6398 = vst [vmem:[#allocation35_spill] sm:$0xff] %v4669_v25 }
 0x203   : > { %6393 = vst [vmem:[#allocation30_spill] sm:$0xff] %v4647_v9 }
 0x20a   : > { %v4665_v43 = vpop.permute.xlu2 %1320 }
 0x20b   : > { %6396 = vst [vmem:[#allocation33_spill] sm:$0xff] %v4665_v43 }
 0x210   : > { %1995 = vmatmul.bf16.gmra.mxu0 %v3609_v29  ;;  %2080 = vmatmul.bf16.gmra.mxu1 %v3626_v50  ;;  %v4679_v50 = vpop.permute.xlu1 %1345 }
 0x211   : > { %2125 = vmatmul.bf16.gmra.mxu2 %v3635_v5  ;;  %2220 = vmatmul.bf16.gmra.mxu3 %v3654_v13  ;;  %6400 = vst [vmem:[#allocation37_spill] sm:$0xff] %v4679_v50  ;;  %v3637_v5 = vld [vmem:[%s6351_s5 + $0xf8] sm:$0xff]  ;;  %v3656_v13 = vld [vmem:[%s6351_s5 + $0x190] sm:$0xff] }
 0x212   : > { %v4677_v29 = vpop.permute.xlu2 %1335  ;;  %v3629_v50 = vld [vmem:[%s6351_s5 + $0xb8] sm:$0xff] }
 0x213   : > { %6399 = vst [vmem:[#allocation36_spill] sm:$0xff] %v4677_v29  ;;  %v3613_v29 = vld [vmem:[%s6351_s5 + $0x38] sm:$0xff] }
 0x220   : > { %2000 = vmatmul.bf16.gmra.mxu0 %v3610_v35  ;;  %2085 = vmatmul.bf16.gmra.mxu1 %v3627_v45  ;;  %v4687_v35 = vpop.permute.xlu0 %1340  ;;  %v4689_v45 = vpop.permute.xlu2 %1350 }
 0x221   : > { %2130 = vmatmul.bf16.gmra.mxu2 %v3636_v4  ;;  %2225 = vmatmul.bf16.gmra.mxu3 %v3655_v37  ;;  %6401 = vst [vmem:[#allocation38_spill] sm:$0xff] %v4687_v35  ;;  %v4691_v4 = vpop.permute.xlu1 %1360  ;;  %v3612_v37 = vld [vmem:[%s6351_s5 + $0x30] sm:$0xff] }
 0x222   : > { %6402 = vst [vmem:[#allocation39_spill] sm:$0xff] %v4689_v45 }
 0x223   : > { %6403 = vst [vmem:[#allocation40_spill] sm:$0xff] %v4691_v4 }
 0x229   : > { %v4709_v4 = vpop.permute.xlu1 %1375 }
 0x22a   : > { %6406 = vst [vmem:[#allocation43_spill] sm:$0xff] %v4709_v4 }
 0x230   : > { %2005 = vmatmul.bf16.gmra.mxu0 %v3611_v0  ;;  %2090 = vmatmul.bf16.gmra.mxu1 %v3628_v58  ;;  %v3638_v0 = vld [vmem:[%s6351_s5 + $0x100] sm:$0xff]  ;;  %v3657_v58 = vld [vmem:[%s6351_s5 + $0x198] sm:$0xff] }
 0x231   : > { %2135 = vmatmul.bf16.gmra.mxu2 %v3637_v5  ;;  %2230 = vmatmul.bf16.gmra.mxu3 %v3656_v13  ;;  %v4705_v5 = vpop.permute.xlu0 %1355  ;;  %v4707_v13 = vpop.permute.xlu2 %1365 }
 0x232   : > { %6404 = vst [vmem:[#allocation41_spill] sm:$0xff] %v4705_v5  ;;  %v4715_v16 = vpop.permute.xlu1 %1390 }
 0x233   : > { %6405 = vst [vmem:[#allocation42_spill] sm:$0xff] %v4707_v13  ;;  %v3631_v13 = vld [vmem:[%s6351_s5 + $0xc8] sm:$0xff] }
 0x234   : > { %6409 = vst [vmem:[#allocation46_spill] sm:$0xff] %v4715_v16 }
 0x239   : > { %v4711_v45 = vpop.permute.xlu0 %1370  ;;  %v4713_v35 = vpop.permute.xlu2 %1380 }
 0x23a   : > { %6407 = vst [vmem:[#allocation44_spill] sm:$0xff] %v4711_v45  ;;  %v1406_v4 = vpop.permute.xlu1 %1405  ;;  %v3614_v45 = vld [vmem:[%s6351_s5 + $0x40] sm:$0xff] }
 0x23b   : > { %6408 = vst [vmem:[#allocation45_spill] sm:$0xff] %v4713_v35 }
 0x240   : > { %2010 = vmatmul.bf16.gmra.mxu0 %v3612_v37  ;;  %2095 = vmatmul.bf16.gmra.mxu1 %v3629_v50  ;;  %v3630_v50 = vld [vmem:[%s6351_s5 + $0xc0] sm:$0xff]  ;;  %v3639_v37 = vld [vmem:[%s6351_s5 + $0x108] sm:$0xff] }
 0x241   : > { %2140 = vmatmul.bf16.gmra.mxu2 %v3638_v0  ;;  %2235 = vmatmul.bf16.gmra.mxu3 %v3657_v58  ;;  %v3658_v0 = vld [vmem:[%s6351_s5 + $0x1a0] sm:$0xff]  ;;  %v4729_v58 = vpop.permute.xlu0 %1385  ;;  %v4731_v16 = vpop.permute.xlu2 %1395 }
 0x242   : > { %6410 = vst [vmem:[#allocation47_spill] sm:$0xff] %v4729_v58 }
 0x243   : > { %6411 = vst [vmem:[#allocation48_spill] sm:$0xff] %v4731_v16  ;;  %v4746_v16 = vpop.permute.xlu1 %1420 }
 0x249   : > { %v1401_v35 = vpop.permute.xlu0 %1400 }
 0x250   : > { %2015 = vmatmul.bf16.gmra.mxu0 %v3613_v29  ;;  %2100 = vmatmul.bf16.gmra.mxu1 %v3630_v50  ;;  %v3640_v29 = vld [vmem:[%s6351_s5 + $0x110] sm:$0xff]  ;;  %v3659_v50 = vld [vmem:[%s6351_s5 + $0x1a8] sm:$0xff] }
 0x251   : > { %2145 = vmatmul.bf16.gmra.mxu2 %v3639_v37  ;;  %2240 = vmatmul.bf16.gmra.mxu3 %v3658_v0  ;;  %v1411_v0 = vpop.permute.xlu2 %1410  ;;  %v4750_v47 = vpop.permute.xlu0 %1415 }
 0x25d   : > { %v1981_v5 = vpop.f32.mrf.mxu0  ;;  %v2066_v25 = vpop.f32.mrf.mxu1 }
 0x25e   : > { %v1982_v37 = vadd.f32 %v1981_v5, %v4289_v53  ;;  %v2067_v12 = vadd.f32 %v2066_v25, %v4492_v6 }
 0x260   : > { %v2301_v58 = vmax.f32 %v1982_v37, 0.0  ;;  %2020 = vmatmul.bf16.gmra.mxu0 %v3614_v45  ;;  %2105 = vmatmul.bf16.gmra.mxu1 %v3631_v13  ;;  %v2335_v5 = vmax.f32 %v2067_v12, 0.0  ;;  %v4752_v37 = vpop.permute.xlu2 %1425  ;;  %v4754_v45 = vpop.permute.xlu1 %1435 }
 0x261   : > { %2150 = vmatmul.bf16.gmra.mxu2 %v3640_v29  ;;  %2245 = vmatmul.bf16.gmra.mxu3 %v3659_v50  ;;  %v4768_v13 = vpop.permute.xlu0 %1430 }
 0x262   : > { %2429 = vmax.xlane.f32.xlu2 %v2301_v58 }
 0x264   : > { %v2111_v43 = vpop.f32.mrf.mxu2  ;;  %v2206_v34 = vpop.f32.mrf.mxu3 }
 0x265   : > { %v2207_v1 = vadd.f32 %v2206_v34, %v1401_v35  ;;  %v1983_v9 = vpop.f32.mrf.mxu0  ;;  %v2068_v15 = vpop.f32.mrf.mxu1 }
 0x266   : > { %v1984_v40 = vadd.f32 %v1983_v9, %v4278_v49  ;;  %v2069_v6 = vadd.f32 %v2068_v15, %v4502_v57  ;;  %v3615_v49 = vld [vmem:[%s6351_s5 + $0x48] sm:$0xff]  ;;  %v2112_v9 = vadd.f32 %v2111_v43, %v4557_v22 }
 0x267   : > { %v2391_v53 = vmax.f32 %v2207_v1, 0.0 }
 0x268   : > { %v2302_v21 = vmax.f32 %v1984_v40, 0.0  ;;  %v3641_v40 = vld [vmem:[%s6351_s5 + $0x118] sm:$0xff]  ;;  %v2336_v15 = vmax.f32 %v2069_v6, 0.0  ;;  %v2353_v58 = vmax.f32 %v2112_v9, 0.0  ;;  %v4770_v22 = vpop.permute.xlu2 %1440  ;;  %v4772_v43 = vpop.permute.xlu1 %1450 }
 0x269   : > { %2609 = vmax.xlane.f32.xlu1 %v2391_v53 }
 0x26a   : > { %2431 = vmax.xlane.f32.xlu0 %v2302_v21  ;;  %2497 = vmax.xlane.f32.xlu2 %v2335_v5  ;;  %v3660_v21 = vld [vmem:[%s6351_s5 + $0x1b0] sm:$0xff] }
 0x26c   : > { %v2113_v25 = vpop.f32.mrf.mxu2  ;;  %v2208_v34 = vpop.f32.mrf.mxu3 }
 0x26d   : > { %v1986_v1 = vpop.f32.mrf.mxu0  ;;  %v2071_v12 = vpop.f32.mrf.mxu1  ;;  %v2114_v29 = vadd.f32 %v2113_v25, %v4569_v2  ;;  %v2209_v5 = vadd.f32 %v2208_v34, %v1406_v4 }
 0x26e   : > { %v1987_v57 = vadd.f32 %v1986_v1, %v4294_v55  ;;  %v2072_v50 = vadd.f32 %v2071_v12, %v4506_v54  ;;  %v3616_v54 = vld [vmem:[%s6351_s5 + $0x50] sm:$0xff]  ;;  %v3642_v12 = vld [vmem:[%s6351_s5 + $0x120] sm:$0xff] }
 0x26f   : > { %v2354_v1 = vmax.f32 %v2114_v29, 0.0 }
 0x270   : > { %v2303_v35 = vmax.f32 %v1987_v57, 0.0  ;;  %2025 = vmatmul.bf16.gmra.mxu0 %v3615_v49  ;;  %v2337_v9 = vmax.f32 %v2072_v50, 0.0  ;;  %v4782_v4 = vpop.permute.xlu2 %1455 }
 0x271   : > { %2155 = vmatmul.bf16.gmra.mxu2 %v3641_v40  ;;  %2250 = vmatmul.bf16.gmra.mxu3 %v3660_v21  ;;  %v2392_v40 = vmax.f32 %v2209_v5, 0.0  ;;  %v4776_v21 = vpop.permute.xlu0 %1445 }
 0x272   : > { %2433 = vmax.xlane.f32.xlu1 %v2303_v35  ;;  %2499 = vmax.xlane.f32.xlu0 %v2336_v15 }
 0x273   : > { %2533 = vmax.xlane.f32.xlu2 %v2353_v58 }
 0x274   : > { %v2116_v55 = vpop.f32.mrf.mxu2  ;;  %v2211_v53 = vpop.f32.mrf.mxu3 }
 0x275   : > { %v1988_v6 = vpop.f32.mrf.mxu0  ;;  %v2073_v49 = vpop.f32.mrf.mxu1  ;;  %v2117_v57 = vadd.f32 %v2116_v55, %v4579_v41  ;;  %v2212_v15 = vadd.f32 %v2211_v53, %v1411_v0  ;;  %v3661_v41 = vld [vmem:[%s6351_s5 + $0x1b8] sm:$0xff] }
 0x276   : > { %v1989_v25 = vadd.f32 %v1988_v6, %v4308_v60  ;;  %v4791_v0 = vpop.permute.xlu1 %1465 }
 0x277   : > { %v2355_v29 = vmax.f32 %v2117_v57, 0.0  ;;  %v2393_v50 = vmax.f32 %v2212_v15, 0.0 }
 0x278   : > { %v2304_v55 = vmax.f32 %v1989_v25, 0.0  ;;  %v4798_v57 = vpop.permute.xlu2 %1470 }
 0x27a   : > { %2501 = vmax.xlane.f32.xlu1 %v2337_v9  ;;  %2535 = vmax.xlane.f32.xlu0 %v2354_v1  ;;  %v4795_v1 = vpop.permute.xlu0 %1460  ;;  %v2074_v9 = vadd.f32 %v2073_v49, %v4504_v14  ;;  %v3617_v14 = vld [vmem:[%s6351_s5 + $0x58] sm:$0xff] }
 0x27b   : > { %2611 = vmax.xlane.f32.xlu2 %v2392_v40 }
 0x27c   : > { %v2118_v35 = vpop.f32.mrf.mxu2  ;;  %v2213_v2 = vpop.f32.mrf.mxu3 }
 0x27d   : > { %v1991_v34 = vpop.f32.mrf.mxu0  ;;  %v2076_v58 = vpop.f32.mrf.mxu1  ;;  %v2214_v60 = vadd.f32 %v2213_v2, %v4750_v47  ;;  %v2119_v49 = vadd.f32 %v2118_v35, %v4571_v42 }
 0x27e   : > { %v2077_v53 = vadd.f32 %v2076_v58, %v4508_v46  ;;  %v4800_v25 = vpop.permute.xlu1 %1480 }
 0x27f   : > { %v2394_v15 = vmax.f32 %v2214_v60, 0.0 }
 0x280   : > { %2030 = vmatmul.bf16.gmra.mxu0 %v3616_v54  ;;  %v2339_v54 = vmax.f32 %v2077_v53, 0.0  ;;  %v4816_v53 = vpop.permute.xlu2 %1485 }
 0x281   : > { %2160 = vmatmul.bf16.gmra.mxu2 %v3642_v12  ;;  %2255 = vmatmul.bf16.gmra.mxu3 %v3661_v41  ;;  %v2338_v12 = vmax.f32 %v2074_v9, 0.0 }
 0x282   : > { %2537 = vmax.xlane.f32.xlu1 %v2355_v29  ;;  %2613 = vmax.xlane.f32.xlu0 %v2393_v50  ;;  %v3643_v50 = vld [vmem:[%s6351_s5 + $0x128] sm:$0xff] }
 0x283   : > { %2435 = vmax.xlane.f32.xlu2 %v2304_v55  ;;  %v3662_v55 = vld [vmem:[%s6351_s5 + $0x1c0] sm:$0xff] }
 0x284   : > { %v2121_v5 = vpop.f32.mrf.mxu2  ;;  %v2216_v6 = vpop.f32.mrf.mxu3 }
 0x285   : > { %v1993_v40 = vpop.f32.mrf.mxu0  ;;  %v2078_v41 = vpop.f32.mrf.mxu1  ;;  %v2122_v46 = vadd.f32 %v2121_v5, %v4581_v48  ;;  %v2356_v5 = vmax.f32 %v2119_v49, 0.0 }
 0x286   : > { %v2079_v47 = vadd.f32 %v2078_v41, %v4512_v38  ;;  %v4814_v48 = vpop.permute.xlu0 %1475  ;;  %v4818_v42 = vpop.permute.xlu1 %1495  ;;  %v1994_v35 = vadd.f32 %v1993_v40, %v4310_v61 }
 0x287   : > { %v2357_v38 = vmax.f32 %v2122_v46, 0.0 }
 0x288   : > { %v2340_v60 = vmax.f32 %v2079_v47, 0.0  ;;  %v2306_v47 = vmax.f32 %v1994_v35, 0.0 }
 0x28a   : > { %2615 = vmax.xlane.f32.xlu1 %v2394_v15  ;;  %2505 = vmax.xlane.f32.xlu0 %v2339_v54 }
 0x28b   : > { %2503 = vmax.xlane.f32.xlu2 %v2338_v12  ;;  %v1992_v12 = vadd.f32 %v1991_v34, %v4296_v56  ;;  %v3618_v56 = vld [vmem:[%s6351_s5 + $0x60] sm:$0xff]  ;;  %v2217_v34 = vadd.f32 %v2216_v6, %v4746_v16 }
 0x28c   : > { %v2123_v2 = vpop.f32.mrf.mxu2  ;;  %v2218_v58 = vpop.f32.mrf.mxu3 }
 0x28d   : > { %v1996_v29 = vpop.f32.mrf.mxu0  ;;  %v2124_v9 = vadd.f32 %v2123_v2, %v4597_v28  ;;  %v2081_v41 = vpop.f32.mrf.mxu1  ;;  %v2219_v61 = vadd.f32 %v2218_v58, %v4752_v37  ;;  %v3663_v37 = vld [vmem:[%s6351_s5 + $0x1c8] sm:$0xff]  ;;  %v2395_v35 = vmax.f32 %v2217_v34, 0.0 }
 0x28e   : > { %v4825_v49 = vpop.permute.xlu0 %1490  ;;  %v1997_v28 = vadd.f32 %v1996_v29, %v4325_v3  ;;  %v4843_v58 = vpop.permute.xlu1 %1510 }
 0x28f   : > { %v2396_v29 = vmax.f32 %v2219_v61, 0.0 }
 0x290   : > { %2035 = vmatmul.bf16.gmra.mxu0 %v3617_v14  ;;  %v2358_v14 = vmax.f32 %v2124_v9, 0.0 }
 0x291   : > { %2165 = vmatmul.bf16.gmra.mxu2 %v3643_v50  ;;  %2260 = vmatmul.bf16.gmra.mxu3 %v3662_v55  ;;  %v2305_v50 = vmax.f32 %v1992_v12, 0.0  ;;  %v4827_v55 = vpop.permute.xlu2 %1500 }
 0x292   : > { %2507 = vmax.xlane.f32.xlu1 %v2340_v60  ;;  %2541 = vmax.xlane.f32.xlu0 %v2357_v38  ;;  %v3644_v60 = vld [vmem:[%s6351_s5 + $0x130] sm:$0xff] }
 0x293   : > { %2539 = vmax.xlane.f32.xlu2 %v2356_v5  ;;  %v2307_v5 = vmax.f32 %v1997_v28, 0.0 }
 0x294   : > { %v2126_v15 = vpop.f32.mrf.mxu2  ;;  %v2221_v54 = vpop.f32.mrf.mxu3 }
 0x295   : > { %v4823_v46 = vpop.f32.mrf.mxu0  ;;  %v2083_v3 = vpop.f32.mrf.mxu1  ;;  %v2222_v6 = vadd.f32 %v2221_v54, %v4768_v13 }
 0x296   : > { %v4845_v16 = vpop.permute.xlu0 %1505  ;;  %v2084_v9 = vadd.f32 %v2083_v3, %v4514_v63  ;;  %v4852_v34 = vpop.permute.xlu1 %1525 }
 0x297   : > { %v2397_v28 = vmax.f32 %v2222_v6, 0.0 }
 0x29a   : > { %2543 = vmax.xlane.f32.xlu1 %v2358_v14  ;;  %2439 = vmax.xlane.f32.xlu0 %v2306_v47  ;;  %v4849_v14 = vpop.permute.xlu2 %1515 }
 0x29b   : > { %2437 = vmax.xlane.f32.xlu2 %v2305_v50  ;;  %v2082_v50 = vadd.f32 %v2081_v41, %v4510_v23  ;;  %v3619_v23 = vld [vmem:[%s6351_s5 + $0x68] sm:$0xff] }
 0x29c   : > { %v2128_v40 = vpop.f32.mrf.mxu2  ;;  %v4831_v2 = vpop.f32.mrf.mxu3 }
 0x29d   : > { %v2001_v38 = vpop.f32.mrf.mxu0  ;;  %v2129_v13 = vadd.f32 %v2128_v40, %v4599_v26 }
 0x29e   : > { %v4861_v41 = vpop.permute.xlu0 %1520 }
 0x29f   : > { %v2360_v40 = vmax.f32 %v2129_v13, 0.0 }
 0x2a0   : > { %2040 = vmatmul.bf16.gmra.mxu0 %v3618_v56  ;;  %v2342_v56 = vmax.f32 %v2084_v9, 0.0 }
 0x2a1   : > { %2170 = vmatmul.bf16.gmra.mxu2 %v3644_v60  ;;  %2265 = vmatmul.bf16.gmra.mxu3 %v3663_v37  ;;  %v2341_v60 = vmax.f32 %v2082_v50, 0.0  ;;  %v2086_v37 = vpop.f32.mrf.mxu1 }
 0x2a2   : > { %2441 = vmax.xlane.f32.xlu1 %v2307_v5  ;;  %2619 = vmax.xlane.f32.xlu0 %v2396_v29  ;;  %v2087_v63 = vadd.f32 %v2086_v37, %v4521_v59  ;;  %v2127_v29 = vadd.f32 %v2126_v15, %v4583_v44  ;;  %v3664_v59 = vld [vmem:[%s6351_s5 + $0x1d0] sm:$0xff]  ;;  %v4872_v26 = vpop.permute.xlu2 %1530  ;;  %v4874_v44 = vpop.permute.xlu1 %1540  ;;  %v2002_v15 = vadd.f32 %v2001_v38, %v4336_v7 }
 0x2a3   : > { %2617 = vmax.xlane.f32.xlu2 %v2395_v35  ;;  %v3645_v35 = vld [vmem:[%s6351_s5 + $0x138] sm:$0xff] }
 0x2a4   : > { %v2131_v12 = vpop.f32.mrf.mxu2  ;;  %v2226_v47 = vpop.f32.mrf.mxu3  ;;  %v2343_v6 = vmax.f32 %v2087_v63, 0.0  ;;  %v2359_v9 = vmax.f32 %v2127_v29, 0.0 }
 0x2a5   : > { %v2003_v61 = vpop.f32.mrf.mxu0  ;;  %v2132_v50 = vadd.f32 %v2131_v12, %v4603_v52  ;;  %v2227_v7 = vadd.f32 %v2226_v47, %v4770_v22 }
 0x2a6   : > { %v4884_v63 = vpop.permute.xlu0 %1535  ;;  %v2004_v52 = vadd.f32 %v2003_v61, %v4345_v11  ;;  %v3665_v11 = vld [vmem:[%s6351_s5 + $0x1d8] sm:$0xff] }
 0x2a7   : > { %v2361_v29 = vmax.f32 %v2132_v50, 0.0  ;;  %v2399_v61 = vmax.f32 %v2227_v7, 0.0 }
 0x2a9   : > { %v2088_v37 = vpop.f32.mrf.mxu1 }
 0x2aa   : > { %2621 = vmax.xlane.f32.xlu1 %v2397_v28  ;;  %2511 = vmax.xlane.f32.xlu0 %v2342_v56  ;;  %v4905_v22 = vpop.permute.xlu1 %1555 }
 0x2ab   : > { %2509 = vmax.xlane.f32.xlu2 %v2341_v60  ;;  %v1999_v60 = vadd.f32 %v4823_v46, %v4312_v62  ;;  %v3620_v62 = vld [vmem:[%s6351_s5 + $0x70] sm:$0xff]  ;;  %v2224_v46 = vadd.f32 %v4831_v2, %v4754_v45 }
 0x2ac   : > { %v4856_v54 = vpop.f32.mrf.mxu2  ;;  %v2228_v3 = vpop.f32.mrf.mxu3 }
 0x2ad   : > { %v4864_v5 = vpop.f32.mrf.mxu0  ;;  %v2398_v50 = vmax.f32 %v2224_v46, 0.0  ;;  %v2229_v2 = vadd.f32 %v2228_v3, %v4776_v21 }
 0x2b0   : > { %2045 = vmatmul.bf16.gmra.mxu0 %v3619_v23  ;;  %v2309_v23 = vmax.f32 %v2002_v15, 0.0  ;;  %v4907_v15 = vpop.permute.xlu0 %1550 }
 0x2b1   : > { %2175 = vmatmul.bf16.gmra.mxu2 %v3645_v35  ;;  %2270 = vmatmul.bf16.gmra.mxu3 %v3664_v59  ;;  %v4886_v35 = vpop.permute.xlu2 %1545  ;;  %v2308_v59 = vmax.f32 %v1999_v60, 0.0  ;;  %v2091_v47 = vpop.f32.mrf.mxu1 }
 0x2b2   : > { %2513 = vmax.xlane.f32.xlu1 %v2343_v6  ;;  %2547 = vmax.xlane.f32.xlu0 %v2360_v40  ;;  %v3646_v6 = vld [vmem:[%s6351_s5 + $0x140] sm:$0xff]  ;;  %v2092_v60 = vadd.f32 %v2091_v47, %v4524_v39  ;;  %v4920_v46 = vpop.permute.xlu1 %1570  ;;  %v2134_v47 = vadd.f32 %v4856_v54, %v4601_v30 }
 0x2b3   : > { %2545 = vmax.xlane.f32.xlu2 %v2359_v9  ;;  %v2310_v9 = vmax.f32 %v2004_v52, 0.0  ;;  %v2400_v52 = vmax.f32 %v2229_v2, 0.0 }
 0x2b4   : > { %v2136_v28 = vpop.f32.mrf.mxu2  ;;  %v4878_v56 = vpop.f32.mrf.mxu3  ;;  %v2362_v2 = vmax.f32 %v2134_v47, 0.0 }
 0x2b5   : > { %v4882_v13 = vpop.f32.mrf.mxu0  ;;  %v2137_v39 = vadd.f32 %v2136_v28, %v4605_v36  ;;  %v3666_v36 = vld [vmem:[%s6351_s5 + $0x1e0] sm:$0xff] }
 0x2b6   : > { %v2009_v54 = vadd.f32 %v4882_v13, %v4353_v17  ;;  %v6413_v13 = vld [vmem:[#allocation4_spill] sm:$0xff] }
 0x2b7   : > { %v2363_v28 = vmax.f32 %v2137_v39, 0.0 }
 0x2b8   : > { %v2312_v47 = vmax.f32 %v2009_v54, 0.0 }
 0x2b9   : > { %v4909_v45 = vpop.permute.xlu2 %1560 }
 0x2ba   : > { %2549 = vmax.xlane.f32.xlu1 %v2361_v29  ;;  %2445 = vmax.xlane.f32.xlu0 %v2309_v23  ;;  %v4945_v30 = vpop.permute.xlu1 %1585 }
 0x2bb   : > { %2443 = vmax.xlane.f32.xlu2 %v2308_v59  ;;  %v2089_v59 = vadd.f32 %v2088_v37, %v4516_v10  ;;  %v3621_v37 = vld [vmem:[%s6351_s5 + $0x78] sm:$0xff] }
 0x2bc   : > { %v2138_v38 = vpop.f32.mrf.mxu2  ;;  %v4890_v12 = vpop.f32.mrf.mxu3 }
 0x2bd   : > { %v4897_v40 = vpop.f32.mrf.mxu0 }
 0x2c0   : > { %2050 = vmatmul.bf16.gmra.mxu0 %v3620_v62  ;;  %v2345_v62 = vmax.f32 %v2092_v60, 0.0 }
 0x2c1   : > { %2180 = vmatmul.bf16.gmra.mxu2 %v3646_v6  ;;  %2275 = vmatmul.bf16.gmra.mxu3 %v3665_v11  ;;  %v2344_v6 = vmax.f32 %v2089_v59, 0.0  ;;  %v2093_v11 = vpop.f32.mrf.mxu1  ;;  %v2139_v59 = vadd.f32 %v2138_v38, %v4621_v19  ;;  %v2234_v19 = vadd.f32 %v4890_v12, %v4782_v4  ;;  %v2012_v38 = vadd.f32 %v4897_v40, %v6413_v13  ;;  %v3648_v4 = vld [vmem:[%s6351_s5 + $0x150] sm:$0xff]  ;;  %v3667_v12 = vld [vmem:[%s6351_s5 + $0x1e8] sm:$0xff] }
 0x2c2   : > { %2447 = vmax.xlane.f32.xlu1 %v2310_v9  ;;  %2625 = vmax.xlane.f32.xlu0 %v2399_v61  ;;  %v4922_v61 = vpop.permute.xlu0 %1565  ;;  %v2094_v21 = vadd.f32 %v2093_v11, %v4533_v33  ;;  %v3647_v9 = vld [vmem:[%s6351_s5 + $0x148] sm:$0xff]  ;;  %v4941_v33 = vpop.permute.xlu2 %1575 }
 0x2c3   : > { %2623 = vmax.xlane.f32.xlu2 %v2398_v50 }
 0x2c4   : > { %v4913_v23 = vpop.f32.mrf.mxu2  ;;  %v4915_v29 = vpop.f32.mrf.mxu3  ;;  %v2346_v50 = vmax.f32 %v2094_v21, 0.0 }
 0x2c5   : > { %v4918_v7 = vpop.f32.mrf.mxu0 }
 0x2c9   : > { %v2096_v39 = vpop.f32.mrf.mxu1 }
 0x2ca   : > { %2627 = vmax.xlane.f32.xlu1 %v2400_v52  ;;  %2517 = vmax.xlane.f32.xlu0 %v2345_v62  ;;  %v4956_v21 = vpop.permute.xlu0 %1580  ;;  %v2097_v13 = vadd.f32 %v2096_v39, %v4526_v20  ;;  %v2142_v39 = vadd.f32 %v4913_v23, %v4607_v31 }
 0x2cb   : > { %2515 = vmax.xlane.f32.xlu2 %v2344_v6  ;;  %v6412_v6 = vld [vmem:[#allocation2_spill] sm:$0xff] }
 0x2cc   : > { %v4926_v3 = vpop.f32.mrf.mxu2  ;;  %v4928_v10 = vpop.f32.mrf.mxu3  ;;  %v2007_v11 = vadd.f32 %v4864_v5, %v6412_v6  ;;  %v2365_v31 = vmax.f32 %v2142_v39, 0.0 }
 0x2cd   : > { %v4943_v60 = vpop.f32.mrf.mxu0  ;;  %v2144_v20 = vadd.f32 %v4926_v3, %v4623_v51 }
 0x2cf   : > { %v2366_v3 = vmax.f32 %v2144_v20, 0.0 }
 0x2d0   : > { %2055 = vmatmul.bf16.gmra.mxu0 %v3621_v37 }
 0x2d1   : > { %2185 = vmatmul.bf16.gmra.mxu2 %v3647_v9  ;;  %2280 = vmatmul.bf16.gmra.mxu3 %v3666_v36  ;;  %v2364_v9 = vmax.f32 %v2139_v59, 0.0  ;;  %v2311_v36 = vmax.f32 %v2007_v11, 0.0  ;;  %v2098_v59 = vpop.f32.mrf.mxu1  ;;  %v2402_v11 = vmax.f32 %v2234_v19, 0.0 }
 0x2d2   : > { %2519 = vmax.xlane.f32.xlu1 %v2346_v50  ;;  %2553 = vmax.xlane.f32.xlu0 %v2363_v28  ;;  %v3622_v50 = vld [vmem:[%s6351_s5 + $0x80] sm:$0xff] }
 0x2d3   : > { %2551 = vmax.xlane.f32.xlu2 %v2362_v2  ;;  %v2232_v2 = vadd.f32 %v4878_v56, %v4772_v43  ;;  %v2237_v43 = vadd.f32 %v4915_v29, %v4795_v1  ;;  %v2099_v56 = vadd.f32 %v2098_v59, %v4537_v8 }
 0x2d4   : > { %v4950_v52 = vpop.f32.mrf.mxu2  ;;  %v4952_v62 = vpop.f32.mrf.mxu3 }
 0x2d5   : > { %v4958_v37 = vpop.xlane.xlu2 %2429  ;;  %v4960_v17 = vpop.f32.mrf.mxu0 }
 0x2d9   : > { %v2101_v1 = vpop.f32.mrf.mxu1 }
 0x2da   : > { %2555 = vmax.xlane.f32.xlu1 %v2364_v9  ;;  %2451 = vmax.xlane.f32.xlu0 %v2312_v47  ;;  %v2313_v47 = vmax.f32 %v2012_v38, 0.0  ;;  %v2401_v9 = vmax.f32 %v2232_v2, 0.0  ;;  %v2102_v8 = vadd.f32 %v2101_v1, %v4549_v27 }
 0x2db   : > { %2449 = vmax.xlane.f32.xlu2 %v2311_v36 }
 0x2dc   : > { %v4966_v5 = vpop.f32.mrf.mxu3  ;;  %v4968_v28 = vpop.xlane.xlu1 %2609 }
 0x2dd   : > { %6414 = vst [vmem:[#allocation2_spill] sm:$0xff] %v4968_v28  ;;  %v4975_v54 = vpop.f32.mrf.mxu2  ;;  %v4983_v40 = vpop.xlane.xlu0 %2431 }
 0x2de   : > { %v4985_v6 = vpop.xlane.xlu2 %2497  ;;  %v4995_v19 = vpop.f32.mrf.mxu0 }
 0x2e0   : > { %2060 = vmatmul.bf16.gmra.mxu0 %v3622_v50 }
 0x2e1   : > { %2190 = vmatmul.bf16.gmra.mxu2 %v3648_v4  ;;  %2285 = vmatmul.bf16.gmra.mxu3 %v3667_v12  ;;  %v2403_v4 = vmax.f32 %v2237_v43, 0.0  ;;  %v2348_v12 = vmax.f32 %v2099_v56, 0.0  ;;  %v2349_v56 = vmax.f32 %v2102_v8, 0.0  ;;  %v2103_v23 = vpop.f32.mrf.mxu1 }
 0x2e2   : > { %2453 = vmax.xlane.f32.xlu1 %v2313_v47  ;;  %2631 = vmax.xlane.f32.xlu0 %v2402_v11  ;;  %v2347_v11 = vmax.f32 %v2097_v13, 0.0  ;;  %v3649_v47 = vld [vmem:[%s6351_s5 + $0x158] sm:$0xff] }
 0x2e3   : > { %2629 = vmax.xlane.f32.xlu2 %v2401_v9  ;;  %v3668_v9 = vld [vmem:[%s6351_s5 + $0x1f0] sm:$0xff] }
 0x2e4   : > { %v4990_v36 = vpop.f32.mrf.mxu3 }
 0x2e5   : > { %v4993_v28 = vpop.f32.mrf.mxu2  ;;  %v4997_v38 = vpop.xlane.xlu1 %2433 }
 0x2e6   : > { %v4999_v50 = vpop.xlane.xlu0 %2499  ;;  %v5001_v2 = vpop.xlane.xlu2 %2533 }
 0x2e7   : > { %6415 = vst [vmem:[#allocation4_spill] sm:$0xff] %v5001_v2  ;;  %v5024_v13 = vpop.f32.mrf.mxu0 }
 0x2ea   : > { %2633 = vmax.xlane.f32.xlu1 %v2403_v4  ;;  %2523 = vmax.xlane.f32.xlu0 %v2348_v12  ;;  %v6419_v4 = vld [vmem:[#allocation5_spill] sm:$0xff] }
 0x2eb   : > { %2521 = vmax.xlane.f32.xlu2 %v2347_v11  ;;  %v2017_v12 = vadd.f32 %v4943_v60, %v6419_v4  ;;  %v2147_v11 = vadd.f32 %v4950_v52, %v4627_v18  ;;  %v2242_v18 = vadd.f32 %v4952_v62, %v4798_v57  ;;  %v2106_v4 = vpop.f32.mrf.mxu1 }
 0x2ec   : > { %v5006_v29 = vpop.f32.mrf.mxu3 }
 0x2ed   : > { %v5010_v59 = vpop.f32.mrf.mxu2  ;;  %v5018_v43 = vpop.xlane.xlu1 %2501 }
 0x2ee   : > { %6416 = vst [vmem:[#allocation49_spill] sm:$0xff] %v5018_v43  ;;  %v5020_v51 = vpop.xlane.xlu0 %2535  ;;  %v5022_v27 = vpop.xlane.xlu2 %2611 }
 0x2ef   : > { %6417 = vst [vmem:[#allocation50_spill] sm:$0xff] %v5020_v51  ;;  %v5042_v60 = vpop.f32.mrf.mxu0 }
 0x2f0   : > { %6418 = vst [vmem:[#allocation51_spill] sm:$0xff] %v5022_v27  ;;  %v6420_v27 = vld [vmem:[#allocation3_spill] sm:$0xff] }
 0x2f1   : > { %2195 = vmatmul.bf16.gmra.mxu2 %v3649_v47  ;;  %2290 = vmatmul.bf16.gmra.mxu3 %v3668_v9  ;;  %v2014_v20 = vadd.f32 %v4918_v7, %v6420_v27  ;;  %v6423_v7 = vld [vmem:[#allocation7_spill] sm:$0xff]  ;;  %v2239_v27 = vadd.f32 %v4928_v10, %v4791_v0  ;;  %v2405_v0 = vmax.f32 %v2242_v18, 0.0 }
 0x2f2   : > { %2525 = vmax.xlane.f32.xlu1 %v2349_v56  ;;  %2559 = vmax.xlane.f32.xlu0 %v2366_v3  ;;  %v2315_v3 = vmax.f32 %v2017_v12, 0.0  ;;  %v2367_v56 = vmax.f32 %v2147_v11, 0.0  ;;  %v2019_v52 = vadd.f32 %v4960_v17, %v6423_v7  ;;  %v3650_v12 = vld [vmem:[%s6351_s5 + $0x160] sm:$0xff]  ;;  %v3669_v11 = vld [vmem:[%s6351_s5 + $0x1f8] sm:$0xff] }
 0x2f3   : > { %2557 = vmax.xlane.f32.xlu2 %v2365_v31  ;;  %v2314_v31 = vmax.f32 %v2014_v20, 0.0 }
 0x2f4   : > { %v5030_v1 = vpop.f32.mrf.mxu3  ;;  %v2316_v10 = vmax.f32 %v2019_v52, 0.0 }
 0x2f5   : > { %v5034_v8 = vpop.f32.mrf.mxu2  ;;  %v5036_v39 = vpop.xlane.xlu1 %2537 }
 0x2f6   : > { %6421 = vst [vmem:[#allocation5_spill] sm:$0xff] %v5036_v39  ;;  %v5038_v47 = vpop.xlane.xlu0 %2613  ;;  %v5040_v9 = vpop.xlane.xlu2 %2435 }
 0x2f7   : > { %6422 = vst [vmem:[#allocation3_spill] sm:$0xff] %v5038_v47  ;;  %v5069_v7 = vpop.f32.mrf.mxu0 }
 0x2fa   : > { %2561 = vmax.xlane.f32.xlu1 %v2367_v56  ;;  %2457 = vmax.xlane.f32.xlu0 %v2315_v3  ;;  %v2404_v3 = vmax.f32 %v2239_v27, 0.0  ;;  %v2244_v56 = vadd.f32 %v4966_v5, %v4814_v48  ;;  %v2108_v48 = vpop.f32.mrf.mxu1  ;;  %v6429_v5 = vld [vmem:[#allocation25_spill] sm:$0xff] }
 0x2fb   : > { %2455 = vmax.xlane.f32.xlu2 %v2314_v31  ;;  %v2107_v31 = vadd.f32 %v2106_v4, %v4553_v24  ;;  %v6428_v24 = vld [vmem:[#allocation27_spill] sm:$0xff]  ;;  %v6430_v4 = vld [vmem:[#allocation26_spill] sm:$0xff] }
 0x2fc   : > { %v5058_v20 = vpop.f32.mrf.mxu3  ;;  %v2406_v27 = vmax.f32 %v2244_v56, 0.0 }
 0x2fd   : > { %v5050_v47 = vpop.f32.mrf.mxu2  ;;  %v5060_v57 = vpop.xlane.xlu1 %2615 }
 0x2fe   : > { %6424 = vst [vmem:[#allocation7_spill] sm:$0xff] %v5060_v57  ;;  %v5062_v62 = vpop.xlane.xlu0 %2505  ;;  %v5064_v17 = vpop.xlane.xlu2 %2503  ;;  %v2104_v57 = vadd.f32 %v2103_v23, %v4539_v32  ;;  %v2152_v32 = vadd.f32 %v4993_v28, %v6428_v24  ;;  %v2109_v23 = vadd.f32 %v2108_v48, %v6429_v5  ;;  %v6432_v28 = vld [vmem:[#allocation8_spill] sm:$0xff]  ;;  %v6433_v48 = vld [vmem:[#allocation29_spill] sm:$0xff]  ;;  %v6434_v5 = vld [vmem:[#allocation6_spill] sm:$0xff] }
 0x2ff   : > { %v2154_v24 = vadd.f32 %v5010_v59, %v6433_v48  ;;  %v2249_v59 = vadd.f32 %v5006_v29, %v4816_v53  ;;  %v2247_v48 = vadd.f32 %v4990_v36, %v4800_v25  ;;  %v2252_v29 = vadd.f32 %v5030_v1, %v4825_v49  ;;  %v6439_v25 = vld [vmem:[#allocation30_spill] sm:$0xff]  ;;  %v6444_v49 = vld [vmem:[#allocation11_spill] sm:$0xff] }
 0x300   : > { %v2159_v36 = vadd.f32 %v5050_v47, %v6439_v25  ;;  %v6445_v47 = vld [vmem:[#allocation32_spill] sm:$0xff] }
 0x301   : > { %2200 = vmatmul.bf16.gmra.mxu2 %v3650_v12  ;;  %2295 = vmatmul.bf16.gmra.mxu3 %v3669_v11  ;;  %v2351_v12 = vmax.f32 %v2107_v31, 0.0 }
 0x302   : > { %2459 = vmax.xlane.f32.xlu1 %v2316_v10  ;;  %2637 = vmax.xlane.f32.xlu0 %v2405_v0  ;;  %v2350_v0 = vmax.f32 %v2104_v57, 0.0  ;;  %v2149_v10 = vadd.f32 %v4975_v54, %v6430_v4  ;;  %v2024_v54 = vadd.f32 %v5024_v13, %v6432_v28  ;;  %v2022_v4 = vadd.f32 %v4995_v19, %v6434_v5  ;;  %v6437_v13 = vld [vmem:[#allocation10_spill] sm:$0xff] }
 0x303   : > { %2635 = vmax.xlane.f32.xlu2 %v2404_v3  ;;  %v2027_v19 = vadd.f32 %v5042_v60, %v6437_v13  ;;  %v6440_v60 = vld [vmem:[#allocation28_spill] sm:$0xff] }
 0x304   : > { %v5080_v11 = vpop.f32.mrf.mxu3  ;;  %v2157_v13 = vadd.f32 %v5034_v8, %v6440_v60  ;;  %v6446_v60 = vld [vmem:[#allocation9_spill] sm:$0xff] }
 0x305   : > { %v5072_v39 = vpop.f32.mrf.mxu2  ;;  %v5074_v51 = vpop.xlane.xlu1 %2507 }
 0x306   : > { %6425 = vst [vmem:[#allocation52_spill] sm:$0xff] %v5074_v51  ;;  %v5076_v18 = vpop.xlane.xlu0 %2541  ;;  %v5078_v52 = vpop.xlane.xlu2 %2539  ;;  %v2162_v8 = vadd.f32 %v5072_v39, %v6445_v47  ;;  %v2257_v39 = vadd.f32 %v5080_v11, %v4827_v55  ;;  %v6451_v55 = vld [vmem:[#allocation33_spill] sm:$0xff]  ;;  %v6452_v11 = vld [vmem:[#allocation31_spill] sm:$0xff] }
 0x307   : > { %6426 = vst [vmem:[#allocation53_spill] sm:$0xff] %v5076_v18  ;;  %v2031_v18 = vpop.f32.mrf.mxu0 }
 0x308   : > { %6427 = vst [vmem:[#allocation54_spill] sm:$0xff] %v5078_v52  ;;  %v2032_v1 = vadd.f32 %v2031_v18, %v6444_v49 }
 0x30a   : > { %2639 = vmax.xlane.f32.xlu1 %v2406_v27  ;;  %2529 = vmax.xlane.f32.xlu0 %v2351_v12  ;;  %v2369_v27 = vmax.f32 %v2152_v32, 0.0  ;;  %v2352_v12 = vmax.f32 %v2109_v23, 0.0 }
 0x30b   : > { %2527 = vmax.xlane.f32.xlu2 %v2350_v0  ;;  %v2368_v0 = vmax.f32 %v2149_v10, 0.0  ;;  %v2318_v10 = vmax.f32 %v2024_v54, 0.0 }
 0x30c   : > { %v5095_v52 = vpop.f32.mrf.mxu3 }
 0x30d   : > { %v5087_v3 = vpop.f32.mrf.mxu2  ;;  %v5089_v56 = vpop.xlane.xlu1 %2543 }
 0x30e   : > { %6431 = vst [vmem:[#allocation27_spill] sm:$0xff] %v5089_v56  ;;  %v5091_v31 = vpop.xlane.xlu0 %2439  ;;  %v5093_v57 = vpop.xlane.xlu2 %2437 }
 0x312   : > { %2531 = vmax.xlane.f32.xlu1 %v2352_v12  ;;  %2565 = vmax.xlane.f32.xlu0 %v2369_v27  ;;  %v2370_v27 = vmax.f32 %v2154_v24, 0.0  ;;  %v2033_v12 = vpop.f32.mrf.mxu0 }
 0x313   : > { %2563 = vmax.xlane.f32.xlu2 %v2368_v0  ;;  %v2317_v0 = vmax.f32 %v2022_v4, 0.0 }
 0x314   : > { %v5115_v28 = vpop.f32.mrf.mxu3 }
 0x315   : > { %v5103_v56 = vpop.f32.mrf.mxu2  ;;  %v5105_v2 = vpop.xlane.xlu1 %2441 }
 0x316   : > { %v5107_v32 = vpop.xlane.xlu0 %2619  ;;  %v5109_v23 = vpop.xlane.xlu2 %2617 }
 0x317   : > { %6435 = vst [vmem:[#allocation25_spill] sm:$0xff] %v5107_v32 }
 0x318   : > { %6436 = vst [vmem:[#allocation26_spill] sm:$0xff] %v5109_v23  ;;  %v2029_v23 = vadd.f32 %v5069_v7, %v6446_v60  ;;  %v6448_v7 = vld [vmem:[#allocation13_spill] sm:$0xff] }
 0x31a   : > { %2567 = vmax.xlane.f32.xlu1 %v2370_v27  ;;  %2463 = vmax.xlane.f32.xlu0 %v2318_v10  ;;  %v2408_v10 = vmax.f32 %v2249_v59, 0.0  ;;  %v2319_v27 = vmax.f32 %v2027_v19, 0.0  ;;  %v5127_v53 = vpop.f32.mrf.mxu0  ;;  %v2320_v18 = vmax.f32 %v2029_v23, 0.0  ;;  %v2411_v23 = vmax.f32 %v2257_v39, 0.0 }
 0x31b   : > { %2461 = vmax.xlane.f32.xlu2 %v2317_v0  ;;  %v2407_v0 = vmax.f32 %v2247_v48, 0.0 }
 0x31c   : > { %v5137_v32 = vpop.f32.mrf.mxu3 }
 0x31d   : > { %v5119_v5 = vpop.f32.mrf.mxu2  ;;  %v5121_v54 = vpop.xlane.xlu1 %2621 }
 0x31e   : > { %6438 = vst [vmem:[#allocation8_spill] sm:$0xff] %v5121_v54  ;;  %v5123_v24 = vpop.xlane.xlu0 %2511  ;;  %v5125_v4 = vpop.xlane.xlu2 %2509 }
 0x322   : > { %2465 = vmax.xlane.f32.xlu1 %v2319_v27  ;;  %2643 = vmax.xlane.f32.xlu0 %v2408_v10  ;;  %v2409_v10 = vmax.f32 %v2252_v29, 0.0  ;;  %v2372_v27 = vmax.f32 %v2159_v36, 0.0  ;;  %v2038_v25 = vpop.f32.mrf.mxu0  ;;  %v2321_v36 = vmax.f32 %v2032_v1, 0.0 }
 0x323   : > { %2641 = vmax.xlane.f32.xlu2 %v2407_v0  ;;  %v2371_v0 = vmax.f32 %v2157_v13, 0.0  ;;  %v2373_v13 = vmax.f32 %v2162_v8, 0.0 }
 0x325   : > { %v5135_v54 = vpop.f32.mrf.mxu2  ;;  %v5139_v59 = vpop.xlane.xlu1 %2513 }
 0x326   : > { %6441 = vst [vmem:[#allocation29_spill] sm:$0xff] %v5139_v59  ;;  %v5141_v19 = vpop.xlane.xlu0 %2547  ;;  %v5143_v48 = vpop.xlane.xlu2 %2545 }
 0x327   : > { %6442 = vst [vmem:[#allocation6_spill] sm:$0xff] %v5141_v19 }
 0x328   : > { %6443 = vst [vmem:[#allocation10_spill] sm:$0xff] %v5143_v48 }
 0x32a   : > { %2645 = vmax.xlane.f32.xlu1 %v2409_v10  ;;  %2571 = vmax.xlane.f32.xlu0 %v2372_v27  ;;  %v5158_v10 = vpop.f32.mrf.mxu3  ;;  %v2034_v27 = vadd.f32 %v2033_v12, %v6448_v7  ;;  %v2041_v47 = vpop.f32.mrf.mxu0  ;;  %v2164_v12 = vadd.f32 %v5087_v3, %v6452_v11  ;;  %v6456_v11 = vld [vmem:[#allocation12_spill] sm:$0xff] }
 0x32b   : > { %2569 = vmax.xlane.f32.xlu2 %v2371_v0  ;;  %v2254_v0 = vadd.f32 %v5058_v20, %v4818_v42  ;;  %v2259_v42 = vadd.f32 %v5095_v52, %v4845_v16  ;;  %v2167_v20 = vadd.f32 %v5103_v56, %v6451_v55  ;;  %v6454_v16 = vld [vmem:[#allocation14_spill] sm:$0xff]  ;;  %v6455_v56 = vld [vmem:[#allocation35_spill] sm:$0xff] }
 0x32c   : > { %v2039_v52 = vadd.f32 %v2038_v25, %v6454_v16  ;;  %v2169_v3 = vadd.f32 %v5119_v5, %v6455_v56  ;;  %v2264_v5 = vadd.f32 %v5137_v32, %v4849_v14  ;;  %v6460_v25 = vld [vmem:[#allocation16_spill] sm:$0xff]  ;;  %v2262_v16 = vadd.f32 %v5115_v28, %v4843_v58 }
 0x32d   : > { %v5150_v59 = vpop.f32.mrf.mxu2  ;;  %v5152_v19 = vpop.xlane.xlu1 %2549  ;;  %v2267_v14 = vadd.f32 %v5158_v10, %v4861_v41  ;;  %v6462_v32 = vld [vmem:[#allocation36_spill] sm:$0xff]  ;;  %v6466_v41 = vld [vmem:[#allocation17_spill] sm:$0xff]  ;;  %v6467_v10 = vld [vmem:[#allocation38_spill] sm:$0xff] }
 0x32e   : > { %6447 = vst [vmem:[#allocation30_spill] sm:$0xff] %v5152_v19  ;;  %v5154_v48 = vpop.xlane.xlu0 %2445  ;;  %v5156_v29 = vpop.xlane.xlu2 %2443  ;;  %v2174_v58 = vadd.f32 %v5150_v59, %v6462_v32  ;;  %v6468_v32 = vld [vmem:[#allocation15_spill] sm:$0xff] }
 0x332   : > { %2573 = vmax.xlane.f32.xlu1 %v2373_v13  ;;  %2469 = vmax.xlane.f32.xlu0 %v2321_v36  ;;  %v2322_v36 = vmax.f32 %v2034_v27, 0.0  ;;  %v2410_v13 = vmax.f32 %v2254_v0, 0.0  ;;  %v2412_v0 = vmax.f32 %v2259_v42, 0.0 }
 0x333   : > { %2467 = vmax.xlane.f32.xlu2 %v2320_v18  ;;  %v5173_v18 = vpop.f32.mrf.mxu3 }
 0x335   : > { %v5165_v49 = vpop.f32.mrf.mxu2  ;;  %v5167_v60 = vpop.xlane.xlu1 %2447 }
 0x336   : > { %v5169_v1 = vpop.xlane.xlu0 %2625  ;;  %v5171_v8 = vpop.xlane.xlu2 %2623 }
 0x337   : > { %6449 = vst [vmem:[#allocation28_spill] sm:$0xff] %v5169_v1 }
 0x338   : > { %6450 = vst [vmem:[#allocation11_spill] sm:$0xff] %v5171_v8 }
 0x33a   : > { %2471 = vmax.xlane.f32.xlu1 %v2322_v36  ;;  %2649 = vmax.xlane.f32.xlu0 %v2411_v23  ;;  %v2375_v23 = vmax.f32 %v2167_v20, 0.0  ;;  %v2043_v36 = vpop.f32.mrf.mxu0 }
 0x33b   : > { %2647 = vmax.xlane.f32.xlu2 %v2410_v13  ;;  %v2374_v13 = vmax.f32 %v2164_v12, 0.0  ;;  %v2271_v55 = vpop.f32.mrf.mxu3  ;;  %v2324_v12 = vmax.f32 %v2039_v52, 0.0 }
 0x33d   : > { %v5181_v7 = vpop.f32.mrf.mxu2  ;;  %v5183_v1 = vpop.xlane.xlu1 %2627 }
 0x33e   : > { %6453 = vst [vmem:[#allocation32_spill] sm:$0xff] %v5183_v1  ;;  %v5185_v39 = vpop.xlane.xlu0 %2517  ;;  %v5187_v27 = vpop.xlane.xlu2 %2515  ;;  %v2037_v1 = vadd.f32 %v5127_v53, %v6456_v11  ;;  %v2042_v53 = vadd.f32 %v2041_v47, %v6460_v25  ;;  %v6463_v47 = vld [vmem:[#allocation34_spill] sm:$0xff] }
 0x342   : > { %2651 = vmax.xlane.f32.xlu1 %v2412_v0  ;;  %2577 = vmax.xlane.f32.xlu0 %v2375_v23  ;;  %v2376_v0 = vmax.f32 %v2169_v3, 0.0  ;;  %v2323_v23 = vmax.f32 %v2037_v1, 0.0  ;;  %v2414_v1 = vmax.f32 %v2264_v5, 0.0  ;;  %v2325_v3 = vmax.f32 %v2042_v53, 0.0 }
 0x343   : > { %2575 = vmax.xlane.f32.xlu2 %v2374_v13  ;;  %v2046_v13 = vpop.f32.mrf.mxu0  ;;  %v2273_v56 = vpop.f32.mrf.mxu3 }
 0x344   : > { %v2047_v59 = vadd.f32 %v2046_v13, %v6466_v41  ;;  %v2272_v13 = vadd.f32 %v2271_v55, %v4872_v26  ;;  %v2274_v26 = vadd.f32 %v2273_v56, %v4884_v63  ;;  %v6477_v63 = vld [vmem:[#allocation20_spill] sm:$0xff]  ;;  %v6478_v56 = vld [vmem:[#allocation41_spill] sm:$0xff] }
 0x345   : > { %v5194_v8 = vpop.f32.mrf.mxu2  ;;  %v5196_v19 = vpop.xlane.xlu1 %2519 }
 0x346   : > { %6457 = vst [vmem:[#allocation9_spill] sm:$0xff] %v5196_v19  ;;  %v5198_v42 = vpop.xlane.xlu0 %2553  ;;  %v5200_v20 = vpop.xlane.xlu2 %2551 }
 0x347   : > { %6458 = vst [vmem:[#allocation13_spill] sm:$0xff] %v5198_v42 }
 0x348   : > { %6459 = vst [vmem:[#allocation33_spill] sm:$0xff] %v5200_v20 }
 0x34a   : > { %2579 = vmax.xlane.f32.xlu1 %v2376_v0  ;;  %2475 = vmax.xlane.f32.xlu0 %v2324_v12  ;;  %v2413_v12 = vmax.f32 %v2262_v16, 0.0  ;;  %v2415_v16 = vmax.f32 %v2267_v14, 0.0 }
 0x34b   : > { %2473 = vmax.xlane.f32.xlu2 %v2323_v23  ;;  %v2048_v28 = vpop.f32.mrf.mxu0  ;;  %v2172_v23 = vadd.f32 %v5135_v54, %v6463_v47  ;;  %v2177_v54 = vadd.f32 %v5165_v49, %v6467_v10  ;;  %v2044_v47 = vadd.f32 %v2043_v36, %v6468_v32  ;;  %v2269_v36 = vadd.f32 %v5173_v18, %v4852_v34  ;;  %v6475_v34 = vld [vmem:[#allocation37_spill] sm:$0xff] }
 0x34c   : > { %v2179_v18 = vadd.f32 %v5181_v7, %v6475_v34  ;;  %v6479_v7 = vld [vmem:[#allocation18_spill] sm:$0xff] }
 0x34d   : > { %v5207_v11 = vpop.xlane.xlu1 %2555  ;;  %v5213_v0 = vpop.f32.mrf.mxu2  ;;  %v2326_v19 = vmax.f32 %v2044_v47, 0.0 }
 0x34e   : > { %6461 = vst [vmem:[#allocation31_spill] sm:$0xff] %v5207_v11  ;;  %v5209_v42 = vpop.xlane.xlu0 %2451  ;;  %v5211_v52 = vpop.xlane.xlu2 %2449 }
 0x352   : > { %2477 = vmax.xlane.f32.xlu1 %v2325_v3  ;;  %2655 = vmax.xlane.f32.xlu0 %v2414_v1  ;;  %v2378_v3 = vmax.f32 %v2174_v58, 0.0  ;;  %v5227_v1 = vpop.f32.mrf.mxu3 }
 0x353   : > { %2653 = vmax.xlane.f32.xlu2 %v2413_v12  ;;  %v2377_v12 = vmax.f32 %v2172_v23, 0.0  ;;  %v2327_v23 = vmax.f32 %v2047_v59, 0.0  ;;  %v2417_v59 = vmax.f32 %v2272_v13, 0.0 }
 0x355   : > { %v5221_v25 = vpop.xlane.xlu1 %2453  ;;  %v5229_v11 = vpop.f32.mrf.mxu2 }
 0x356   : > { %v5223_v5 = vpop.xlane.xlu0 %2631  ;;  %v5225_v53 = vpop.xlane.xlu2 %2629 }
 0x357   : > { %6464 = vst [vmem:[#allocation14_spill] sm:$0xff] %v5223_v5  ;;  %v2051_v5 = vpop.f32.mrf.mxu0 }
 0x358   : > { %6465 = vst [vmem:[#allocation35_spill] sm:$0xff] %v5225_v53  ;;  %v2379_v53 = vmax.f32 %v2177_v54, 0.0 }
 0x35a   : > { %2657 = vmax.xlane.f32.xlu1 %v2415_v16  ;;  %2583 = vmax.xlane.f32.xlu0 %v2378_v3  ;;  %v2278_v16 = vpop.f32.mrf.mxu3  ;;  %v6470_v3 = vld [vmem:[#allocation19_spill] sm:$0xff] }
 0x35b   : > { %2581 = vmax.xlane.f32.xlu2 %v2377_v12  ;;  %v2049_v49 = vadd.f32 %v2048_v28, %v6470_v3 }
 0x35d   : > { %v5235_v20 = vpop.xlane.xlu1 %2633  ;;  %v2188_v12 = vpop.f32.mrf.mxu2  ;;  %v2328_v54 = vmax.f32 %v2049_v49, 0.0  ;;  %v2418_v49 = vmax.f32 %v2274_v26, 0.0 }
 0x35e   : > { %6469 = vst [vmem:[#allocation12_spill] sm:$0xff] %v5235_v20  ;;  %v5237_v14 = vpop.xlane.xlu0 %2523  ;;  %v5239_v58 = vpop.xlane.xlu2 %2521 }
 0x35f   : > { %v2053_v47 = vpop.f32.mrf.mxu0 }
 0x362   : > { %2585 = vmax.xlane.f32.xlu1 %v2379_v53  ;;  %2481 = vmax.xlane.f32.xlu0 %v2327_v23  ;;  %v2416_v53 = vmax.f32 %v2269_v36, 0.0  ;;  %v2281_v28 = vpop.f32.mrf.mxu3 }
 0x363   : > { %2479 = vmax.xlane.f32.xlu2 %v2326_v19  ;;  %v6474_v19 = vld [vmem:[#allocation39_spill] sm:$0xff] }
 0x364   : > { %v2182_v55 = vadd.f32 %v5194_v8, %v6474_v19  ;;  %v2054_v8 = vadd.f32 %v2053_v47, %v6477_v63  ;;  %v2052_v19 = vadd.f32 %v2051_v5, %v6479_v7  ;;  %v2279_v47 = vadd.f32 %v2278_v16, %v4886_v35  ;;  %v6486_v16 = vld [vmem:[#allocation42_spill] sm:$0xff] }
 0x365   : > { %v5245_v41 = vpop.xlane.xlu1 %2525  ;;  %v2191_v23 = vpop.f32.mrf.mxu2  ;;  %v2282_v35 = vadd.f32 %v2281_v28, %v4907_v15  ;;  %v6491_v15 = vld [vmem:[#allocation23_spill] sm:$0xff] }
 0x366   : > { %6471 = vst [vmem:[#allocation16_spill] sm:$0xff] %v5245_v41  ;;  %v5247_v10 = vpop.xlane.xlu0 %2559  ;;  %v5249_v32 = vpop.xlane.xlu2 %2557  ;;  %v2381_v36 = vmax.f32 %v2182_v55, 0.0  ;;  %v2330_v26 = vmax.f32 %v2054_v8, 0.0 }
 0x367   : > { %6472 = vst [vmem:[#allocation36_spill] sm:$0xff] %v5247_v10 }
 0x368   : > { %6473 = vst [vmem:[#allocation34_spill] sm:$0xff] %v5249_v32 }
 0x36a   : > { %2483 = vmax.xlane.f32.xlu1 %v2328_v54  ;;  %2661 = vmax.xlane.f32.xlu0 %v2417_v59  ;;  %v2380_v59 = vmax.f32 %v2179_v18, 0.0  ;;  %v2056_v54 = vpop.f32.mrf.mxu0  ;;  %v2283_v34 = vpop.f32.mrf.mxu3 }
 0x36b   : > { %2659 = vmax.xlane.f32.xlu2 %v2416_v53  ;;  %v2184_v53 = vadd.f32 %v5213_v0, %v6478_v56  ;;  %v6482_v0 = vld [vmem:[#allocation22_spill] sm:$0xff] }
 0x36d   : > { %v5256_v3 = vpop.xlane.xlu1 %2561  ;;  %v2382_v55 = vmax.f32 %v2184_v53, 0.0  ;;  %v5272_v18 = vpop.f32.mrf.mxu2  ;;  %v2420_v53 = vmax.f32 %v2279_v47, 0.0 }
 0x36e   : > { %6476 = vst [vmem:[#allocation17_spill] sm:$0xff] %v5256_v3  ;;  %v5258_v20 = vpop.xlane.xlu0 %2457  ;;  %v5260_v13 = vpop.xlane.xlu2 %2455 }
 0x372   : > { %2663 = vmax.xlane.f32.xlu1 %v2418_v49  ;;  %2589 = vmax.xlane.f32.xlu0 %v2381_v36  ;;  %v2329_v49 = vmax.f32 %v2052_v19, 0.0  ;;  %v2057_v36 = vadd.f32 %v2056_v54, %v6482_v0  ;;  %v2058_v5 = vpop.f32.mrf.mxu0  ;;  %v2286_v19 = vpop.f32.mrf.mxu3  ;;  %v2189_v54 = vadd.f32 %v2188_v12, %v6486_v16  ;;  %v6492_v12 = vld [vmem:[#allocation44_spill] sm:$0xff] }
 0x373   : > { %2587 = vmax.xlane.f32.xlu2 %v2380_v59  ;;  %v2277_v59 = vadd.f32 %v5227_v1, %v4874_v44 }
 0x374   : > { %v2331_v7 = vmax.f32 %v2057_v36, 0.0  ;;  %v2421_v36 = vmax.f32 %v2282_v35, 0.0 }
 0x375   : > { %v5266_v3 = vpop.xlane.xlu1 %2459 }
 0x376   : > { %v5268_v10 = vpop.xlane.xlu0 %2637  ;;  %v5270_v32 = vpop.xlane.xlu2 %2635 }
 0x377   : > { %6480 = vst [vmem:[#allocation38_spill] sm:$0xff] %v5268_v10 }
 0x378   : > { %6481 = vst [vmem:[#allocation15_spill] sm:$0xff] %v5270_v32 }
 0x37a   : > { %2591 = vmax.xlane.f32.xlu1 %v2382_v55  ;;  %2487 = vmax.xlane.f32.xlu0 %v2330_v26  ;;  %v2419_v55 = vmax.f32 %v2277_v59, 0.0  ;;  %v2196_v26 = vpop.f32.mrf.mxu2  ;;  %v2061_v1 = vpop.f32.mrf.mxu0  ;;  %v2384_v59 = vmax.f32 %v2189_v54, 0.0 }
 0x37b   : > { %2485 = vmax.xlane.f32.xlu2 %v2329_v49  ;;  %v6487_v49 = vld [vmem:[#allocation40_spill] sm:$0xff]  ;;  %v2062_v28 = vadd.f32 %v2061_v1, %v6491_v15 }
 0x37c   : > { %v2187_v44 = vadd.f32 %v5229_v11, %v6487_v49  ;;  %v6493_v11 = vld [vmem:[#allocation21_spill] sm:$0xff]  ;;  %v6494_v1 = vld [vmem:[#allocation24_spill] sm:$0xff] }
 0x37d   : > { %v5278_v63 = vpop.xlane.xlu1 %2639  ;;  %v2059_v16 = vadd.f32 %v2058_v5, %v6493_v11  ;;  %v2333_v35 = vmax.f32 %v2062_v28, 0.0  ;;  %v2284_v5 = vadd.f32 %v2283_v34, %v4905_v22 }
 0x37e   : > { %6483 = vst [vmem:[#allocation19_spill] sm:$0xff] %v5278_v63  ;;  %v5280_v56 = vpop.xlane.xlu0 %2529  ;;  %v5282_v8 = vpop.xlane.xlu2 %2527  ;;  %v2383_v10 = vmax.f32 %v2187_v44, 0.0 }
 0x37f   : > { %6484 = vst [vmem:[#allocation39_spill] sm:$0xff] %v5280_v56  ;;  %v2332_v44 = vmax.f32 %v2059_v16, 0.0  ;;  %v2422_v16 = vmax.f32 %v2284_v5, 0.0 }
 0x380   : > { %6485 = vst [vmem:[#allocation37_spill] sm:$0xff] %v5282_v8 }
 0x382   : > { %2489 = vmax.xlane.f32.xlu1 %v2331_v7  ;;  %2667 = vmax.xlane.f32.xlu0 %v2420_v53  ;;  %v2288_v7 = vpop.f32.mrf.mxu3  ;;  %v2192_v53 = vadd.f32 %v2191_v23, %v6492_v12 }
 0x383   : > { %2665 = vmax.xlane.f32.xlu2 %v2419_v55  ;;  %v2198_v55 = vpop.f32.mrf.mxu2 }
 0x384   : > { %v2385_v54 = vmax.f32 %v2192_v53, 0.0 }
 0x385   : > { %v5288_v0 = vpop.xlane.xlu1 %2531 }
 0x386   : > { %6488 = vst [vmem:[#allocation20_spill] sm:$0xff] %v5288_v0  ;;  %v5290_v63 = vpop.xlane.xlu0 %2565  ;;  %v5292_v47 = vpop.xlane.xlu2 %2563 }
 0x387   : > { %6489 = vst [vmem:[#allocation41_spill] sm:$0xff] %v5290_v63 }
 0x388   : > { %6490 = vst [vmem:[#allocation18_spill] sm:$0xff] %v5292_v47  ;;  %v2063_v47 = vpop.f32.mrf.mxu0 }
 0x389   : > { %v2064_v23 = vadd.f32 %v2063_v47, %v6494_v1 }
 0x38a   : > { %2669 = vmax.xlane.f32.xlu1 %v2421_v36  ;;  %2595 = vmax.xlane.f32.xlu0 %v2384_v59  ;;  %v2291_v36 = vpop.f32.mrf.mxu3 }
 0x38b   : > { %2593 = vmax.xlane.f32.xlu2 %v2383_v10  ;;  %v2287_v10 = vadd.f32 %v2286_v19, %v4909_v45  ;;  %v2201_v59 = vpop.f32.mrf.mxu2  ;;  %v2334_v53 = vmax.f32 %v2064_v23, 0.0  ;;  %v2289_v45 = vadd.f32 %v2288_v7, %v4922_v61  ;;  %v6497_v19 = vld [vmem:[#allocation45_spill] sm:$0xff]  ;;  %v6500_v61 = vld [vmem:[#allocation47_spill] sm:$0xff] }
 0x38c   : > { %v2197_v47 = vadd.f32 %v2196_v26, %v6497_v19  ;;  %v2199_v7 = vadd.f32 %v2198_v55, %v6500_v61  ;;  %v6501_v26 = vld [vmem:[#allocation48_spill] sm:$0xff] }
 0x38d   : > { %v5297_v49 = vpop.xlane.xlu1 %2567  ;;  %v2423_v28 = vmax.f32 %v2287_v10, 0.0  ;;  %v2424_v10 = vmax.f32 %v2289_v45, 0.0 }
 0x38e   : > { %v5299_v32 = vpop.xlane.xlu0 %2463  ;;  %v5301_v63 = vpop.xlane.xlu2 %2461  ;;  %v2387_v23 = vmax.f32 %v2197_v47, 0.0 }
 0x392   : > { %2597 = vmax.xlane.f32.xlu1 %v2385_v54  ;;  %2493 = vmax.xlane.f32.xlu0 %v2333_v35  ;;  %v6498_v35 = vld [vmem:[#allocation43_spill] sm:$0xff]  ;;  %v2293_v34 = vpop.f32.mrf.mxu3 }
 0x393   : > { %2491 = vmax.xlane.f32.xlu2 %v2332_v44  ;;  %v2194_v22 = vadd.f32 %v5272_v18, %v6498_v35  ;;  %v2292_v18 = vadd.f32 %v2291_v36, %v4920_v46 }
 0x395   : > { %v5306_v15 = vpop.xlane.xlu1 %2465  ;;  %v2386_v5 = vmax.f32 %v2194_v22, 0.0  ;;  %v2425_v22 = vmax.f32 %v2292_v18, 0.0 }
 0x396   : > { %v5308_v12 = vpop.xlane.xlu0 %2643  ;;  %v5310_v11 = vpop.xlane.xlu2 %2641 }
 0x397   : > { %6495 = vst [vmem:[#allocation22_spill] sm:$0xff] %v5308_v12 }
 0x398   : > { %6496 = vst [vmem:[#allocation42_spill] sm:$0xff] %v5310_v11 }
 0x39a   : > { %2495 = vmax.xlane.f32.xlu1 %v2334_v53  ;;  %2673 = vmax.xlane.f32.xlu0 %v2423_v28  ;;  %v2203_v53 = vpop.f32.mrf.mxu2  ;;  %v2296_v45 = vpop.f32.mrf.mxu3 }
 0x39b   : > { %2671 = vmax.xlane.f32.xlu2 %v2422_v16  ;;  %v2204_v28 = vadd.f32 %v2203_v53, %v6501_v26  ;;  %v2297_v55 = vadd.f32 %v2296_v45, %v4956_v21 }
 0x39d   : > { %v5316_v54 = vpop.xlane.xlu1 %2645  ;;  %v2390_v47 = vmax.f32 %v2204_v28, 0.0 }
 0x39e   : > { %6499 = vst [vmem:[#allocation40_spill] sm:$0xff] %v5316_v54  ;;  %v5318_v44 = vpop.xlane.xlu0 %2571  ;;  %v5320_v1 = vpop.xlane.xlu2 %2569  ;;  %v2388_v54 = vmax.f32 %v2199_v7, 0.0  ;;  %v2427_v7 = vmax.f32 %v2297_v55, 0.0 }
 0x3a2   : > { %2675 = vmax.xlane.f32.xlu1 %v2424_v10  ;;  %2601 = vmax.xlane.f32.xlu0 %v2387_v23  ;;  %v2294_v10 = vadd.f32 %v2293_v34, %v4941_v33  ;;  %v6503_v23 = vld [vmem:[#allocation46_spill] sm:$0xff]  ;;  %v2298_v28 = vpop.f32.mrf.mxu3 }
 0x3a3   : > { %2599 = vmax.xlane.f32.xlu2 %v2386_v5  ;;  %v2202_v5 = vadd.f32 %v2201_v59, %v6503_v23 }
 0x3a4   : > { %v2426_v61 = vmax.f32 %v2294_v10, 0.0 }
 0x3a5   : > { %v5325_v16 = vpop.xlane.xlu1 %2573  ;;  %v2389_v26 = vmax.f32 %v2202_v5, 0.0 }
 0x3a6   : > { %6502 = vst [vmem:[#allocation23_spill] sm:$0xff] %v5325_v16  ;;  %v5327_v19 = vpop.xlane.xlu0 %2469  ;;  %v5329_v35 = vpop.xlane.xlu2 %2467 }
 0x3aa   : > { %2603 = vmax.xlane.f32.xlu1 %v2388_v54  ;;  %2607 = vmax.xlane.f32.xlu0 %v2390_v47  ;;  %v2299_v54 = vadd.f32 %v2298_v28, %v4945_v30 }
 0x3ab   : > { %2677 = vmax.xlane.f32.xlu2 %v2425_v22 }
 0x3ac   : > { %v2428_v34 = vmax.f32 %v2299_v54, 0.0 }
 0x3ad   : > { %v5334_v46 = vpop.xlane.xlu1 %2471 }
 0x3ae   : > { %v5336_v36 = vpop.xlane.xlu0 %2649  ;;  %v5338_v53 = vpop.xlane.xlu2 %2647 }
 0x3af   : > { %6504 = vst [vmem:[#allocation44_spill] sm:$0xff] %v5336_v36 }
 0x3b0   : > { %6505 = vst [vmem:[#allocation21_spill] sm:$0xff] %v5338_v53 }
 0x3b2   : > { %2681 = vmax.xlane.f32.xlu1 %v2427_v7  ;;  %2679 = vmax.xlane.f32.xlu0 %v2426_v61 }
 0x3b3   : > { %2605 = vmax.xlane.f32.xlu2 %v2389_v26 }
 0x3b5   : > { %v5341_v33 = vpop.xlane.xlu1 %2651 }
 0x3b6   : > { %6506 = vst [vmem:[#allocation24_spill] sm:$0xff] %v5341_v33  ;;  %v5343_v21 = vpop.xlane.xlu0 %2577  ;;  %v5345_v59 = vpop.xlane.xlu2 %2575 }
 0x3b7   : > { %6507 = vst [vmem:[#allocation45_spill] sm:$0xff] %v5343_v21 }
 0x3b8   : > { %6508 = vst [vmem:[#allocation43_spill] sm:$0xff] %v5345_v59 }
 0x3bb   : > { %2683 = vmax.xlane.f32.xlu2 %v2428_v34 }
 0x3bd   : > { %v5347_v18 = vpop.xlane.xlu1 %2579 }
 0x3be   : > { %6509 = vst [vmem:[#allocation47_spill] sm:$0xff] %v5347_v18  ;;  %v5349_v45 = vpop.xlane.xlu0 %2475  ;;  %v5351_v47 = vpop.xlane.xlu2 %2473 }
 0x3c5   : > { %v5353_v22 = vpop.xlane.xlu1 %2477 }
 0x3c6   : > { %v5355_v10 = vpop.xlane.xlu0 %2655  ;;  %v5357_v55 = vpop.xlane.xlu2 %2653 }
 0x3c7   : > { %6510 = vst [vmem:[#allocation48_spill] sm:$0xff] %v5355_v10 }
 0x3c8   : > { %6511 = vst [vmem:[#allocation46_spill] sm:$0xff] %v5357_v55 }
 0x3cd   : > { %v5359_v30 = vpop.xlane.xlu1 %2657 }
 0x3ce   : > { %6512 = vst [vmem:[#allocation55_spill] sm:$0xff] %v5359_v30  ;;  %v5361_v23 = vpop.xlane.xlu0 %2583  ;;  %v5363_v5 = vpop.xlane.xlu2 %2581 }
 0x3cf   : > { %6513 = vst [vmem:[#allocation56_spill] sm:$0xff] %v5361_v23 }
 0x3d0   : > { %6514 = vst [vmem:[#allocation57_spill] sm:$0xff] %v5363_v5 }
 0x3d5   : > { %v5365_v61 = vpop.xlane.xlu1 %2585 }
 0x3d6   : > { %6515 = vst [vmem:[#allocation58_spill] sm:$0xff] %v5365_v61  ;;  %v5367_v7 = vpop.xlane.xlu0 %2481  ;;  %v5369_v26 = vpop.xlane.xlu2 %2479 }
 0x3dd   : > { %v5371_v28 = vpop.xlane.xlu1 %2483 }
 0x3de   : > { %v5373_v54 = vpop.xlane.xlu0 %2661  ;;  %v5375_v34 = vpop.xlane.xlu2 %2659 }
 0x3df   : > { %6516 = vst [vmem:[#allocation59_spill] sm:$0xff] %v5373_v54 }
 0x3e0   : > { %6517 = vst [vmem:[#allocation60_spill] sm:$0xff] %v5375_v34 }
 0x3e5   : > { %v5377_v10 = vpop.xlane.xlu1 %2663 }
 0x3e6   : > { %6518 = vst [vmem:[#allocation61_spill] sm:$0xff] %v5377_v10  ;;  %v5379_v55 = vpop.xlane.xlu0 %2589  ;;  %v5381_v30 = vpop.xlane.xlu2 %2587 }
 0x3e7   : > { %6519 = vst [vmem:[#allocation62_spill] sm:$0xff] %v5379_v55 }
 0x3e8   : > { %6520 = vst [vmem:[#allocation63_spill] sm:$0xff] %v5381_v30 }
 0x3ed   : > { %v5383_v33 = vpop.xlane.xlu1 %2591 }
 0x3ee   : > { %6521 = vst [vmem:[#allocation64_spill] sm:$0xff] %v5383_v33  ;;  %v5385_v36 = vpop.xlane.xlu0 %2487  ;;  %v5387_v53 = vpop.xlane.xlu2 %2485 }
 0x3f5   : > { %v5389_v12 = vpop.xlane.xlu1 %2489 }
 0x3f6   : > { %v5391_v11 = vpop.xlane.xlu0 %2667  ;;  %v5393_v61 = vpop.xlane.xlu2 %2665 }
 0x3f7   : > { %6522 = vst [vmem:[#allocation65_spill] sm:$0xff] %v5391_v11 }
 0x3f8   : > { %6523 = vst [vmem:[#allocation66_spill] sm:$0xff] %v5393_v61 }
 0x3fd   : > { %v5395_v54 = vpop.xlane.xlu1 %2669 }
 0x3fe   : > { %6524 = vst [vmem:[#allocation67_spill] sm:$0xff] %v5395_v54  ;;  %v5397_v34 = vpop.xlane.xlu0 %2595  ;;  %v5399_v10 = vpop.xlane.xlu2 %2593 }
 0x3ff   : > { %6525 = vst [vmem:[#allocation68_spill] sm:$0xff] %v5397_v34 }
 0x400   : > { %6526 = vst [vmem:[#allocation69_spill] sm:$0xff] %v5399_v10 }
 0x405   : > { %v5401_v55 = vpop.xlane.xlu1 %2597 }
 0x406   : > { %6527 = vst [vmem:[#allocation70_spill] sm:$0xff] %v5401_v55  ;;  %v5403_v30 = vpop.xlane.xlu0 %2493  ;;  %v5405_v33 = vpop.xlane.xlu2 %2491 }
 0x40d   : > { %v5407_v23 = vpop.xlane.xlu1 %2495 }
 0x40e   : > { %v5409_v5 = vpop.xlane.xlu0 %2673  ;;  %v5411_v18 = vpop.xlane.xlu2 %2671 }
 0x40f   : > { %6528 = vst [vmem:[#allocation71_spill] sm:$0xff] %v5409_v5 }
 0x415   : > { %v5413_v11 = vpop.xlane.xlu1 %2675 }
 0x416   : > { %v5415_v61 = vpop.xlane.xlu0 %2601  ;;  %v5417_v54 = vpop.xlane.xlu2 %2599 }
 0x41d   : > { %v5419_v34 = vpop.xlane.xlu1 %2603 }
 0x41e   : > { %v5421_v10 = vpop.xlane.xlu0 %2607  ;;  %v5423_v55 = vpop.xlane.xlu2 %2677 }
 0x41f   : > { %6529 = vst [vmem:[#allocation72_spill] sm:$0xff] %v5421_v10 }
 0x425   : > { %v5425_v21 = vpop.xlane.xlu1 %2681 }
 0x426   : > { %6530 = vst [vmem:[#allocation73_spill] sm:$0xff] %v5425_v21  ;;  %v5427_v59 = vpop.xlane.xlu0 %2679  ;;  %v5429_v16 = vpop.xlane.xlu2 %2605 }
 0x427   : > { %6531 = vst [vmem:[#allocation74_spill] sm:$0xff] %v5427_v59 }
 0x428   : > { %6532 = vst [vmem:[#allocation75_spill] sm:$0xff] %v5429_v16 }
 0x42b   : > { %2688 = sbr.rel (%p3593_p7) target bundleno = 1201 (0x4b1), region = 52 }
 0x42e   : > { %v5431_v5 = vpop.xlane.xlu2 %2683 }
 0x42f   : > { %6533 = vst [vmem:[#allocation76_spill] sm:$0xff] %v5431_v5 }
 0x430   : > { %vm2689_vm3 = vcmask 7168  }
 0x431   : > { %2690 = vst.msk [vmem:[%s3866_s20] sm:$0xff] %vm2689_vm3, %v4958_v37 }
 0x432   : > { %2691 = vst.msk [vmem:[%s3866_s20 + $0x8] sm:$0xff] %vm2689_vm3, %v4983_v40 }
 0x433   : > { %2692 = vst.msk [vmem:[%s3866_s20 + $0x10] sm:$0xff] %vm2689_vm3, %v4997_v38 }
 0x434   : > { %2693 = vst.msk [vmem:[%s3866_s20 + $0x18] sm:$0xff] %vm2689_vm3, %v5040_v9 }
 0x435   : > { %2694 = vst.msk [vmem:[%s3866_s20 + $0x20] sm:$0xff] %vm2689_vm3, %v5093_v57 }
 0x436   : > { %2695 = vst.msk [vmem:[%s3866_s20 + $0x28] sm:$0xff] %vm2689_vm3, %v5091_v31 }
 0x437   : > { %2696 = vst.msk [vmem:[%s3866_s20 + $0x30] sm:$0xff] %vm2689_vm3, %v5105_v2 }
 0x438   : > { %2697 = vst.msk [vmem:[%s3866_s20 + $0x38] sm:$0xff] %vm2689_vm3, %v5156_v29 }
 0x439   : > { %2698 = vst.msk [vmem:[%s3866_s20 + $0x40] sm:$0xff] %vm2689_vm3, %v5154_v48 }
 0x43a   : > { %2699 = vst.msk [vmem:[%s3866_s20 + $0x48] sm:$0xff] %vm2689_vm3, %v5167_v60 }
 0x43b   : > { %2700 = vst.msk [vmem:[%s3866_s20 + $0x50] sm:$0xff] %vm2689_vm3, %v5211_v52 }
 0x43c   : > { %2701 = vst.msk [vmem:[%s3866_s20 + $0x58] sm:$0xff] %vm2689_vm3, %v5209_v42 }
 0x43d   : > { %2702 = vst.msk [vmem:[%s3866_s20 + $0x60] sm:$0xff] %vm2689_vm3, %v5221_v25 }
 0x43e   : > { %2703 = vst.msk [vmem:[%s3866_s20 + $0x68] sm:$0xff] %vm2689_vm3, %v5260_v13 }
 0x43f   : > { %2704 = vst.msk [vmem:[%s3866_s20 + $0x70] sm:$0xff] %vm2689_vm3, %v5258_v20 }
 0x440   : > { %2705 = vst.msk [vmem:[%s3866_s20 + $0x78] sm:$0xff] %vm2689_vm3, %v5266_v3 }
 0x441   : > { %2706 = vst.msk [vmem:[%s3866_s20 + $0x80] sm:$0xff] %vm2689_vm3, %v5301_v63 }
 0x442   : > { %2707 = vst.msk [vmem:[%s3866_s20 + $0x88] sm:$0xff] %vm2689_vm3, %v5299_v32 }
 0x443   : > { %2708 = vst.msk [vmem:[%s3866_s20 + $0x90] sm:$0xff] %vm2689_vm3, %v5306_v15 }
 0x444   : > { %2709 = vst.msk [vmem:[%s3866_s20 + $0x98] sm:$0xff] %vm2689_vm3, %v5329_v35 }
 0x445   : > { %2710 = vst.msk [vmem:[%s3866_s20 + $0xa0] sm:$0xff] %vm2689_vm3, %v5327_v19 }
 0x446   : > { %2711 = vst.msk [vmem:[%s3866_s20 + $0xa8] sm:$0xff] %vm2689_vm3, %v5334_v46 }
 0x447   : > { %2712 = vst.msk [vmem:[%s3866_s20 + $0xb0] sm:$0xff] %vm2689_vm3, %v5351_v47 }
 0x448   : > { %2713 = vst.msk [vmem:[%s3866_s20 + $0xb8] sm:$0xff] %vm2689_vm3, %v5349_v45 }
 0x449   : > { %2714 = vst.msk [vmem:[%s3866_s20 + $0xc0] sm:$0xff] %vm2689_vm3, %v5353_v22 }
 0x44a   : > { %2715 = vst.msk [vmem:[%s3866_s20 + $0xc8] sm:$0xff] %vm2689_vm3, %v5369_v26 }
 0x44b   : > { %2716 = vst.msk [vmem:[%s3866_s20 + $0xd0] sm:$0xff] %vm2689_vm3, %v5367_v7 }
 0x44c   : > { %2717 = vst.msk [vmem:[%s3866_s20 + $0xd8] sm:$0xff] %vm2689_vm3, %v5371_v28 }
 0x44d   : > { %2718 = vst.msk [vmem:[%s3866_s20 + $0xe0] sm:$0xff] %vm2689_vm3, %v5387_v53 }
 0x44e   : > { %2719 = vst.msk [vmem:[%s3866_s20 + $0xe8] sm:$0xff] %vm2689_vm3, %v5385_v36 }
 0x44f   : > { %2720 = vst.msk [vmem:[%s3866_s20 + $0xf0] sm:$0xff] %vm2689_vm3, %v5389_v12 }
 0x450   : > { %2721 = vst.msk [vmem:[%s3866_s20 + $0xf8] sm:$0xff] %vm2689_vm3, %v5405_v33 }
 0x451   : > { %2722 = vst.msk [vmem:[%s3866_s20 + $0x100] sm:$0xff] %vm2689_vm3, %v5403_v30 }
 0x452   : > { %2723 = vst.msk [vmem:[%s3866_s20 + $0x108] sm:$0xff] %vm2689_vm3, %v5407_v23 }
 0x453   : > { %2724 = vst.msk [vmem:[%s3866_s20 + $0x110] sm:$0xff] %vm2689_vm3, %v4985_v6 }
 0x454   : > { %2725 = vst.msk [vmem:[%s3866_s20 + $0x118] sm:$0xff] %vm2689_vm3, %v4999_v50 }
 0x455   : > { %2726 = vst.msk [vmem:[%s3866_s20 + $0x120] sm:$0xff] %vm2689_vm3, %v5018_v43  ;;  %v6534_v43 = vld [vmem:[#allocation29_spill] sm:$0xff] }
 0x456   : > { %2727 = vst.msk [vmem:[%s3866_s20 + $0x128] sm:$0xff] %vm2689_vm3, %v5064_v17 }
 0x457   : > { %2728 = vst.msk [vmem:[%s3866_s20 + $0x130] sm:$0xff] %vm2689_vm3, %v5062_v62 }
 0x458   : > { %2729 = vst.msk [vmem:[%s3866_s20 + $0x138] sm:$0xff] %vm2689_vm3, %v5074_v51  ;;  %v6535_v51 = vld [vmem:[#allocation9_spill] sm:$0xff] }
 0x459   : > { %2730 = vst.msk [vmem:[%s3866_s20 + $0x140] sm:$0xff] %vm2689_vm3, %v5125_v4 }
 0x45a   : > { %2731 = vst.msk [vmem:[%s3866_s20 + $0x148] sm:$0xff] %vm2689_vm3, %v5123_v24 }
 0x45b   : > { %2732 = vst.msk [vmem:[%s3866_s20 + $0x150] sm:$0xff] %vm2689_vm3, %v6534_v43  ;;  %v6536_v43 = vld [vmem:[#allocation4_spill] sm:$0xff] }
 0x45c   : > { %2733 = vst.msk [vmem:[%s3866_s20 + $0x158] sm:$0xff] %vm2689_vm3, %v5187_v27 }
 0x45d   : > { %2734 = vst.msk [vmem:[%s3866_s20 + $0x160] sm:$0xff] %vm2689_vm3, %v5185_v39 }
 0x45e   : > { %2735 = vst.msk [vmem:[%s3866_s20 + $0x168] sm:$0xff] %vm2689_vm3, %v6535_v51  ;;  %v6537_v51 = vld [vmem:[#allocation50_spill] sm:$0xff] }
 0x45f   : > { %2736 = vst.msk [vmem:[%s3866_s20 + $0x170] sm:$0xff] %vm2689_vm3, %v5239_v58 }
 0x460   : > { %2737 = vst.msk [vmem:[%s3866_s20 + $0x178] sm:$0xff] %vm2689_vm3, %v5237_v14 }
 0x461   : > { %2738 = vst.msk [vmem:[%s3866_s20 + $0x180] sm:$0xff] %vm2689_vm3, %v5245_v41  ;;  %v6538_v41 = vld [vmem:[#allocation5_spill] sm:$0xff] }
 0x462   : > { %2739 = vst.msk [vmem:[%s3866_s20 + $0x188] sm:$0xff] %vm2689_vm3, %v5282_v8  ;;  %v6539_v8 = vld [vmem:[#allocation54_spill] sm:$0xff] }
 0x463   : > { %2740 = vst.msk [vmem:[%s3866_s20 + $0x190] sm:$0xff] %vm2689_vm3, %v5280_v56  ;;  %v6540_v56 = vld [vmem:[#allocation53_spill] sm:$0xff] }
 0x464   : > { %2741 = vst.msk [vmem:[%s3866_s20 + $0x198] sm:$0xff] %vm2689_vm3, %v5288_v0  ;;  %v6541_v0 = vld [vmem:[#allocation27_spill] sm:$0xff] }
 0x465   : > { %2742 = vst.msk [vmem:[%s3866_s20 + $0x1a0] sm:$0xff] %vm2689_vm3, %v6536_v43  ;;  %v6542_v43 = vld [vmem:[#allocation10_spill] sm:$0xff] }
 0x466   : > { %2743 = vst.msk [vmem:[%s3866_s20 + $0x1a8] sm:$0xff] %vm2689_vm3, %v6537_v51  ;;  %v6543_v51 = vld [vmem:[#allocation6_spill] sm:$0xff] }
 0x467   : > { %2744 = vst.msk [vmem:[%s3866_s20 + $0x1b0] sm:$0xff] %vm2689_vm3, %v6538_v41  ;;  %v6544_v41 = vld [vmem:[#allocation30_spill] sm:$0xff] }
 0x468   : > { %2745 = vst.msk [vmem:[%s3866_s20 + $0x1b8] sm:$0xff] %vm2689_vm3, %v6539_v8  ;;  %v6545_v8 = vld [vmem:[#allocation33_spill] sm:$0xff] }
 0x469   : > { %2746 = vst.msk [vmem:[%s3866_s20 + $0x1c0] sm:$0xff] %vm2689_vm3, %v6540_v56  ;;  %v6546_v56 = vld [vmem:[#allocation13_spill] sm:$0xff] }
 0x46a   : > { %2747 = vst.msk [vmem:[%s3866_s20 + $0x1c8] sm:$0xff] %vm2689_vm3, %v6541_v0  ;;  %v6547_v0 = vld [vmem:[#allocation31_spill] sm:$0xff] }
 0x46b   : > { %2748 = vst.msk [vmem:[%s3866_s20 + $0x1d0] sm:$0xff] %vm2689_vm3, %v6542_v43  ;;  %v6548_v43 = vld [vmem:[#allocation34_spill] sm:$0xff] }
 0x46c   : > { %2749 = vst.msk [vmem:[%s3866_s20 + $0x1d8] sm:$0xff] %vm2689_vm3, %v6543_v51  ;;  %v6549_v51 = vld [vmem:[#allocation36_spill] sm:$0xff] }
 0x46d   : > { %2750 = vst.msk [vmem:[%s3866_s20 + $0x1e0] sm:$0xff] %vm2689_vm3, %v6544_v41  ;;  %v6550_v41 = vld [vmem:[#allocation17_spill] sm:$0xff] }
 0x46e   : > { %2751 = vst.msk [vmem:[%s3866_s20 + $0x1e8] sm:$0xff] %vm2689_vm3, %v6545_v8  ;;  %v6551_v8 = vld [vmem:[#allocation18_spill] sm:$0xff] }
 0x46f   : > { %2752 = vst.msk [vmem:[%s3866_s20 + $0x1f0] sm:$0xff] %vm2689_vm3, %v6546_v56  ;;  %v6552_v56 = vld [vmem:[#allocation41_spill] sm:$0xff] }
 0x470   : > { %2753 = vst.msk [vmem:[%s3866_s20 + $0x1f8] sm:$0xff] %vm2689_vm3, %v6547_v0  ;;  %v6553_v0 = vld [vmem:[#allocation23_spill] sm:$0xff] }
 0x471   : > { %2754 = vst.msk [vmem:[%s3866_s20 + $0x200] sm:$0xff] %vm2689_vm3, %v6548_v43  ;;  %v6554_v43 = vld [vmem:[#allocation43_spill] sm:$0xff] }
 0x472   : > { %2755 = vst.msk [vmem:[%s3866_s20 + $0x208] sm:$0xff] %vm2689_vm3, %v6549_v51  ;;  %v6555_v51 = vld [vmem:[#allocation45_spill] sm:$0xff] }
 0x473   : > { %2756 = vst.msk [vmem:[%s3866_s20 + $0x210] sm:$0xff] %vm2689_vm3, %v6550_v41  ;;  %v6556_v41 = vld [vmem:[#allocation47_spill] sm:$0xff] }
 0x474   : > { %2757 = vst.msk [vmem:[%s3866_s20 + $0x218] sm:$0xff] %vm2689_vm3, %v6551_v8  ;;  %v6557_v8 = vld [vmem:[#allocation57_spill] sm:$0xff] }
 0x475   : > { %2758 = vst.msk [vmem:[%s3866_s20 + $0x220] sm:$0xff] %vm2689_vm3, %v6552_v56  ;;  %v6558_v56 = vld [vmem:[#allocation56_spill] sm:$0xff] }
 0x476   : > { %2759 = vst.msk [vmem:[%s3866_s20 + $0x228] sm:$0xff] %vm2689_vm3, %v5297_v49 }
 0x477   : > { %2760 = vst.msk [vmem:[%s3866_s20 + $0x230] sm:$0xff] %vm2689_vm3, %v5320_v1 }
 0x478   : > { %2761 = vst.msk [vmem:[%s3866_s20 + $0x238] sm:$0xff] %vm2689_vm3, %v5318_v44 }
 0x479   : > { %2762 = vst.msk [vmem:[%s3866_s20 + $0x240] sm:$0xff] %vm2689_vm3, %v6553_v0  ;;  %v6559_v0 = vld [vmem:[#allocation58_spill] sm:$0xff] }
 0x47a   : > { %2763 = vst.msk [vmem:[%s3866_s20 + $0x248] sm:$0xff] %vm2689_vm3, %v6554_v43  ;;  %v6560_v43 = vld [vmem:[#allocation63_spill] sm:$0xff] }
 0x47b   : > { %2764 = vst.msk [vmem:[%s3866_s20 + $0x250] sm:$0xff] %vm2689_vm3, %v6555_v51  ;;  %v6561_v51 = vld [vmem:[#allocation62_spill] sm:$0xff] }
 0x47c   : > { %2765 = vst.msk [vmem:[%s3866_s20 + $0x258] sm:$0xff] %vm2689_vm3, %v6556_v41  ;;  %v6562_v41 = vld [vmem:[#allocation64_spill] sm:$0xff] }
 0x47d   : > { %2766 = vst.msk [vmem:[%s3866_s20 + $0x260] sm:$0xff] %vm2689_vm3, %v6557_v8  ;;  %v6563_v8 = vld [vmem:[#allocation69_spill] sm:$0xff] }
 0x47e   : > { %2767 = vst.msk [vmem:[%s3866_s20 + $0x268] sm:$0xff] %vm2689_vm3, %v6558_v56  ;;  %v6564_v56 = vld [vmem:[#allocation68_spill] sm:$0xff] }
 0x47f   : > { %2768 = vst.msk [vmem:[%s3866_s20 + $0x270] sm:$0xff] %vm2689_vm3, %v6559_v0  ;;  %v6565_v0 = vld [vmem:[#allocation70_spill] sm:$0xff] }
 0x480   : > { %2769 = vst.msk [vmem:[%s3866_s20 + $0x278] sm:$0xff] %vm2689_vm3, %v6560_v43  ;;  %v6566_v43 = vld [vmem:[#allocation2_spill] sm:$0xff] }
 0x481   : > { %2770 = vst.msk [vmem:[%s3866_s20 + $0x280] sm:$0xff] %vm2689_vm3, %v6561_v51  ;;  %v6567_v51 = vld [vmem:[#allocation51_spill] sm:$0xff] }
 0x482   : > { %2771 = vst.msk [vmem:[%s3866_s20 + $0x288] sm:$0xff] %vm2689_vm3, %v6562_v41  ;;  %v6568_v41 = vld [vmem:[#allocation3_spill] sm:$0xff] }
 0x483   : > { %2772 = vst.msk [vmem:[%s3866_s20 + $0x290] sm:$0xff] %vm2689_vm3, %v6563_v8  ;;  %v6569_v8 = vld [vmem:[#allocation7_spill] sm:$0xff] }
 0x484   : > { %2773 = vst.msk [vmem:[%s3866_s20 + $0x298] sm:$0xff] %vm2689_vm3, %v6564_v56  ;;  %v6570_v56 = vld [vmem:[#allocation26_spill] sm:$0xff] }
 0x485   : > { %2774 = vst.msk [vmem:[%s3866_s20 + $0x2a0] sm:$0xff] %vm2689_vm3, %v6565_v0  ;;  %v6571_v0 = vld [vmem:[#allocation25_spill] sm:$0xff] }
 0x486   : > { %2775 = vst.msk [vmem:[%s3866_s20 + $0x2a8] sm:$0xff] %vm2689_vm3, %v5417_v54 }
 0x487   : > { %2776 = vst.msk [vmem:[%s3866_s20 + $0x2b0] sm:$0xff] %vm2689_vm3, %v5415_v61 }
 0x488   : > { %2777 = vst.msk [vmem:[%s3866_s20 + $0x2b8] sm:$0xff] %vm2689_vm3, %v5419_v34 }
 0x489   : > { %2778 = vst.msk [vmem:[%s3866_s20 + $0x2c0] sm:$0xff] %vm2689_vm3, %v5429_v16  ;;  %v6595_v16 = vld [vmem:[#allocation65_spill] sm:$0xff] }
 0x48a   : > { %2779 = vst.msk [vmem:[%s3866_s20 + $0x2c8] sm:$0xff] %vm2689_vm3, %v5421_v10  ;;  %v6591_v10 = vld [vmem:[#allocation60_spill] sm:$0xff] }
 0x48b   : > { %2780 = vst.msk [vmem:[%s3866_s20 + $0x2d0] sm:$0xff] %vm2689_vm3, %v6566_v43  ;;  %v6572_v43 = vld [vmem:[#allocation8_spill] sm:$0xff] }
 0x48c   : > { %2781 = vst.msk [vmem:[%s3866_s20 + $0x2d8] sm:$0xff] %vm2689_vm3, %v6567_v51  ;;  %v6573_v51 = vld [vmem:[#allocation11_spill] sm:$0xff] }
 0x48d   : > { %2782 = vst.msk [vmem:[%s3866_s20 + $0x2e0] sm:$0xff] %vm2689_vm3, %v6568_v41  ;;  %v6574_v41 = vld [vmem:[#allocation28_spill] sm:$0xff] }
 0x48e   : > { %2783 = vst.msk [vmem:[%s3866_s20 + $0x2e8] sm:$0xff] %vm2689_vm3, %v6569_v8  ;;  %v6575_v8 = vld [vmem:[#allocation32_spill] sm:$0xff] }
 0x48f   : > { %2784 = vst.msk [vmem:[%s3866_s20 + $0x2f0] sm:$0xff] %vm2689_vm3, %v6570_v56  ;;  %v6576_v56 = vld [vmem:[#allocation35_spill] sm:$0xff] }
 0x490   : > { %2785 = vst.msk [vmem:[%s3866_s20 + $0x2f8] sm:$0xff] %vm2689_vm3, %v6571_v0  ;;  %v6577_v0 = vld [vmem:[#allocation14_spill] sm:$0xff] }
 0x491   : > { %2786 = vst.msk [vmem:[%s3866_s20 + $0x300] sm:$0xff] %vm2689_vm3, %v6572_v43  ;;  %v6578_v43 = vld [vmem:[#allocation12_spill] sm:$0xff] }
 0x492   : > { %2787 = vst.msk [vmem:[%s3866_s20 + $0x308] sm:$0xff] %vm2689_vm3, %v6573_v51  ;;  %v6579_v51 = vld [vmem:[#allocation15_spill] sm:$0xff] }
 0x493   : > { %2788 = vst.msk [vmem:[%s3866_s20 + $0x310] sm:$0xff] %vm2689_vm3, %v6574_v41  ;;  %v6580_v41 = vld [vmem:[#allocation38_spill] sm:$0xff] }
 0x494   : > { %2789 = vst.msk [vmem:[%s3866_s20 + $0x318] sm:$0xff] %vm2689_vm3, %v6575_v8  ;;  %v6581_v8 = vld [vmem:[#allocation19_spill] sm:$0xff] }
 0x495   : > { %2790 = vst.msk [vmem:[%s3866_s20 + $0x320] sm:$0xff] %vm2689_vm3, %v6576_v56  ;;  %v6582_v56 = vld [vmem:[#allocation42_spill] sm:$0xff] }
 0x496   : > { %2791 = vst.msk [vmem:[%s3866_s20 + $0x328] sm:$0xff] %vm2689_vm3, %v6577_v0  ;;  %v6583_v0 = vld [vmem:[#allocation22_spill] sm:$0xff] }
 0x497   : > { %2792 = vst.msk [vmem:[%s3866_s20 + $0x330] sm:$0xff] %vm2689_vm3, %v6578_v43  ;;  %v6584_v43 = vld [vmem:[#allocation40_spill] sm:$0xff] }
 0x498   : > { %2793 = vst.msk [vmem:[%s3866_s20 + $0x338] sm:$0xff] %vm2689_vm3, %v6579_v51  ;;  %v6585_v51 = vld [vmem:[#allocation21_spill] sm:$0xff] }
 0x499   : > { %2794 = vst.msk [vmem:[%s3866_s20 + $0x340] sm:$0xff] %vm2689_vm3, %v6580_v41  ;;  %v6586_v41 = vld [vmem:[#allocation44_spill] sm:$0xff] }
 0x49a   : > { %2795 = vst.msk [vmem:[%s3866_s20 + $0x348] sm:$0xff] %vm2689_vm3, %v6581_v8  ;;  %v6587_v8 = vld [vmem:[#allocation24_spill] sm:$0xff] }
 0x49b   : > { %2796 = vst.msk [vmem:[%s3866_s20 + $0x350] sm:$0xff] %vm2689_vm3, %v6582_v56  ;;  %v6588_v56 = vld [vmem:[#allocation46_spill] sm:$0xff] }
 0x49c   : > { %2797 = vst.msk [vmem:[%s3866_s20 + $0x358] sm:$0xff] %vm2689_vm3, %v6583_v0  ;;  %v6589_v0 = vld [vmem:[#allocation48_spill] sm:$0xff] }
 0x49d   : > { %2798 = vst.msk [vmem:[%s3866_s20 + $0x360] sm:$0xff] %vm2689_vm3, %v6584_v43  ;;  %v6590_v43 = vld [vmem:[#allocation55_spill] sm:$0xff] }
 0x49e   : > { %2799 = vst.msk [vmem:[%s3866_s20 + $0x368] sm:$0xff] %vm2689_vm3, %v6585_v51  ;;  %v6592_v51 = vld [vmem:[#allocation59_spill] sm:$0xff] }
 0x49f   : > { %2800 = vst.msk [vmem:[%s3866_s20 + $0x370] sm:$0xff] %vm2689_vm3, %v6586_v41  ;;  %v6593_v41 = vld [vmem:[#allocation61_spill] sm:$0xff] }
 0x4a0   : > { %2801 = vst.msk [vmem:[%s3866_s20 + $0x378] sm:$0xff] %vm2689_vm3, %v6587_v8  ;;  %v6594_v8 = vld [vmem:[#allocation66_spill] sm:$0xff] }
 0x4a1   : > { %2802 = vst.msk [vmem:[%s3866_s20 + $0x380] sm:$0xff] %vm2689_vm3, %v6588_v56  ;;  %v6596_v56 = vld [vmem:[#allocation67_spill] sm:$0xff] }
 0x4a2   : > { %2803 = vst.msk [vmem:[%s3866_s20 + $0x388] sm:$0xff] %vm2689_vm3, %v6589_v0  ;;  %v6597_v0 = vld [vmem:[#allocation71_spill] sm:$0xff] }
 0x4a3   : > { %2804 = vst.msk [vmem:[%s3866_s20 + $0x390] sm:$0xff] %vm2689_vm3, %v6590_v43 }
 0x4a4   : > { %2805 = vst.msk [vmem:[%s3866_s20 + $0x398] sm:$0xff] %vm2689_vm3, %v6591_v10 }
 0x4a5   : > { %2806 = vst.msk [vmem:[%s3866_s20 + $0x3a0] sm:$0xff] %vm2689_vm3, %v6592_v51 }
 0x4a6   : > { %2807 = vst.msk [vmem:[%s3866_s20 + $0x3a8] sm:$0xff] %vm2689_vm3, %v6593_v41 }
 0x4a7   : > { %2808 = vst.msk [vmem:[%s3866_s20 + $0x3b0] sm:$0xff] %vm2689_vm3, %v6594_v8 }
 0x4a8   : > { %2809 = vst.msk [vmem:[%s3866_s20 + $0x3b8] sm:$0xff] %vm2689_vm3, %v6595_v16 }
 0x4a9   : > { %2810 = vst.msk [vmem:[%s3866_s20 + $0x3c0] sm:$0xff] %vm2689_vm3, %v6596_v56 }
 0x4aa   : > { %2811 = vst.msk [vmem:[%s3866_s20 + $0x3c8] sm:$0xff] %vm2689_vm3, %v5411_v18 }
 0x4ab   : > { %2812 = vst.msk [vmem:[%s3866_s20 + $0x3d0] sm:$0xff] %vm2689_vm3, %v6597_v0 }
 0x4ac   : > { %2813 = vst.msk [vmem:[%s3866_s20 + $0x3d8] sm:$0xff] %vm2689_vm3, %v5413_v11 }
 0x4ad   : > { %2814 = vst.msk [vmem:[%s3866_s20 + $0x3e0] sm:$0xff] %vm2689_vm3, %v5423_v55 }
 0x4ae   : > { %2815 = vst.msk [vmem:[%s3866_s20 + $0x3e8] sm:$0xff] %vm2689_vm3, %v5427_v59 }
 0x4af   : > { %2816 = vst.msk [vmem:[%s3866_s20 + $0x3f0] sm:$0xff] %vm2689_vm3, %v5425_v21 }
 0x4b0   : > { %2817 = vst.msk [vmem:[%s3866_s20 + $0x3f8] sm:$0xff] %vm2689_vm3, %v5431_v5 }
 0x4b1 PF: > { %p3594_p8 = scmp.le.s32.totalorder %s3761_s24, 0 }
 0x4b3   : > { %2821 = sbr.rel (%p3594_p8) target bundleno = 1339 (0x53b), region = 56 }
 0x4b8   : > { %v2822_v16 = vld [vmem:[%s3866_s20] sm:$0xff]  ;;  %vm3078_vm4 = vcmask 7168   ;;  %v2823_v10 = vld [vmem:[%s3866_s20 + $0x8] sm:$0xff]  ;;  %v2824_v43 = vld [vmem:[%s3866_s20 + $0x10] sm:$0xff] }
 0x4b9   : > { %v2950_v51 = vmax.f32 %v2822_v16, %v4958_v37  ;;  %v2951_v41 = vmax.f32 %v2823_v10, %v4983_v40  ;;  %v2952_v8 = vmax.f32 %v2824_v43, %v4997_v38  ;;  %v2825_v56 = vld [vmem:[%s3866_s20 + $0x18] sm:$0xff]  ;;  %v2826_v0 = vld [vmem:[%s3866_s20 + $0x20] sm:$0xff]  ;;  %v2827_v5 = vld [vmem:[%s3866_s20 + $0x28] sm:$0xff] }
 0x4ba   : > { %v2953_v21 = vmax.f32 %v2825_v56, %v5040_v9  ;;  %v2828_v59 = vld [vmem:[%s3866_s20 + $0x30] sm:$0xff]  ;;  %v2954_v37 = vmax.f32 %v2826_v0, %v5093_v57  ;;  %v2829_v16 = vld [vmem:[%s3866_s20 + $0x38] sm:$0xff]  ;;  %v2955_v40 = vmax.f32 %v2827_v5, %v5091_v31  ;;  %v2830_v38 = vld [vmem:[%s3866_s20 + $0x40] sm:$0xff] }
 0x4bb   : > { %3079 = vst.msk [vmem:[%s3866_s20] sm:$0xff] %vm3078_vm4, %v2950_v51  ;;  %v2956_v9 = vmax.f32 %v2828_v59, %v5105_v2  ;;  %v2831_v10 = vld [vmem:[%s3866_s20 + $0x48] sm:$0xff]  ;;  %v2957_v57 = vmax.f32 %v2829_v16, %v5156_v29  ;;  %v2832_v43 = vld [vmem:[%s3866_s20 + $0x50] sm:$0xff]  ;;  %v2958_v31 = vmax.f32 %v2830_v38, %v5154_v48  ;;  %v2833_v5 = vld [vmem:[%s3866_s20 + $0x58] sm:$0xff] }
 0x4bc   : > { %3080 = vst.msk [vmem:[%s3866_s20 + $0x8] sm:$0xff] %vm3078_vm4, %v2951_v41  ;;  %v2959_v2 = vmax.f32 %v2831_v10, %v5167_v60  ;;  %v2834_v59 = vld [vmem:[%s3866_s20 + $0x60] sm:$0xff]  ;;  %v2960_v29 = vmax.f32 %v2832_v43, %v5211_v52  ;;  %v2961_v48 = vmax.f32 %v2833_v5, %v5209_v42  ;;  %v2836_v51 = vld [vmem:[%s3866_s20 + $0x70] sm:$0xff]  ;;  %v2837_v41 = vld [vmem:[%s3866_s20 + $0x78] sm:$0xff] }
 0x4bd   : > { %3081 = vst.msk [vmem:[%s3866_s20 + $0x10] sm:$0xff] %vm3078_vm4, %v2952_v8  ;;  %v2962_v60 = vmax.f32 %v2834_v59, %v5221_v25  ;;  %v2838_v8 = vld [vmem:[%s3866_s20 + $0x80] sm:$0xff]  ;;  %v2964_v42 = vmax.f32 %v2836_v51, %v5258_v20  ;;  %v2839_v56 = vld [vmem:[%s3866_s20 + $0x88] sm:$0xff]  ;;  %v2965_v25 = vmax.f32 %v2837_v41, %v5266_v3  ;;  %v2840_v0 = vld [vmem:[%s3866_s20 + $0x90] sm:$0xff] }
 0x4be   : > { %3082 = vst.msk [vmem:[%s3866_s20 + $0x18] sm:$0xff] %vm3078_vm4, %v2953_v21  ;;  %v2835_v21 = vld [vmem:[%s3866_s20 + $0x68] sm:$0xff]  ;;  %v2967_v20 = vmax.f32 %v2839_v56, %v5299_v32  ;;  %v2842_v16 = vld [vmem:[%s3866_s20 + $0xa0] sm:$0xff]  ;;  %v2968_v3 = vmax.f32 %v2840_v0, %v5306_v15  ;;  %v2844_v38 = vld [vmem:[%s3866_s20 + $0xb0] sm:$0xff] }
 0x4bf   : > { %3083 = vst.msk [vmem:[%s3866_s20 + $0x20] sm:$0xff] %vm3078_vm4, %v2954_v37  ;;  %v2963_v52 = vmax.f32 %v2835_v21, %v5260_v13  ;;  %v2966_v13 = vmax.f32 %v2838_v8, %v5301_v63  ;;  %v2841_v37 = vld [vmem:[%s3866_s20 + $0x98] sm:$0xff]  ;;  %v2970_v32 = vmax.f32 %v2842_v16, %v5327_v19  ;;  %v2846_v10 = vld [vmem:[%s3866_s20 + $0xc0] sm:$0xff]  ;;  %v2848_v43 = vld [vmem:[%s3866_s20 + $0xd0] sm:$0xff] }
 0x4c0   : > { %3084 = vst.msk [vmem:[%s3866_s20 + $0x28] sm:$0xff] %vm3078_vm4, %v2955_v40  ;;  %v2843_v40 = vld [vmem:[%s3866_s20 + $0xa8] sm:$0xff]  ;;  %v2969_v63 = vmax.f32 %v2841_v37, %v5329_v35  ;;  %v2972_v35 = vmax.f32 %v2844_v38, %v5351_v47  ;;  %v2850_v5 = vld [vmem:[%s3866_s20 + $0xe0] sm:$0xff]  ;;  %v2852_v59 = vld [vmem:[%s3866_s20 + $0xf0] sm:$0xff] }
 0x4c1   : > { %3085 = vst.msk [vmem:[%s3866_s20 + $0x30] sm:$0xff] %vm3078_vm4, %v2956_v9  ;;  %v2845_v9 = vld [vmem:[%s3866_s20 + $0xb8] sm:$0xff]  ;;  %v2971_v15 = vmax.f32 %v2843_v40, %v5334_v46  ;;  %v2974_v46 = vmax.f32 %v2846_v10, %v5353_v22  ;;  %v2854_v21 = vld [vmem:[%s3866_s20 + $0x100] sm:$0xff]  ;;  %v2856_v51 = vld [vmem:[%s3866_s20 + $0x110] sm:$0xff] }
 0x4c2   : > { %3086 = vst.msk [vmem:[%s3866_s20 + $0x38] sm:$0xff] %vm3078_vm4, %v2957_v57  ;;  %v2847_v57 = vld [vmem:[%s3866_s20 + $0xc8] sm:$0xff]  ;;  %v2973_v19 = vmax.f32 %v2845_v9, %v5349_v45  ;;  %v2976_v45 = vmax.f32 %v2848_v43, %v5367_v7  ;;  %v2858_v41 = vld [vmem:[%s3866_s20 + $0x120] sm:$0xff]  ;;  %v2860_v8 = vld [vmem:[%s3866_s20 + $0x130] sm:$0xff] }
 0x4c3   : > { %3087 = vst.msk [vmem:[%s3866_s20 + $0x40] sm:$0xff] %vm3078_vm4, %v2958_v31  ;;  %v2849_v31 = vld [vmem:[%s3866_s20 + $0xd8] sm:$0xff]  ;;  %v2975_v47 = vmax.f32 %v2847_v57, %v5369_v26  ;;  %v2978_v26 = vmax.f32 %v2850_v5, %v5387_v53  ;;  %v2863_v0 = vld [vmem:[%s3866_s20 + $0x148] sm:$0xff]  ;;  %v6602_v43 = vld [vmem:[#allocation16_spill] sm:$0xff] }
 0x4c4   : > { %3088 = vst.msk [vmem:[%s3866_s20 + $0x48] sm:$0xff] %vm3078_vm4, %v2959_v2  ;;  %v2851_v2 = vld [vmem:[%s3866_s20 + $0xe8] sm:$0xff]  ;;  %v2977_v22 = vmax.f32 %v2849_v31, %v5371_v28  ;;  %v2980_v28 = vmax.f32 %v2852_v59, %v5389_v12  ;;  %v2861_v56 = vld [vmem:[%s3866_s20 + $0x138] sm:$0xff]  ;;  %v2874_v5 = vld [vmem:[%s3866_s20 + $0x1a0] sm:$0xff] }
 0x4c5   : > { %3089 = vst.msk [vmem:[%s3866_s20 + $0x50] sm:$0xff] %vm3078_vm4, %v2960_v29  ;;  %v2853_v29 = vld [vmem:[%s3866_s20 + $0xf8] sm:$0xff]  ;;  %v2979_v7 = vmax.f32 %v2851_v2, %v5385_v36  ;;  %v2982_v36 = vmax.f32 %v2854_v21, %v5403_v30  ;;  %v2867_v38 = vld [vmem:[%s3866_s20 + $0x168] sm:$0xff] }
 0x4c6   : > { %3090 = vst.msk [vmem:[%s3866_s20 + $0x58] sm:$0xff] %vm3078_vm4, %v2961_v48  ;;  %v2855_v48 = vld [vmem:[%s3866_s20 + $0x108] sm:$0xff]  ;;  %v2981_v53 = vmax.f32 %v2853_v29, %v5405_v33  ;;  %v2984_v33 = vmax.f32 %v2856_v51, %v4985_v6  ;;  %v2865_v16 = vld [vmem:[%s3866_s20 + $0x158] sm:$0xff]  ;;  %v6606_v29 = vld [vmem:[#allocation4_spill] sm:$0xff] }
 0x4c7   : > { %3091 = vst.msk [vmem:[%s3866_s20 + $0x60] sm:$0xff] %vm3078_vm4, %v2962_v60  ;;  %v2857_v60 = vld [vmem:[%s3866_s20 + $0x118] sm:$0xff]  ;;  %v2983_v12 = vmax.f32 %v2855_v48, %v5407_v23  ;;  %v2871_v57 = vld [vmem:[%s3866_s20 + $0x188] sm:$0xff] }
 0x4c8   : > { %3092 = vst.msk [vmem:[%s3866_s20 + $0x68] sm:$0xff] %vm3078_vm4, %v2963_v52  ;;  %v2859_v52 = vld [vmem:[%s3866_s20 + $0x128] sm:$0xff]  ;;  %v2985_v30 = vmax.f32 %v2857_v60, %v4999_v50  ;;  %v6598_v23 = vld [vmem:[#allocation49_spill] sm:$0xff]  ;;  %v2988_v50 = vmax.f32 %v2860_v8, %v5062_v62  ;;  %v2991_v62 = vmax.f32 %v2863_v0, %v5123_v24  ;;  %v6613_v0 = vld [vmem:[#allocation6_spill] sm:$0xff] }
 0x4c9   : > { %3093 = vst.msk [vmem:[%s3866_s20 + $0x70] sm:$0xff] %vm3078_vm4, %v2964_v42  ;;  %v2986_v42 = vmax.f32 %v2858_v41, %v6598_v23  ;;  %v2987_v6 = vmax.f32 %v2859_v52, %v5064_v17  ;;  %v6600_v40 = vld [vmem:[#allocation29_spill] sm:$0xff]  ;;  %v2875_v2 = vld [vmem:[%s3866_s20 + $0x1a8] sm:$0xff] }
 0x4ca   : > { %3094 = vst.msk [vmem:[%s3866_s20 + $0x78] sm:$0xff] %vm3078_vm4, %v2965_v25  ;;  %v2862_v25 = vld [vmem:[%s3866_s20 + $0x140] sm:$0xff]  ;;  %v2869_v9 = vld [vmem:[%s3866_s20 + $0x178] sm:$0xff]  ;;  %v2879_v60 = vld [vmem:[%s3866_s20 + $0x1c8] sm:$0xff] }
 0x4cb   : > { %3095 = vst.msk [vmem:[%s3866_s20 + $0x80] sm:$0xff] %vm3078_vm4, %v2966_v13  ;;  %v6599_v13 = vld [vmem:[#allocation52_spill] sm:$0xff]  ;;  %v2990_v17 = vmax.f32 %v2862_v25, %v5125_v4  ;;  %v2993_v4 = vmax.f32 %v2865_v16, %v5187_v27  ;;  %v2873_v31 = vld [vmem:[%s3866_s20 + $0x198] sm:$0xff]  ;;  %v6611_v23 = vld [vmem:[#allocation27_spill] sm:$0xff] }
 0x4cc   : > { %3096 = vst.msk [vmem:[%s3866_s20 + $0x88] sm:$0xff] %vm3078_vm4, %v2967_v20  ;;  %v2989_v37 = vmax.f32 %v2861_v56, %v6599_v13  ;;  %v2864_v20 = vld [vmem:[%s3866_s20 + $0x150] sm:$0xff]  ;;  %v2877_v21 = vld [vmem:[%s3866_s20 + $0x1b8] sm:$0xff]  ;;  %v2882_v56 = vld [vmem:[%s3866_s20 + $0x1e0] sm:$0xff] }
 0x4cd   : > { %3097 = vst.msk [vmem:[%s3866_s20 + $0x90] sm:$0xff] %vm3078_vm4, %v2968_v3  ;;  %v2866_v3 = vld [vmem:[%s3866_s20 + $0x160] sm:$0xff]  ;;  %v6608_v51 = vld [vmem:[#allocation5_spill] sm:$0xff] }
 0x4ce   : > { %3098 = vst.msk [vmem:[%s3866_s20 + $0x98] sm:$0xff] %vm3078_vm4, %v2969_v63  ;;  %v2992_v63 = vmax.f32 %v2864_v20, %v6600_v40  ;;  %v2994_v24 = vmax.f32 %v2866_v3, %v5185_v39  ;;  %v2997_v39 = vmax.f32 %v2869_v9, %v5237_v14  ;;  %v6604_v14 = vld [vmem:[#allocation39_spill] sm:$0xff]  ;;  %v6610_v52 = vld [vmem:[#allocation53_spill] sm:$0xff]  ;;  %v6614_v20 = vld [vmem:[#allocation30_spill] sm:$0xff] }
 0x4cf   : > { %3099 = vst.msk [vmem:[%s3866_s20 + $0xa0] sm:$0xff] %vm3078_vm4, %v2970_v32  ;;  %v2868_v32 = vld [vmem:[%s3866_s20 + $0x170] sm:$0xff]  ;;  %v2881_v8 = vld [vmem:[%s3866_s20 + $0x1d8] sm:$0xff]  ;;  %v2886_v40 = vld [vmem:[%s3866_s20 + $0x200] sm:$0xff] }
 0x4d0   : > { %3100 = vst.msk [vmem:[%s3866_s20 + $0xa8] sm:$0xff] %vm3078_vm4, %v2971_v15  ;;  %v6601_v15 = vld [vmem:[#allocation9_spill] sm:$0xff]  ;;  %v2996_v27 = vmax.f32 %v2868_v32, %v5239_v58  ;;  %v3009_v13 = vmax.f32 %v2881_v8, %v6613_v0  ;;  %v6617_v32 = vld [vmem:[#allocation31_spill] sm:$0xff]  ;;  %v2888_v9 = vld [vmem:[%s3866_s20 + $0x210] sm:$0xff] }
 0x4d1   : > { %3101 = vst.msk [vmem:[%s3866_s20 + $0xb0] sm:$0xff] %vm3078_vm4, %v2972_v35  ;;  %v2995_v10 = vmax.f32 %v2867_v38, %v6601_v15  ;;  %v2870_v35 = vld [vmem:[%s3866_s20 + $0x180] sm:$0xff]  ;;  %v6603_v58 = vld [vmem:[#allocation37_spill] sm:$0xff]  ;;  %v6628_v8 = vld [vmem:[#allocation56_spill] sm:$0xff] }
 0x4d2   : > { %3102 = vst.msk [vmem:[%s3866_s20 + $0xb8] sm:$0xff] %vm3078_vm4, %v2973_v19  ;;  %v2872_v19 = vld [vmem:[%s3866_s20 + $0x190] sm:$0xff]  ;;  %v2885_v16 = vld [vmem:[%s3866_s20 + $0x1f8] sm:$0xff]  ;;  %v6618_v15 = vld [vmem:[#allocation34_spill] sm:$0xff] }
 0x4d3   : > { %3103 = vst.msk [vmem:[%s3866_s20 + $0xc0] sm:$0xff] %vm3078_vm4, %v2974_v46  ;;  %v2998_v46 = vmax.f32 %v2870_v35, %v6602_v43  ;;  %v2889_v35 = vld [vmem:[%s3866_s20 + $0x218] sm:$0xff] }
 0x4d4   : > { %3104 = vst.msk [vmem:[%s3866_s20 + $0xc8] sm:$0xff] %vm3078_vm4, %v2975_v47  ;;  %v2999_v47 = vmax.f32 %v2871_v57, %v6603_v58 }
 0x4d5   : > { %3105 = vst.msk [vmem:[%s3866_s20 + $0xd0] sm:$0xff] %vm3078_vm4, %v2976_v45  ;;  %v3000_v45 = vmax.f32 %v2872_v19, %v6604_v14  ;;  %v6620_v19 = vld [vmem:[#allocation17_spill] sm:$0xff] }
 0x4d6   : > { %3106 = vst.msk [vmem:[%s3866_s20 + $0xd8] sm:$0xff] %vm3078_vm4, %v2977_v22  ;;  %v6605_v22 = vld [vmem:[#allocation20_spill] sm:$0xff]  ;;  %v3016_v43 = vmax.f32 %v2888_v9, %v6620_v19  ;;  %v6635_v9 = vld [vmem:[#allocation70_spill] sm:$0xff] }
 0x4d7   : > { %3107 = vst.msk [vmem:[%s3866_s20 + $0xe0] sm:$0xff] %vm3078_vm4, %v2978_v26  ;;  %v3001_v59 = vmax.f32 %v2873_v31, %v6605_v22  ;;  %v2876_v26 = vld [vmem:[%s3866_s20 + $0x1b0] sm:$0xff]  ;;  %v6621_v31 = vld [vmem:[#allocation18_spill] sm:$0xff] }
 0x4d8   : > { %3108 = vst.msk [vmem:[%s3866_s20 + $0xe8] sm:$0xff] %vm3078_vm4, %v2979_v7  ;;  %v3002_v7 = vmax.f32 %v2874_v5, %v6606_v29  ;;  %v3017_v58 = vmax.f32 %v2889_v35, %v6621_v31  ;;  %v6622_v5 = vld [vmem:[#allocation41_spill] sm:$0xff]  ;;  %v2894_v22 = vld [vmem:[%s3866_s20 + $0x240] sm:$0xff] }
 0x4d9   : > { %3109 = vst.msk [vmem:[%s3866_s20 + $0xf0] sm:$0xff] %vm3078_vm4, %v2980_v28  ;;  %v6607_v28 = vld [vmem:[#allocation50_spill] sm:$0xff]  ;;  %v2913_v31 = vld [vmem:[%s3866_s20 + $0x2d8] sm:$0xff] }
 0x4da   : > { %3110 = vst.msk [vmem:[%s3866_s20 + $0xf8] sm:$0xff] %vm3078_vm4, %v2981_v53  ;;  %v3003_v48 = vmax.f32 %v2875_v2, %v6607_v28  ;;  %v2878_v53 = vld [vmem:[%s3866_s20 + $0x1c0] sm:$0xff]  ;;  %v2897_v28 = vld [vmem:[%s3866_s20 + $0x258] sm:$0xff] }
 0x4db   : > { %3111 = vst.msk [vmem:[%s3866_s20 + $0x100] sm:$0xff] %vm3078_vm4, %v2982_v36  ;;  %v3004_v36 = vmax.f32 %v2876_v26, %v6608_v51  ;;  %v2895_v26 = vld [vmem:[%s3866_s20 + $0x248] sm:$0xff] }
 0x4dc   : > { %3112 = vst.msk [vmem:[%s3866_s20 + $0x108] sm:$0xff] %vm3078_vm4, %v2983_v12  ;;  %v6609_v12 = vld [vmem:[#allocation54_spill] sm:$0xff] }
 0x4dd   : > { %3113 = vst.msk [vmem:[%s3866_s20 + $0x110] sm:$0xff] %vm3078_vm4, %v2984_v33  ;;  %v3005_v41 = vmax.f32 %v2877_v21, %v6609_v12  ;;  %v2880_v33 = vld [vmem:[%s3866_s20 + $0x1d0] sm:$0xff] }
 0x4de   : > { %3114 = vst.msk [vmem:[%s3866_s20 + $0x118] sm:$0xff] %vm3078_vm4, %v2985_v30  ;;  %v3006_v30 = vmax.f32 %v2878_v53, %v6610_v52  ;;  %v2898_v53 = vld [vmem:[%s3866_s20 + $0x260] sm:$0xff] }
 0x4df   : > { %3115 = vst.msk [vmem:[%s3866_s20 + $0x120] sm:$0xff] %vm3078_vm4, %v2986_v42  ;;  %v3007_v42 = vmax.f32 %v2879_v60, %v6611_v23  ;;  %v6626_v60 = vld [vmem:[#allocation47_spill] sm:$0xff] }
 0x4e0   : > { %3116 = vst.msk [vmem:[%s3866_s20 + $0x128] sm:$0xff] %vm3078_vm4, %v2987_v6  ;;  %v6612_v6 = vld [vmem:[#allocation10_spill] sm:$0xff]  ;;  %v3025_v12 = vmax.f32 %v2897_v28, %v6626_v60 }
 0x4e1   : > { %3117 = vst.msk [vmem:[%s3866_s20 + $0x130] sm:$0xff] %vm3078_vm4, %v2988_v50  ;;  %v3008_v25 = vmax.f32 %v2880_v33, %v6612_v6  ;;  %v2883_v50 = vld [vmem:[%s3866_s20 + $0x1e8] sm:$0xff]  ;;  %v6627_v33 = vld [vmem:[#allocation57_spill] sm:$0xff]  ;;  %v6642_v28 = vld [vmem:[#allocation26_spill] sm:$0xff] }
 0x4e2   : > { %3118 = vst.msk [vmem:[%s3866_s20 + $0x138] sm:$0xff] %vm3078_vm4, %v2989_v37  ;;  %v2884_v37 = vld [vmem:[%s3866_s20 + $0x1f0] sm:$0xff]  ;;  %v3026_v52 = vmax.f32 %v2898_v53, %v6627_v33  ;;  %v6643_v53 = vld [vmem:[#allocation25_spill] sm:$0xff] }
 0x4e3   : > { %3119 = vst.msk [vmem:[%s3866_s20 + $0x140] sm:$0xff] %vm3078_vm4, %v2990_v17  ;;  %v3010_v17 = vmax.f32 %v2882_v56, %v6614_v20  ;;  %v6629_v56 = vld [vmem:[#allocation58_spill] sm:$0xff] }
 0x4e4   : > { %3120 = vst.msk [vmem:[%s3866_s20 + $0x148] sm:$0xff] %vm3078_vm4, %v2991_v62  ;;  %v6615_v62 = vld [vmem:[#allocation33_spill] sm:$0xff] }
 0x4e5   : > { %3121 = vst.msk [vmem:[%s3866_s20 + $0x150] sm:$0xff] %vm3078_vm4, %v2992_v63  ;;  %v3011_v3 = vmax.f32 %v2883_v50, %v6615_v62  ;;  %v6616_v63 = vld [vmem:[#allocation13_spill] sm:$0xff]  ;;  %v6630_v50 = vld [vmem:[#allocation63_spill] sm:$0xff] }
 0x4e6   : > { %3122 = vst.msk [vmem:[%s3866_s20 + $0x158] sm:$0xff] %vm3078_vm4, %v2993_v4  ;;  %v3012_v38 = vmax.f32 %v2884_v37, %v6616_v63  ;;  %v2887_v4 = vld [vmem:[%s3866_s20 + $0x208] sm:$0xff]  ;;  %v6631_v37 = vld [vmem:[#allocation62_spill] sm:$0xff] }
 0x4e7   : > { %3123 = vst.msk [vmem:[%s3866_s20 + $0x160] sm:$0xff] %vm3078_vm4, %v2994_v24  ;;  %v3013_v24 = vmax.f32 %v2885_v16, %v6617_v32  ;;  %v6632_v16 = vld [vmem:[#allocation64_spill] sm:$0xff] }
 0x4e8   : > { %3124 = vst.msk [vmem:[%s3866_s20 + $0x168] sm:$0xff] %vm3078_vm4, %v2995_v10  ;;  %v3014_v10 = vmax.f32 %v2886_v40, %v6618_v15  ;;  %v6633_v40 = vld [vmem:[#allocation69_spill] sm:$0xff] }
 0x4e9   : > { %3125 = vst.msk [vmem:[%s3866_s20 + $0x170] sm:$0xff] %vm3078_vm4, %v2996_v27  ;;  %v6619_v27 = vld [vmem:[#allocation36_spill] sm:$0xff] }
 0x4ea   : > { %3126 = vst.msk [vmem:[%s3866_s20 + $0x178] sm:$0xff] %vm3078_vm4, %v2997_v39  ;;  %v3015_v57 = vmax.f32 %v2887_v4, %v6619_v27  ;;  %v2890_v39 = vld [vmem:[%s3866_s20 + $0x220] sm:$0xff]  ;;  %v6634_v4 = vld [vmem:[#allocation68_spill] sm:$0xff] }
 0x4eb   : > { %3127 = vst.msk [vmem:[%s3866_s20 + $0x180] sm:$0xff] %vm3078_vm4, %v2998_v46  ;;  %v2891_v46 = vld [vmem:[%s3866_s20 + $0x228] sm:$0xff]  ;;  %v3018_v14 = vmax.f32 %v2890_v39, %v6622_v5  ;;  %v2910_v27 = vld [vmem:[%s3866_s20 + $0x2c0] sm:$0xff] }
 0x4ec   : > { %3128 = vst.msk [vmem:[%s3866_s20 + $0x188] sm:$0xff] %vm3078_vm4, %v2999_v47  ;;  %v2892_v47 = vld [vmem:[%s3866_s20 + $0x230] sm:$0xff]  ;;  %v3019_v2 = vmax.f32 %v2891_v46, %v5297_v49  ;;  %v6623_v49 = vld [vmem:[#allocation23_spill] sm:$0xff] }
 0x4ed   : > { %3129 = vst.msk [vmem:[%s3866_s20 + $0x190] sm:$0xff] %vm3078_vm4, %v3000_v45  ;;  %v2893_v45 = vld [vmem:[%s3866_s20 + $0x238] sm:$0xff]  ;;  %v3022_v21 = vmax.f32 %v2894_v22, %v6623_v49  ;;  %v2911_v39 = vld [vmem:[%s3866_s20 + $0x2c8] sm:$0xff]  ;;  %v2916_v22 = vld [vmem:[%s3866_s20 + $0x2f0] sm:$0xff] }
 0x4ee   : > { %3130 = vst.msk [vmem:[%s3866_s20 + $0x198] sm:$0xff] %vm3078_vm4, %v3001_v59  ;;  %v3020_v59 = vmax.f32 %v2892_v47, %v5320_v1  ;;  %v3021_v29 = vmax.f32 %v2893_v45, %v5318_v44  ;;  %v6624_v1 = vld [vmem:[#allocation43_spill] sm:$0xff]  ;;  %v6625_v44 = vld [vmem:[#allocation45_spill] sm:$0xff]  ;;  %v2914_v47 = vld [vmem:[%s3866_s20 + $0x2e0] sm:$0xff] }
 0x4ef   : > { %3131 = vst.msk [vmem:[%s3866_s20 + $0x1a0] sm:$0xff] %vm3078_vm4, %v3002_v7  ;;  %v2896_v7 = vld [vmem:[%s3866_s20 + $0x250] sm:$0xff]  ;;  %v6639_v45 = vld [vmem:[#allocation51_spill] sm:$0xff] }
 0x4f0   : > { %3132 = vst.msk [vmem:[%s3866_s20 + $0x1a8] sm:$0xff] %vm3078_vm4, %v3003_v48  ;;  %v3023_v48 = vmax.f32 %v2895_v26, %v6624_v1  ;;  %v3024_v51 = vmax.f32 %v2896_v7, %v6625_v44  ;;  %v6641_v7 = vld [vmem:[#allocation7_spill] sm:$0xff]  ;;  %v3044_v1 = vmax.f32 %v2916_v22, %v6642_v28  ;;  %v6660_v22 = vld [vmem:[#allocation46_spill] sm:$0xff] }
 0x4f1   : > { %3133 = vst.msk [vmem:[%s3866_s20 + $0x1b0] sm:$0xff] %vm3078_vm4, %v3004_v36  ;;  %v2899_v36 = vld [vmem:[%s3866_s20 + $0x268] sm:$0xff] }
 0x4f2   : > { %3134 = vst.msk [vmem:[%s3866_s20 + $0x1b8] sm:$0xff] %vm3078_vm4, %v3005_v41  ;;  %v2900_v41 = vld [vmem:[%s3866_s20 + $0x270] sm:$0xff]  ;;  %v3027_v23 = vmax.f32 %v2899_v36, %v6628_v8 }
 0x4f3   : > { %3135 = vst.msk [vmem:[%s3866_s20 + $0x1c0] sm:$0xff] %vm3078_vm4, %v3006_v30  ;;  %v2901_v30 = vld [vmem:[%s3866_s20 + $0x278] sm:$0xff]  ;;  %v3028_v6 = vmax.f32 %v2900_v41, %v6629_v56  ;;  %v6644_v36 = vld [vmem:[#allocation8_spill] sm:$0xff]  ;;  %v6645_v41 = vld [vmem:[#allocation11_spill] sm:$0xff] }
 0x4f4   : > { %3136 = vst.msk [vmem:[%s3866_s20 + $0x1c8] sm:$0xff] %vm3078_vm4, %v3007_v42  ;;  %v2902_v42 = vld [vmem:[%s3866_s20 + $0x280] sm:$0xff]  ;;  %v3029_v0 = vmax.f32 %v2901_v30, %v6630_v50  ;;  %v6646_v30 = vld [vmem:[#allocation28_spill] sm:$0xff] }
 0x4f5   : > { %3137 = vst.msk [vmem:[%s3866_s20 + $0x1d0] sm:$0xff] %vm3078_vm4, %v3008_v25  ;;  %v2903_v25 = vld [vmem:[%s3866_s20 + $0x288] sm:$0xff]  ;;  %v3030_v20 = vmax.f32 %v2902_v42, %v6631_v37  ;;  %v6647_v42 = vld [vmem:[#allocation32_spill] sm:$0xff] }
 0x4f6   : > { %3138 = vst.msk [vmem:[%s3866_s20 + $0x1d8] sm:$0xff] %vm3078_vm4, %v3009_v13  ;;  %v2904_v13 = vld [vmem:[%s3866_s20 + $0x290] sm:$0xff]  ;;  %v3031_v62 = vmax.f32 %v2903_v25, %v6632_v16  ;;  %v6648_v25 = vld [vmem:[#allocation35_spill] sm:$0xff] }
 0x4f7   : > { %3139 = vst.msk [vmem:[%s3866_s20 + $0x1e0] sm:$0xff] %vm3078_vm4, %v3010_v17  ;;  %v2905_v17 = vld [vmem:[%s3866_s20 + $0x298] sm:$0xff]  ;;  %v3032_v63 = vmax.f32 %v2904_v13, %v6633_v40  ;;  %v6649_v13 = vld [vmem:[#allocation14_spill] sm:$0xff] }
 0x4f8   : > { %3140 = vst.msk [vmem:[%s3866_s20 + $0x1e8] sm:$0xff] %vm3078_vm4, %v3011_v3  ;;  %v2906_v3 = vld [vmem:[%s3866_s20 + $0x2a0] sm:$0xff]  ;;  %v3033_v32 = vmax.f32 %v2905_v17, %v6634_v4  ;;  %v6650_v17 = vld [vmem:[#allocation12_spill] sm:$0xff] }
 0x4f9   : > { %3141 = vst.msk [vmem:[%s3866_s20 + $0x1f0] sm:$0xff] %vm3078_vm4, %v3012_v38  ;;  %v2907_v38 = vld [vmem:[%s3866_s20 + $0x2a8] sm:$0xff]  ;;  %v3034_v15 = vmax.f32 %v2906_v3, %v6635_v9 }
 0x4fa   : > { %3142 = vst.msk [vmem:[%s3866_s20 + $0x1f8] sm:$0xff] %vm3078_vm4, %v3013_v24  ;;  %v2908_v24 = vld [vmem:[%s3866_s20 + $0x2b0] sm:$0xff]  ;;  %v3035_v35 = vmax.f32 %v2907_v38, %v5417_v54  ;;  %v6636_v54 = vld [vmem:[#allocation75_spill] sm:$0xff]  ;;  %v6652_v38 = vld [vmem:[#allocation38_spill] sm:$0xff] }
 0x4fb   : > { %3143 = vst.msk [vmem:[%s3866_s20 + $0x200] sm:$0xff] %vm3078_vm4, %v3014_v10  ;;  %v2909_v10 = vld [vmem:[%s3866_s20 + $0x2b8] sm:$0xff]  ;;  %v3038_v46 = vmax.f32 %v2910_v27, %v6636_v54  ;;  %v6651_v3 = vld [vmem:[#allocation15_spill] sm:$0xff] }
 0x4fc   : > { %3144 = vst.msk [vmem:[%s3866_s20 + $0x208] sm:$0xff] %vm3078_vm4, %v3015_v57  ;;  %v3036_v57 = vmax.f32 %v2908_v24, %v5415_v61  ;;  %v3037_v19 = vmax.f32 %v2909_v10, %v5419_v34  ;;  %v6637_v61 = vld [vmem:[#allocation72_spill] sm:$0xff]  ;;  %v6638_v34 = vld [vmem:[#allocation2_spill] sm:$0xff]  ;;  %v6653_v24 = vld [vmem:[#allocation19_spill] sm:$0xff] }
 0x4fd   : > { %3145 = vst.msk [vmem:[%s3866_s20 + $0x210] sm:$0xff] %vm3078_vm4, %v3016_v43  ;;  %v2912_v43 = vld [vmem:[%s3866_s20 + $0x2d0] sm:$0xff]  ;;  %v6654_v10 = vld [vmem:[#allocation42_spill] sm:$0xff]  ;;  %v2931_v27 = vld [vmem:[%s3866_s20 + $0x368] sm:$0xff] }
 0x4fe   : > { %3146 = vst.msk [vmem:[%s3866_s20 + $0x218] sm:$0xff] %vm3078_vm4, %v3017_v58  ;;  %v3039_v58 = vmax.f32 %v2911_v39, %v6637_v61  ;;  %v3040_v5 = vmax.f32 %v2912_v43, %v6638_v34  ;;  %v6656_v43 = vld [vmem:[#allocation40_spill] sm:$0xff] }
 0x4ff   : > { %3147 = vst.msk [vmem:[%s3866_s20 + $0x220] sm:$0xff] %vm3078_vm4, %v3018_v14  ;;  %v2915_v14 = vld [vmem:[%s3866_s20 + $0x2e8] sm:$0xff] }
 0x500   : > { %3148 = vst.msk [vmem:[%s3866_s20 + $0x228] sm:$0xff] %vm3078_vm4, %v3019_v2  ;;  %v3041_v2 = vmax.f32 %v2913_v31, %v6639_v45  ;;  %v3043_v49 = vmax.f32 %v2915_v14, %v6641_v7  ;;  %v6657_v31 = vld [vmem:[#allocation21_spill] sm:$0xff]  ;;  %v6659_v14 = vld [vmem:[#allocation24_spill] sm:$0xff] }
 0x501   : > { %3149 = vst.msk [vmem:[%s3866_s20 + $0x230] sm:$0xff] %vm3078_vm4, %v3020_v59  ;;  %v6640_v59 = vld [vmem:[#allocation3_spill] sm:$0xff]  ;;  %v3059_v61 = vmax.f32 %v2931_v27, %v6657_v31 }
 0x502   : > { %3150 = vst.msk [vmem:[%s3866_s20 + $0x238] sm:$0xff] %vm3078_vm4, %v3021_v29  ;;  %v3042_v26 = vmax.f32 %v2914_v47, %v6640_v59  ;;  %v2917_v29 = vld [vmem:[%s3866_s20 + $0x2f8] sm:$0xff]  ;;  %v6658_v47 = vld [vmem:[#allocation44_spill] sm:$0xff] }
 0x503   : > { %3151 = vst.msk [vmem:[%s3866_s20 + $0x240] sm:$0xff] %vm3078_vm4, %v3022_v21  ;;  %v2918_v21 = vld [vmem:[%s3866_s20 + $0x300] sm:$0xff]  ;;  %v3045_v44 = vmax.f32 %v2917_v29, %v6643_v53  ;;  %v6661_v29 = vld [vmem:[#allocation48_spill] sm:$0xff] }
 0x504   : > { %3152 = vst.msk [vmem:[%s3866_s20 + $0x248] sm:$0xff] %vm3078_vm4, %v3023_v48  ;;  %v2919_v48 = vld [vmem:[%s3866_s20 + $0x308] sm:$0xff]  ;;  %v3046_v60 = vmax.f32 %v2918_v21, %v6644_v36 }
 0x505   : > { %3153 = vst.msk [vmem:[%s3866_s20 + $0x250] sm:$0xff] %vm3078_vm4, %v3024_v51  ;;  %v2920_v51 = vld [vmem:[%s3866_s20 + $0x310] sm:$0xff]  ;;  %v3047_v33 = vmax.f32 %v2919_v48, %v6645_v41  ;;  %v6662_v21 = vld [vmem:[#allocation55_spill] sm:$0xff] }
 0x506   : > { %3154 = vst.msk [vmem:[%s3866_s20 + $0x258] sm:$0xff] %vm3078_vm4, %v3025_v12  ;;  %v2921_v12 = vld [vmem:[%s3866_s20 + $0x318] sm:$0xff]  ;;  %v3048_v8 = vmax.f32 %v2920_v51, %v6646_v30  ;;  %v6663_v48 = vld [vmem:[#allocation60_spill] sm:$0xff]  ;;  %v6664_v51 = vld [vmem:[#allocation59_spill] sm:$0xff] }
 0x507   : > { %3155 = vst.msk [vmem:[%s3866_s20 + $0x260] sm:$0xff] %vm3078_vm4, %v3026_v52  ;;  %v2922_v52 = vld [vmem:[%s3866_s20 + $0x320] sm:$0xff]  ;;  %v3049_v56 = vmax.f32 %v2921_v12, %v6647_v42  ;;  %v6665_v12 = vld [vmem:[#allocation61_spill] sm:$0xff] }
 0x508   : > { %3156 = vst.msk [vmem:[%s3866_s20 + $0x268] sm:$0xff] %vm3078_vm4, %v3027_v23  ;;  %v2923_v23 = vld [vmem:[%s3866_s20 + $0x328] sm:$0xff]  ;;  %v3050_v50 = vmax.f32 %v2922_v52, %v6648_v25  ;;  %v6666_v52 = vld [vmem:[#allocation66_spill] sm:$0xff] }
 0x509   : > { %3157 = vst.msk [vmem:[%s3866_s20 + $0x270] sm:$0xff] %vm3078_vm4, %v3028_v6  ;;  %v2924_v6 = vld [vmem:[%s3866_s20 + $0x330] sm:$0xff]  ;;  %v3051_v37 = vmax.f32 %v2923_v23, %v6649_v13  ;;  %v6667_v23 = vld [vmem:[#allocation65_spill] sm:$0xff]  ;;  %v2946_v13 = vld [vmem:[%s3866_s20 + $0x3e0] sm:$0xff] }
 0x50a   : > { %3158 = vst.msk [vmem:[%s3866_s20 + $0x278] sm:$0xff] %vm3078_vm4, %v3029_v0  ;;  %v2925_v0 = vld [vmem:[%s3866_s20 + $0x338] sm:$0xff]  ;;  %v3052_v16 = vmax.f32 %v2924_v6, %v6650_v17  ;;  %v6668_v6 = vld [vmem:[#allocation67_spill] sm:$0xff] }
 0x50b   : > { %3159 = vst.msk [vmem:[%s3866_s20 + $0x280] sm:$0xff] %vm3078_vm4, %v3030_v20  ;;  %v2926_v20 = vld [vmem:[%s3866_s20 + $0x340] sm:$0xff]  ;;  %v3053_v40 = vmax.f32 %v2925_v0, %v6651_v3  ;;  %v2947_v17 = vld [vmem:[%s3866_s20 + $0x3e8] sm:$0xff]  ;;  %v3074_v3 = vmax.f32 %v2946_v13, %v5423_v55 }
 0x50c   : > { %3160 = vst.msk [vmem:[%s3866_s20 + $0x288] sm:$0xff] %vm3078_vm4, %v3031_v62  ;;  %v2927_v62 = vld [vmem:[%s3866_s20 + $0x348] sm:$0xff]  ;;  %v3054_v4 = vmax.f32 %v2926_v20, %v6652_v38  ;;  %v6671_v38 = vld [vmem:[#allocation73_spill] sm:$0xff] }
 0x50d   : > { %3161 = vst.msk [vmem:[%s3866_s20 + $0x290] sm:$0xff] %vm3078_vm4, %v3032_v63  ;;  %v2928_v63 = vld [vmem:[%s3866_s20 + $0x350] sm:$0xff]  ;;  %v3055_v9 = vmax.f32 %v2927_v62, %v6653_v24 }
 0x50e   : > { %3162 = vst.msk [vmem:[%s3866_s20 + $0x298] sm:$0xff] %vm3078_vm4, %v3033_v32  ;;  %v2929_v32 = vld [vmem:[%s3866_s20 + $0x358] sm:$0xff]  ;;  %v2948_v62 = vld [vmem:[%s3866_s20 + $0x3f0] sm:$0xff] }
 0x50f   : > { %3163 = vst.msk [vmem:[%s3866_s20 + $0x2a0] sm:$0xff] %vm3078_vm4, %v3034_v15  ;;  %v2930_v15 = vld [vmem:[%s3866_s20 + $0x360] sm:$0xff] }
 0x510   : > { %3164 = vst.msk [vmem:[%s3866_s20 + $0x2a8] sm:$0xff] %vm3078_vm4, %v3035_v35  ;;  %v3056_v35 = vmax.f32 %v2928_v63, %v6654_v10  ;;  %v3058_v54 = vmax.f32 %v2930_v15, %v6656_v43 }
 0x511   : > { %3165 = vst.msk [vmem:[%s3866_s20 + $0x2b0] sm:$0xff] %vm3078_vm4, %v3036_v57  ;;  %v6655_v57 = vld [vmem:[#allocation22_spill] sm:$0xff] }
 0x512   : > { %3166 = vst.msk [vmem:[%s3866_s20 + $0x2b8] sm:$0xff] %vm3078_vm4, %v3037_v19  ;;  %v3057_v39 = vmax.f32 %v2929_v32, %v6655_v57  ;;  %v2932_v19 = vld [vmem:[%s3866_s20 + $0x370] sm:$0xff] }
 0x513   : > { %3167 = vst.msk [vmem:[%s3866_s20 + $0x2c0] sm:$0xff] %vm3078_vm4, %v3038_v46  ;;  %v2933_v46 = vld [vmem:[%s3866_s20 + $0x378] sm:$0xff]  ;;  %v3060_v34 = vmax.f32 %v2932_v19, %v6658_v47  ;;  %v6672_v32 = vld [vmem:[#allocation76_spill] sm:$0xff] }
 0x514   : > { %3168 = vst.msk [vmem:[%s3866_s20 + $0x2c8] sm:$0xff] %vm3078_vm4, %v3039_v58  ;;  %v2934_v58 = vld [vmem:[%s3866_s20 + $0x380] sm:$0xff]  ;;  %v3061_v45 = vmax.f32 %v2933_v46, %v6659_v14 }
 0x515   : > { %3169 = vst.msk [vmem:[%s3866_s20 + $0x2d0] sm:$0xff] %vm3078_vm4, %v3040_v5  ;;  %v2935_v5 = vld [vmem:[%s3866_s20 + $0x388] sm:$0xff]  ;;  %v3062_v59 = vmax.f32 %v2934_v58, %v6660_v22 }
 0x516   : > { %3170 = vst.msk [vmem:[%s3866_s20 + $0x2d8] sm:$0xff] %vm3078_vm4, %v3041_v2  ;;  %v2936_v2 = vld [vmem:[%s3866_s20 + $0x390] sm:$0xff]  ;;  %v3063_v7 = vmax.f32 %v2935_v5, %v6661_v29 }
 0x517   : > { %3171 = vst.msk [vmem:[%s3866_s20 + $0x2e0] sm:$0xff] %vm3078_vm4, %v3042_v26  ;;  %v2937_v26 = vld [vmem:[%s3866_s20 + $0x398] sm:$0xff]  ;;  %v3064_v28 = vmax.f32 %v2936_v2, %v6662_v21 }
 0x518   : > { %3172 = vst.msk [vmem:[%s3866_s20 + $0x2e8] sm:$0xff] %vm3078_vm4, %v3043_v49  ;;  %v2938_v49 = vld [vmem:[%s3866_s20 + $0x3a0] sm:$0xff]  ;;  %v3065_v53 = vmax.f32 %v2937_v26, %v6663_v48 }
 0x519   : > { %3173 = vst.msk [vmem:[%s3866_s20 + $0x2f0] sm:$0xff] %vm3078_vm4, %v3044_v1  ;;  %v2939_v1 = vld [vmem:[%s3866_s20 + $0x3a8] sm:$0xff]  ;;  %v3066_v36 = vmax.f32 %v2938_v49, %v6664_v51 }
 0x51a   : > { %3174 = vst.msk [vmem:[%s3866_s20 + $0x2f8] sm:$0xff] %vm3078_vm4, %v3045_v44  ;;  %v2940_v44 = vld [vmem:[%s3866_s20 + $0x3b0] sm:$0xff]  ;;  %v3067_v41 = vmax.f32 %v2939_v1, %v6665_v12 }
 0x51b   : > { %3175 = vst.msk [vmem:[%s3866_s20 + $0x300] sm:$0xff] %vm3078_vm4, %v3046_v60  ;;  %v2941_v60 = vld [vmem:[%s3866_s20 + $0x3b8] sm:$0xff]  ;;  %v3068_v30 = vmax.f32 %v2940_v44, %v6666_v52 }
 0x51c   : > { %3176 = vst.msk [vmem:[%s3866_s20 + $0x308] sm:$0xff] %vm3078_vm4, %v3047_v33  ;;  %v2942_v33 = vld [vmem:[%s3866_s20 + $0x3c0] sm:$0xff]  ;;  %v3069_v42 = vmax.f32 %v2941_v60, %v6667_v23 }
 0x51d   : > { %3177 = vst.msk [vmem:[%s3866_s20 + $0x310] sm:$0xff] %vm3078_vm4, %v3048_v8  ;;  %v2943_v8 = vld [vmem:[%s3866_s20 + $0x3c8] sm:$0xff]  ;;  %v3070_v25 = vmax.f32 %v2942_v33, %v6668_v6 }
 0x51e   : > { %3178 = vst.msk [vmem:[%s3866_s20 + $0x318] sm:$0xff] %vm3078_vm4, %v3049_v56  ;;  %v2944_v56 = vld [vmem:[%s3866_s20 + $0x3d0] sm:$0xff]  ;;  %v3071_v0 = vmax.f32 %v2943_v8, %v5411_v18  ;;  %v2949_v18 = vld [vmem:[%s3866_s20 + $0x3f8] sm:$0xff] }
 0x51f   : > { %3179 = vst.msk [vmem:[%s3866_s20 + $0x320] sm:$0xff] %vm3078_vm4, %v3050_v50  ;;  %v2945_v50 = vld [vmem:[%s3866_s20 + $0x3d8] sm:$0xff]  ;;  %v3077_v24 = vmax.f32 %v2949_v18, %v6672_v32 }
 0x520   : > { %3180 = vst.msk [vmem:[%s3866_s20 + $0x328] sm:$0xff] %vm3078_vm4, %v3051_v37  ;;  %v6669_v37 = vld [vmem:[#allocation71_spill] sm:$0xff] }
 0x521   : > { %3181 = vst.msk [vmem:[%s3866_s20 + $0x330] sm:$0xff] %vm3078_vm4, %v3052_v16  ;;  %v3072_v20 = vmax.f32 %v2944_v56, %v6669_v37  ;;  %v3073_v16 = vmax.f32 %v2945_v50, %v5413_v11 }
 0x522   : > { %3182 = vst.msk [vmem:[%s3866_s20 + $0x338] sm:$0xff] %vm3078_vm4, %v3053_v40  ;;  %v6670_v40 = vld [vmem:[#allocation74_spill] sm:$0xff] }
 0x523   : > { %3183 = vst.msk [vmem:[%s3866_s20 + $0x340] sm:$0xff] %vm3078_vm4, %v3054_v4  ;;  %v3075_v63 = vmax.f32 %v2947_v17, %v6670_v40  ;;  %v3076_v4 = vmax.f32 %v2948_v62, %v6671_v38 }
 0x524   : > { %3184 = vst.msk [vmem:[%s3866_s20 + $0x348] sm:$0xff] %vm3078_vm4, %v3055_v9 }
 0x525   : > { %3185 = vst.msk [vmem:[%s3866_s20 + $0x350] sm:$0xff] %vm3078_vm4, %v3056_v35 }
 0x526   : > { %3186 = vst.msk [vmem:[%s3866_s20 + $0x358] sm:$0xff] %vm3078_vm4, %v3057_v39 }
 0x527   : > { %3187 = vst.msk [vmem:[%s3866_s20 + $0x360] sm:$0xff] %vm3078_vm4, %v3058_v54 }
 0x528   : > { %3188 = vst.msk [vmem:[%s3866_s20 + $0x368] sm:$0xff] %vm3078_vm4, %v3059_v61 }
 0x529   : > { %3189 = vst.msk [vmem:[%s3866_s20 + $0x370] sm:$0xff] %vm3078_vm4, %v3060_v34 }
 0x52a   : > { %3190 = vst.msk [vmem:[%s3866_s20 + $0x378] sm:$0xff] %vm3078_vm4, %v3061_v45 }
 0x52b   : > { %3191 = vst.msk [vmem:[%s3866_s20 + $0x380] sm:$0xff] %vm3078_vm4, %v3062_v59 }
 0x52c   : > { %3192 = vst.msk [vmem:[%s3866_s20 + $0x388] sm:$0xff] %vm3078_vm4, %v3063_v7 }
 0x52d   : > { %3193 = vst.msk [vmem:[%s3866_s20 + $0x390] sm:$0xff] %vm3078_vm4, %v3064_v28 }
 0x52e   : > { %3194 = vst.msk [vmem:[%s3866_s20 + $0x398] sm:$0xff] %vm3078_vm4, %v3065_v53 }
 0x52f   : > { %3195 = vst.msk [vmem:[%s3866_s20 + $0x3a0] sm:$0xff] %vm3078_vm4, %v3066_v36 }
 0x530   : > { %3196 = vst.msk [vmem:[%s3866_s20 + $0x3a8] sm:$0xff] %vm3078_vm4, %v3067_v41 }
 0x531   : > { %3197 = vst.msk [vmem:[%s3866_s20 + $0x3b0] sm:$0xff] %vm3078_vm4, %v3068_v30 }
 0x532   : > { %3198 = vst.msk [vmem:[%s3866_s20 + $0x3b8] sm:$0xff] %vm3078_vm4, %v3069_v42 }
 0x533   : > { %3199 = vst.msk [vmem:[%s3866_s20 + $0x3c0] sm:$0xff] %vm3078_vm4, %v3070_v25 }
 0x534   : > { %3200 = vst.msk [vmem:[%s3866_s20 + $0x3c8] sm:$0xff] %vm3078_vm4, %v3071_v0 }
 0x535   : > { %3201 = vst.msk [vmem:[%s3866_s20 + $0x3d0] sm:$0xff] %vm3078_vm4, %v3072_v20 }
 0x536   : > { %3202 = vst.msk [vmem:[%s3866_s20 + $0x3d8] sm:$0xff] %vm3078_vm4, %v3073_v16 }
 0x537   : > { %3203 = vst.msk [vmem:[%s3866_s20 + $0x3e0] sm:$0xff] %vm3078_vm4, %v3074_v3 }
 0x538   : > { %3204 = vst.msk [vmem:[%s3866_s20 + $0x3e8] sm:$0xff] %vm3078_vm4, %v3075_v63 }
 0x539   : > { %3205 = vst.msk [vmem:[%s3866_s20 + $0x3f0] sm:$0xff] %vm3078_vm4, %v3076_v4 }
 0x53a   : > { %3206 = vst.msk [vmem:[%s3866_s20 + $0x3f8] sm:$0xff] %vm3078_vm4, %v3077_v24 }
 0x53b PF: > { %s17_s28 = sadd.s32 1, %s3777_s28   ;;  %s6673_s24 = smov %s3769_s26 }
 0x53c   : > { %p14_p9 = scmp.ge.s32.totalorder %s17_s28, 6   ;;  %s6674_s25 = smov %s3773_s27 }
 0x53d   : > { %s6675_s26 = smov %s6678_s29  ;;  %s6676_s27 = smov %s6682_s30 }
 0x53e   :  { %16 = sbr.rel (!%p14_p9) target bundleno = 3 (0x3), region = 86 }

</bundles_post_ra>
